<compile_context>
chip_gen: v7x
topology: tpu7x:2x2x1
jax: 0.10.0
libtpu: 0.0.40
codegen_flags: <defaults>
</compile_context>

<pallas_src>
import jax
import jax.numpy as jnp
from jax import lax
from jax.experimental import pallas as pl
from jax.experimental.pallas import tpu as pltpu

_C1 = 0.01 ** 2
_C2 = 0.03 ** 2
SMOOTHNESS_WEIGHT = 1e-3


# ----------------------------------------------------------------------------
# Roll-based helpers (all 2-D (H, W) maps; no padded copies).
# ----------------------------------------------------------------------------
def _sum3_reflect(a, axis, size, idx):
    """3-tap sum along `axis` with ReflectionPad2d(1) boundary semantics."""
    prev = pltpu.roll(a, 1, axis)           # a[i-1]  (wraps at i=0)
    nxt = pltpu.roll(a, size - 1, axis)     # a[i+1]  (wraps at i=size-1)
    left = jnp.where(idx == 0, nxt, prev)           # reflect: a[-1]   := a[1]
    right = jnp.where(idx == size - 1, prev, nxt)   # reflect: a[size] := a[size-2]
    return left + a + right


def _pool3(a, H, W, row_ids, col_ids):
    """3x3 average pool of a ReflectionPad2d(1)-padded map (separable)."""
    s = _sum3_reflect(a, 1, W, col_ids)     # along lanes (W)
    s = _sum3_reflect(s, 0, H, row_ids)     # along sublanes (H)
    return s * (1.0 / 9.0)


def _ssim_sum(x, y, H, W, row_ids, col_ids):
    """Sum over the monodepth-style SSIM distance map for one (H, W) channel."""
    p = lambda t: _pool3(t, H, W, row_ids, col_ids)
    mu_x = p(x)
    mu_y = p(y)
    sigma_x = p(x * x) - mu_x * mu_x
    sigma_y = p(y * y) - mu_y * mu_y
    sigma_xy = p(x * y) - mu_x * mu_y
    n = (2.0 * mu_x * mu_y + _C1) * (2.0 * sigma_xy + _C2)
    d = (mu_x * mu_x + mu_y * mu_y + _C1) * (sigma_x + sigma_y + _C2)
    ssim = jnp.clip((1.0 - n / d) * 0.5, 0.0, 1.0)
    return jnp.sum(ssim)


def _fwd_diff(a, axis, size):
    """|a[i] - a[i+1]| with wrap garbage at i == size-1 (caller fixes/masks)."""
    return jnp.abs(a - pltpu.roll(a, size - 1, axis))


def _replicate_last(a, axis, size, idx):
    """Replicate-pad a forward-diff map: d[size-1] := d[size-2]."""
    return jnp.where(idx == size - 1, pltpu.roll(a, 1, axis), a)


# ----------------------------------------------------------------------------
# Kernel 1: reprojection loss (L1 + SSIM + gradient-SSIM) + edge-aware
# smoothness.  Grid over the batch axis ("arbitrary" = reduction); per-image
# partial results accumulate in a persistent SMEM output.
# TODO(synk): at production resolutions add H row-block tiling with a 1-row halo
#             on top of the batch tiling for even tighter VMEM bounds.
# ----------------------------------------------------------------------------
def reproj_smooth_kernel(pred_ref, tgt_ref, depth_ref, out_ref):
    b = pl.program_id(0)
    C, H, W = pred_ref.shape

    row_ids = lax.broadcasted_iota(jnp.int32, (H, W), 0)
    col_ids = lax.broadcasted_iota(jnp.int32, (H, W), 1)

    l1_sum = 0.0
    ssim_sum = 0.0
    gpx = jnp.zeros((H, W), jnp.float32)   # channel-summed |d pred / dx|
    gpy = jnp.zeros((H, W), jnp.float32)
    gtx = jnp.zeros((H, W), jnp.float32)   # channel-summed |d tgt / dx|
    gty = jnp.zeros((H, W), jnp.float32)

    for c in range(C):                      # short static loop (C = 3)
        x = pred_ref[c].astype(jnp.float32)   # (H, W)
        y = tgt_ref[c].astype(jnp.float32)
        l1_sum += jnp.sum(jnp.abs(y - x))
        ssim_sum += _ssim_sum(x, y, H, W, row_ids, col_ids)
        gpx += _fwd_diff(x, 1, W)
        gpy += _fwd_diff(x, 0, H)
        gtx += _fwd_diff(y, 1, W)
        gty += _fwd_diff(y, 0, H)

    inv_c = 1.0 / C
    gpx = gpx * inv_c
    gpy = gpy * inv_c
    gtx = gtx * inv_c
    gty = gty * inv_c

    # gradient-SSIM term (single-channel maps, F.pad 'replicate' semantics)
    grad_pred = (_replicate_last(gpx, 1, W, col_ids)
                 + _replicate_last(gpy, 0, H, row_ids))
    grad_tgt = (_replicate_last(gtx, 1, W, col_ids)
                + _replicate_last(gty, 0, H, row_ids))
    ssim_grad_sum = _ssim_sum(grad_pred, grad_tgt, H, W, row_ids, col_ids)

    reproj_b = (0.4 * ssim_sum / (C * H * W)
                + 0.5 * ssim_grad_sum / (H * W)
                + 0.1 * l1_sum / (C * H * W))

    # edge-aware smoothness on mean-normalized depth
    depth = depth_ref[0].astype(jnp.float32)              # (H, W)
    nd = depth / (jnp.mean(depth) + 1e-8)
    gdx = _fwd_diff(nd, 1, W)
    gdy = _fwd_diff(nd, 0, H)
    sx = jnp.sum(jnp.where(col_ids < W - 1, gdx * jnp.exp(-gtx), 0.0)) / (H * (W - 1))
    sy = jnp.sum(jnp.where(row_ids < H - 1, gdy * jnp.exp(-gty), 0.0)) / ((H - 1) * W)
    smooth_b = sx + sy

    @pl.when(b == 0)
    def _():
        out_ref[0] = 0.0
        out_ref[1] = 0.0

    out_ref[0] += reproj_b
    out_ref[1] += smooth_b


def reprojection_and_smooth(pred, tgt, depth):
    B, C, H, W = pred.shape
    out = pl.pallas_call(
        reproj_smooth_kernel,
        out_shape=jax.ShapeDtypeStruct((2,), jnp.float32),
        grid=(B,),
        in_specs=[
            pl.BlockSpec((None, C, H, W), lambda b: (b, 0, 0, 0)),
            pl.BlockSpec((None, C, H, W), lambda b: (b, 0, 0, 0)),
            pl.BlockSpec((None, 1, H, W), lambda b: (b, 0, 0, 0)),
        ],
        out_specs=pl.BlockSpec(memory_space=pltpu.MemorySpace.SMEM),
        compiler_params=pltpu.CompilerParams(
            dimension_semantics=("arbitrary",),
            vmem_limit_bytes=64 * 1024 * 1024,
        ),
    )(pred, tgt, depth)
    # batch-uniform element counts -> mean over batch of per-image means
    return out[0] / B, out[1] / B


# ----------------------------------------------------------------------------
# Kernel 2 (fused): orthogonal regularization + Hoyer regularization.
# Single invocation, no grid: all DCRs in one batched MXU matmul; identity
# matrix and explicit transpose are eliminated; Hoyer math is lane-dense
# on a (num_dcr, D) block.
# ----------------------------------------------------------------------------
def dcr_reg_kernel(u_ref, s1_ref, s2_ref, out_ref):
    n, d, _ = u_ref.shape
    u = u_ref[...].astype(jnp.float32)                     # (n, D, D)
    # Batched U @ U^T: contract the same (last) axis of both operands so the
    # MXU consumes the transposed RHS directly (no XLU transpose).
    uut = lax.dot_general(
        u, u,
        dimension_numbers=(((2,), (2,)), ((0,), (0,))),
        preferred_element_type=jnp.float32)                # (n, D, D)
    # mean((UU^T - I)^2) = (sum((UU^T)^2) - 2*trace(UU^T) + D) / D^2,
    # with trace(UU^T) = sum(U^2); summed over DCRs then averaged.
    sum_sq = jnp.sum(uut * uut)
    tr = jnp.sum(u * u)
    out_ref[0] = (sum_sq - 2.0 * tr + n * d) / (n * d * d)

    s1 = s1_ref[...].astype(jnp.float32)                   # (n, D)
    s2 = s2_ref[...].astype(jnp.float32)
    sp = jnp.abs(s1 * s2)
    diff = sp - 1.0                                        # target = ones_vector
    ad = jnp.abs(diff)
    huber = jnp.where(ad < 1.0, 0.5 * diff * diff, ad - 0.5)   # F.smooth_l1 (beta=1)
    reg = jnp.sum(huber, axis=1, keepdims=True)            # (n, 1)  reduction='sum'
    n1 = jnp.sqrt(jnp.sum(s1 * s1, axis=1, keepdims=True))
    n2 = jnp.sqrt(jnp.sum(s2 * s2, axis=1, keepdims=True))
    out_ref[1] = jnp.sum(reg / (n1 * n2)) / n


def dcr_regularizations(U_stack, S1_stack, S2_stack):
    num_dcr, D, _ = U_stack.shape
    s1 = S1_stack.reshape(num_dcr, D)
    s2 = S2_stack.reshape(num_dcr, D)
    out = pl.pallas_call(
        dcr_reg_kernel,
        out_shape=jax.ShapeDtypeStruct((2,), jnp.float32),
        in_specs=[pl.BlockSpec(memory_space=pltpu.MemorySpace.VMEM)] * 3,
        out_specs=pl.BlockSpec(memory_space=pltpu.MemorySpace.SMEM),
        compiler_params=pltpu.CompilerParams(
            vmem_limit_bytes=64 * 1024 * 1024),
    )(U_stack, s1, s2)
    return out[0], out[1]


# ----------------------------------------------------------------------------
# Plain-JAX glue: BackprojectDepth / Project3D / grid_sample (image warping).
# TODO(synk): grid_sample is a data-dependent bilinear gather; a Pallas row-block
#             DMA-gather version is the next end-to-end win but is kept in JAX.
# ----------------------------------------------------------------------------
def backproject_depth(depth, inv_K):
    # depth: (B,1,H,W), inv_K: (B,4,4) -> cam_points (B,4,H*W)
    B, _, H, W = depth.shape
    ys, xs = jnp.meshgrid(jnp.arange(H, dtype=jnp.float32),
                          jnp.arange(W, dtype=jnp.float32), indexing="ij")
    pix = jnp.stack([xs.ravel(), ys.ravel(), jnp.ones(H * W, jnp.float32)], axis=0)
    cam = jnp.einsum("bij,jk->bik", inv_K[:, :3, :3], pix)
    cam = depth.reshape(B, 1, -1) * cam
    ones = jnp.ones((B, 1, H * W), jnp.float32)
    return jnp.concatenate([cam, ones], axis=1)


def project_3d(points, K, T, H, W, eps=1e-7):
    B = points.shape[0]
    P = jnp.matmul(K, T)[:, :3, :]
    cam = jnp.matmul(P, points)
    pix = cam[:, :2, :] / (cam[:, 2:3, :] + eps)
    pix = pix.reshape(B, 2, H, W).transpose(0, 2, 3, 1)
    px = pix[..., 0] / (W - 1)
    py = pix[..., 1] / (H - 1)
    return (jnp.stack([px, py], axis=-1) - 0.5) * 2.0


def grid_sample_border(img, grid):
    # F.grid_sample(..., mode='bilinear', padding_mode='border', align_corners=True)
    B, C, H, W = img.shape
    x = (grid[..., 0] + 1.0) * 0.5 * (W - 1)
    y = (grid[..., 1] + 1.0) * 0.5 * (H - 1)
    x0 = jnp.floor(x); y0 = jnp.floor(y)
    wx = x - x0;       wy = y - y0
    x0c = jnp.clip(x0, 0, W - 1).astype(jnp.int32)
    x1c = jnp.clip(x0 + 1, 0, W - 1).astype(jnp.int32)
    y0c = jnp.clip(y0, 0, H - 1).astype(jnp.int32)
    y1c = jnp.clip(y0 + 1, 0, H - 1).astype(jnp.int32)

    def gather(yy, xx):
        return jax.vmap(lambda im, yi, xi: im[:, yi, xi])(img, yy, xx)  # (B,C,H,W)

    v00 = gather(y0c, x0c); v01 = gather(y0c, x1c)
    v10 = gather(y1c, x0c); v11 = gather(y1c, x1c)
    wx = wx[:, None]; wy = wy[:, None]
    return (v00 * (1 - wx) * (1 - wy) + v01 * wx * (1 - wy)
            + v10 * (1 - wx) * wy + v11 * wx * wy)


# ----------------------------------------------------------------------------
# Criterion wrapper mirroring StereoCriterion.forward
# ----------------------------------------------------------------------------
class StereoCriterionPallas:
    # TODO(synk): fp_loss / guided_loss / supervised_loss (optional) and
    #             get_fp_weight (undefined helper with max_pool masking) are
    #             not part of the configured `losses` list and are omitted.
    def __init__(self, height, width, img_scales=(0,),
                 smoothness_weight=SMOOTHNESS_WEIGHT, num_dcr=2, embed_dim=128):
        self.height = height
        self.width = width
        self.img_scales = list(img_scales)
        self.smoothness_weight = smoothness_weight
        self.num_dcr = num_dcr
        self.embed_dim = embed_dim
        self.losses = ["reprojection_loss", "orthog_reg", "hoyer_reg"]

    def generate_image_prediction(self, inputs, outputs):
        for scale in self.img_scales:
            depth = outputs[("depth", scale)][:, None]            # (B,1,h,w)
            T = inputs["stereo_T"]
            h = self.height // 2 ** scale
            w = self.width // 2 ** scale
            cam_points = backproject_depth(depth, inputs[("inv_K", scale)])
            sample = project_3d(cam_points, inputs[("K", scale)], T, h, w)
            outputs[("sample", "r", scale)] = sample
            outputs[("color", "r", scale)] = grid_sample_border(
                inputs[("color", "r", scale)], sample)
            outputs[("color_identity", "r", scale)] = inputs[("color", "r", scale)]

    def forward(self, inputs, outputs, model=None):
        self.generate_image_prediction(inputs, outputs)
        losses = {}
        # loss_reprojection (the PyTorch loop returns on the first scale)
        scale = self.img_scales[0]
        depth_scale = outputs[("depth", scale)][:, None]
        tgt_scale = inputs[("color", "l", scale)]
        pred_scale = outputs[("color", "r", scale)]
        reproj_mean, smooth = reprojection_and_smooth(pred_scale, tgt_scale, depth_scale)
        rl = reproj_mean / 2 ** scale + self.smoothness_weight * smooth / 2 ** scale
        losses["reprojection_loss"] = rl
        if model is not None:
            orthog, hoyer = dcr_regularizations(model["U"], model["S1"], model["S2"])
            losses["orthog_reg"] = orthog
            losses["hoyer_reg"] = hoyer
        return losses


# ----------------------------------------------------------------------------
if __name__ == "__main__":
    key = jax.random.PRNGKey(0)
    B, C, H, W = 2, 3, 16, 16
    D, NUM_DCR = 128, 2
    keys = jax.random.split(key, 6)

    color_l = jax.random.uniform(keys[0], (B, C, H, W), jnp.float32)
    color_r = jax.random.uniform(keys[1], (B, C, H, W), jnp.float32)
    depth = jax.random.uniform(keys[2], (B, H, W), jnp.float32, minval=1.0, maxval=10.0)

    K = jnp.array([[0.58 * W, 0.0, 0.5 * W, 0.0],
                   [0.0, 1.92 * H, 0.5 * H, 0.0],
                   [0.0, 0.0, 1.0, 0.0],
                   [0.0, 0.0, 0.0, 1.0]], jnp.float32)
    Kb = jnp.broadcast_to(K, (B, 4, 4))
    inv_Kb = jnp.broadcast_to(jnp.linalg.inv(K), (B, 4, 4))
    T = jnp.eye(4, dtype=jnp.float32).at[0, 3].set(0.1)
    Tb = jnp.broadcast_to(T, (B, 4, 4))

    inputs = {("color", "l", 0): color_l, ("color", "r", 0): color_r,
              ("K", 0): Kb, ("inv_K", 0): inv_Kb, "stereo_T": Tb}
    outputs = {("depth", 0): depth}

    # Deterministic synthetic "model.DCR" spectral parameters
    U = jax.random.normal(keys[3], (NUM_DCR, D, D), jnp.float32) / jnp.sqrt(D)
    S1 = jax.random.normal(keys[4], (NUM_DCR, 1, D), jnp.float32)
    S2 = jax.random.normal(keys[5], (NUM_DCR, 1, D), jnp.float32)
    model = {"U": U, "S1": S1, "S2": S2}

    criterion = StereoCriterionPallas(height=H, width=W, num_dcr=NUM_DCR, embed_dim=D)
    losses = criterion.forward(inputs, outputs, model=model)
    for v in losses.values():
        jax.block_until_ready(v)
    print("KERNEL_OK")
</pallas_src>

<mosaic_0001>
module attributes {stable_mosaic.version = 11 : i64} {
  func.func @reproj_smooth_kernel(%arg0: i32, %arg1: memref<1x3x16x16xf32, #tpu.memory_space<vmem>>, %arg2: memref<1x3x16x16xf32, #tpu.memory_space<vmem>>, %arg3: memref<1x1x16x16xf32, #tpu.memory_space<vmem>>, %arg4: memref<2xf32, #tpu.memory_space<smem>>) attributes {dimension_semantics = [#tpu.dimension_semantics<arbitrary>], iteration_bounds = array<i64: 2>, scalar_prefetch = 0 : i64, scratch_operands = 0 : i64, tpu.core_type = #tpu.core_type<tc>, window_params = [{transform_indices = @transform_0, window_bounds = array<i64: 1, 3, 16, 16>}, {transform_indices = @transform_1, window_bounds = array<i64: 1, 3, 16, 16>}, {transform_indices = @transform_2, window_bounds = array<i64: 1, 1, 16, 16>}, {transform_indices = @transform_3, window_bounds = array<i64: 2>}]} {
    %0 = tpu.iota {dimensions = array<i32: 0>} : vector<16x16xi32>
    %1 = tpu.iota {dimensions = array<i32: 1>} : vector<16x16xi32>
    %cst = arith.constant 0.000000e+00 : f32
    %2 = vector.broadcast %cst : f32 to vector<16x16xf32>
    %cst_0 = arith.constant 0.000000e+00 : f32
    %3 = vector.broadcast %cst_0 : f32 to vector<16x16xf32>
    %cst_1 = arith.constant 0.000000e+00 : f32
    %4 = vector.broadcast %cst_1 : f32 to vector<16x16xf32>
    %cst_2 = arith.constant 0.000000e+00 : f32
    %5 = vector.broadcast %cst_2 : f32 to vector<16x16xf32>
    %c0 = arith.constant 0 : index
    %c0_3 = arith.constant 0 : index
    %c0_4 = arith.constant 0 : index
    %c0_5 = arith.constant 0 : index
    %6 = vector.load %arg1[%c0, %c0_3, %c0_4, %c0_5] : memref<1x3x16x16xf32, #tpu.memory_space<vmem>>, vector<1x1x16x16xf32>
    %7 = vector.shape_cast %6 : vector<1x1x16x16xf32> to vector<16x16xf32>
    %c0_6 = arith.constant 0 : index
    %c0_7 = arith.constant 0 : index
    %c0_8 = arith.constant 0 : index
    %c0_9 = arith.constant 0 : index
    %8 = vector.load %arg2[%c0_6, %c0_7, %c0_8, %c0_9] : memref<1x3x16x16xf32, #tpu.memory_space<vmem>>, vector<1x1x16x16xf32>
    %9 = vector.shape_cast %8 : vector<1x1x16x16xf32> to vector<16x16xf32>
    %10 = arith.subf %9, %7 : vector<16x16xf32>
    %11 = math.absf %10 : vector<16x16xf32>
    %12 = vector.shape_cast %11 : vector<16x16xf32> to vector<1x16x16xf32>
    %cst_10 = arith.constant dense<0.000000e+00> : vector<1xf32>
    %13 = vector.multi_reduction <add>, %12, %cst_10 [1, 2] : vector<1x16x16xf32> to vector<1xf32>
    %14 = vector.shape_cast %13 : vector<1xf32> to vector<1x1x1xf32>
    %15 = vector.extract %14[0, 0, 0] : f32 from vector<1x1x1xf32>
    %cst_11 = arith.constant 0.000000e+00 : f32
    %16 = arith.addf %cst_11, %15 : f32
    %c1_i32 = arith.constant 1 : i32
    %17 = tpu.dynamic_rotate %7 by %c1_i32 dim 1 : vector<16x16xf32>, i32 -> vector<16x16xf32>
    %c15_i32 = arith.constant 15 : i32
    %18 = tpu.dynamic_rotate %7 by %c15_i32 dim 1 : vector<16x16xf32>, i32 -> vector<16x16xf32>
    %c0_i32 = arith.constant 0 : i32
    %19 = vector.broadcast %c0_i32 : i32 to vector<16x16xi32>
    %20 = arith.cmpi eq, %1, %19 : vector<16x16xi32>
    %21 = arith.select %20, %18, %17 : vector<16x16xi1>, vector<16x16xf32>
    %c15_i32_12 = arith.constant 15 : i32
    %22 = vector.broadcast %c15_i32_12 : i32 to vector<16x16xi32>
    %23 = arith.cmpi eq, %1, %22 : vector<16x16xi32>
    %24 = arith.select %23, %17, %18 : vector<16x16xi1>, vector<16x16xf32>
    %25 = arith.addf %21, %7 : vector<16x16xf32>
    %26 = arith.addf %25, %24 : vector<16x16xf32>
    %c1_i32_13 = arith.constant 1 : i32
    %27 = tpu.dynamic_rotate %26 by %c1_i32_13 dim 0 : vector<16x16xf32>, i32 -> vector<16x16xf32>
    %c15_i32_14 = arith.constant 15 : i32
    %28 = tpu.dynamic_rotate %26 by %c15_i32_14 dim 0 : vector<16x16xf32>, i32 -> vector<16x16xf32>
    %c0_i32_15 = arith.constant 0 : i32
    %29 = vector.broadcast %c0_i32_15 : i32 to vector<16x16xi32>
    %30 = arith.cmpi eq, %0, %29 : vector<16x16xi32>
    %31 = arith.select %30, %28, %27 : vector<16x16xi1>, vector<16x16xf32>
    %c15_i32_16 = arith.constant 15 : i32
    %32 = vector.broadcast %c15_i32_16 : i32 to vector<16x16xi32>
    %33 = arith.cmpi eq, %0, %32 : vector<16x16xi32>
    %34 = arith.select %33, %27, %28 : vector<16x16xi1>, vector<16x16xf32>
    %35 = arith.addf %31, %26 : vector<16x16xf32>
    %36 = arith.addf %35, %34 : vector<16x16xf32>
    %cst_17 = arith.constant 0.111111112 : f32
    %37 = vector.broadcast %cst_17 : f32 to vector<16x16xf32>
    %38 = arith.mulf %36, %37 : vector<16x16xf32>
    %c1_i32_18 = arith.constant 1 : i32
    %39 = tpu.dynamic_rotate %9 by %c1_i32_18 dim 1 : vector<16x16xf32>, i32 -> vector<16x16xf32>
    %c15_i32_19 = arith.constant 15 : i32
    %40 = tpu.dynamic_rotate %9 by %c15_i32_19 dim 1 : vector<16x16xf32>, i32 -> vector<16x16xf32>
    %c0_i32_20 = arith.constant 0 : i32
    %41 = vector.broadcast %c0_i32_20 : i32 to vector<16x16xi32>
    %42 = arith.cmpi eq, %1, %41 : vector<16x16xi32>
    %43 = arith.select %42, %40, %39 : vector<16x16xi1>, vector<16x16xf32>
    %c15_i32_21 = arith.constant 15 : i32
    %44 = vector.broadcast %c15_i32_21 : i32 to vector<16x16xi32>
    %45 = arith.cmpi eq, %1, %44 : vector<16x16xi32>
    %46 = arith.select %45, %39, %40 : vector<16x16xi1>, vector<16x16xf32>
    %47 = arith.addf %43, %9 : vector<16x16xf32>
    %48 = arith.addf %47, %46 : vector<16x16xf32>
    %c1_i32_22 = arith.constant 1 : i32
    %49 = tpu.dynamic_rotate %48 by %c1_i32_22 dim 0 : vector<16x16xf32>, i32 -> vector<16x16xf32>
    %c15_i32_23 = arith.constant 15 : i32
    %50 = tpu.dynamic_rotate %48 by %c15_i32_23 dim 0 : vector<16x16xf32>, i32 -> vector<16x16xf32>
    %c0_i32_24 = arith.constant 0 : i32
    %51 = vector.broadcast %c0_i32_24 : i32 to vector<16x16xi32>
    %52 = arith.cmpi eq, %0, %51 : vector<16x16xi32>
    %53 = arith.select %52, %50, %49 : vector<16x16xi1>, vector<16x16xf32>
    %c15_i32_25 = arith.constant 15 : i32
    %54 = vector.broadcast %c15_i32_25 : i32 to vector<16x16xi32>
    %55 = arith.cmpi eq, %0, %54 : vector<16x16xi32>
    %56 = arith.select %55, %49, %50 : vector<16x16xi1>, vector<16x16xf32>
    %57 = arith.addf %53, %48 : vector<16x16xf32>
    %58 = arith.addf %57, %56 : vector<16x16xf32>
    %cst_26 = arith.constant 0.111111112 : f32
    %59 = vector.broadcast %cst_26 : f32 to vector<16x16xf32>
    %60 = arith.mulf %58, %59 : vector<16x16xf32>
    %61 = arith.mulf %7, %7 : vector<16x16xf32>
    %c1_i32_27 = arith.constant 1 : i32
    %62 = tpu.dynamic_rotate %61 by %c1_i32_27 dim 1 : vector<16x16xf32>, i32 -> vector<16x16xf32>
    %c15_i32_28 = arith.constant 15 : i32
    %63 = tpu.dynamic_rotate %61 by %c15_i32_28 dim 1 : vector<16x16xf32>, i32 -> vector<16x16xf32>
    %c0_i32_29 = arith.constant 0 : i32
    %64 = vector.broadcast %c0_i32_29 : i32 to vector<16x16xi32>
    %65 = arith.cmpi eq, %1, %64 : vector<16x16xi32>
    %66 = arith.select %65, %63, %62 : vector<16x16xi1>, vector<16x16xf32>
    %c15_i32_30 = arith.constant 15 : i32
    %67 = vector.broadcast %c15_i32_30 : i32 to vector<16x16xi32>
    %68 = arith.cmpi eq, %1, %67 : vector<16x16xi32>
    %69 = arith.select %68, %62, %63 : vector<16x16xi1>, vector<16x16xf32>
    %70 = arith.addf %66, %61 : vector<16x16xf32>
    %71 = arith.addf %70, %69 : vector<16x16xf32>
    %c1_i32_31 = arith.constant 1 : i32
    %72 = tpu.dynamic_rotate %71 by %c1_i32_31 dim 0 : vector<16x16xf32>, i32 -> vector<16x16xf32>
    %c15_i32_32 = arith.constant 15 : i32
    %73 = tpu.dynamic_rotate %71 by %c15_i32_32 dim 0 : vector<16x16xf32>, i32 -> vector<16x16xf32>
    %c0_i32_33 = arith.constant 0 : i32
    %74 = vector.broadcast %c0_i32_33 : i32 to vector<16x16xi32>
    %75 = arith.cmpi eq, %0, %74 : vector<16x16xi32>
    %76 = arith.select %75, %73, %72 : vector<16x16xi1>, vector<16x16xf32>
    %c15_i32_34 = arith.constant 15 : i32
    %77 = vector.broadcast %c15_i32_34 : i32 to vector<16x16xi32>
    %78 = arith.cmpi eq, %0, %77 : vector<16x16xi32>
    %79 = arith.select %78, %72, %73 : vector<16x16xi1>, vector<16x16xf32>
    %80 = arith.addf %76, %71 : vector<16x16xf32>
    %81 = arith.addf %80, %79 : vector<16x16xf32>
    %cst_35 = arith.constant 0.111111112 : f32
    %82 = vector.broadcast %cst_35 : f32 to vector<16x16xf32>
    %83 = arith.mulf %81, %82 : vector<16x16xf32>
    %84 = arith.mulf %38, %38 : vector<16x16xf32>
    %85 = arith.subf %83, %84 : vector<16x16xf32>
    %86 = arith.mulf %9, %9 : vector<16x16xf32>
    %c1_i32_36 = arith.constant 1 : i32
    %87 = tpu.dynamic_rotate %86 by %c1_i32_36 dim 1 : vector<16x16xf32>, i32 -> vector<16x16xf32>
    %c15_i32_37 = arith.constant 15 : i32
    %88 = tpu.dynamic_rotate %86 by %c15_i32_37 dim 1 : vector<16x16xf32>, i32 -> vector<16x16xf32>
    %c0_i32_38 = arith.constant 0 : i32
    %89 = vector.broadcast %c0_i32_38 : i32 to vector<16x16xi32>
    %90 = arith.cmpi eq, %1, %89 : vector<16x16xi32>
    %91 = arith.select %90, %88, %87 : vector<16x16xi1>, vector<16x16xf32>
    %c15_i32_39 = arith.constant 15 : i32
    %92 = vector.broadcast %c15_i32_39 : i32 to vector<16x16xi32>
    %93 = arith.cmpi eq, %1, %92 : vector<16x16xi32>
    %94 = arith.select %93, %87, %88 : vector<16x16xi1>, vector<16x16xf32>
    %95 = arith.addf %91, %86 : vector<16x16xf32>
    %96 = arith.addf %95, %94 : vector<16x16xf32>
    %c1_i32_40 = arith.constant 1 : i32
    %97 = tpu.dynamic_rotate %96 by %c1_i32_40 dim 0 : vector<16x16xf32>, i32 -> vector<16x16xf32>
    %c15_i32_41 = arith.constant 15 : i32
    %98 = tpu.dynamic_rotate %96 by %c15_i32_41 dim 0 : vector<16x16xf32>, i32 -> vector<16x16xf32>
    %c0_i32_42 = arith.constant 0 : i32
    %99 = vector.broadcast %c0_i32_42 : i32 to vector<16x16xi32>
    %100 = arith.cmpi eq, %0, %99 : vector<16x16xi32>
    %101 = arith.select %100, %98, %97 : vector<16x16xi1>, vector<16x16xf32>
    %c15_i32_43 = arith.constant 15 : i32
    %102 = vector.broadcast %c15_i32_43 : i32 to vector<16x16xi32>
    %103 = arith.cmpi eq, %0, %102 : vector<16x16xi32>
    %104 = arith.select %103, %97, %98 : vector<16x16xi1>, vector<16x16xf32>
    %105 = arith.addf %101, %96 : vector<16x16xf32>
    %106 = arith.addf %105, %104 : vector<16x16xf32>
    %cst_44 = arith.constant 0.111111112 : f32
    %107 = vector.broadcast %cst_44 : f32 to vector<16x16xf32>
    %108 = arith.mulf %106, %107 : vector<16x16xf32>
    %109 = arith.mulf %60, %60 : vector<16x16xf32>
    %110 = arith.subf %108, %109 : vector<16x16xf32>
    %111 = arith.mulf %7, %9 : vector<16x16xf32>
    %c1_i32_45 = arith.constant 1 : i32
    %112 = tpu.dynamic_rotate %111 by %c1_i32_45 dim 1 : vector<16x16xf32>, i32 -> vector<16x16xf32>
    %c15_i32_46 = arith.constant 15 : i32
    %113 = tpu.dynamic_rotate %111 by %c15_i32_46 dim 1 : vector<16x16xf32>, i32 -> vector<16x16xf32>
    %c0_i32_47 = arith.constant 0 : i32
    %114 = vector.broadcast %c0_i32_47 : i32 to vector<16x16xi32>
    %115 = arith.cmpi eq, %1, %114 : vector<16x16xi32>
    %116 = arith.select %115, %113, %112 : vector<16x16xi1>, vector<16x16xf32>
    %c15_i32_48 = arith.constant 15 : i32
    %117 = vector.broadcast %c15_i32_48 : i32 to vector<16x16xi32>
    %118 = arith.cmpi eq, %1, %117 : vector<16x16xi32>
    %119 = arith.select %118, %112, %113 : vector<16x16xi1>, vector<16x16xf32>
    %120 = arith.addf %116, %111 : vector<16x16xf32>
    %121 = arith.addf %120, %119 : vector<16x16xf32>
    %c1_i32_49 = arith.constant 1 : i32
    %122 = tpu.dynamic_rotate %121 by %c1_i32_49 dim 0 : vector<16x16xf32>, i32 -> vector<16x16xf32>
    %c15_i32_50 = arith.constant 15 : i32
    %123 = tpu.dynamic_rotate %121 by %c15_i32_50 dim 0 : vector<16x16xf32>, i32 -> vector<16x16xf32>
    %c0_i32_51 = arith.constant 0 : i32
    %124 = vector.broadcast %c0_i32_51 : i32 to vector<16x16xi32>
    %125 = arith.cmpi eq, %0, %124 : vector<16x16xi32>
    %126 = arith.select %125, %123, %122 : vector<16x16xi1>, vector<16x16xf32>
    %c15_i32_52 = arith.constant 15 : i32
    %127 = vector.broadcast %c15_i32_52 : i32 to vector<16x16xi32>
    %128 = arith.cmpi eq, %0, %127 : vector<16x16xi32>
    %129 = arith.select %128, %122, %123 : vector<16x16xi1>, vector<16x16xf32>
    %130 = arith.addf %126, %121 : vector<16x16xf32>
    %131 = arith.addf %130, %129 : vector<16x16xf32>
    %cst_53 = arith.constant 0.111111112 : f32
    %132 = vector.broadcast %cst_53 : f32 to vector<16x16xf32>
    %133 = arith.mulf %131, %132 : vector<16x16xf32>
    %134 = arith.mulf %38, %60 : vector<16x16xf32>
    %135 = arith.subf %133, %134 : vector<16x16xf32>
    %cst_54 = arith.constant 2.000000e+00 : f32
    %136 = vector.broadcast %cst_54 : f32 to vector<16x16xf32>
    %137 = arith.mulf %136, %38 : vector<16x16xf32>
    %138 = arith.mulf %137, %60 : vector<16x16xf32>
    %cst_55 = arith.constant 9.99999974E-5 : f32
    %139 = vector.broadcast %cst_55 : f32 to vector<16x16xf32>
    %140 = arith.addf %138, %139 : vector<16x16xf32>
    %cst_56 = arith.constant 2.000000e+00 : f32
    %141 = vector.broadcast %cst_56 : f32 to vector<16x16xf32>
    %142 = arith.mulf %141, %135 : vector<16x16xf32>
    %cst_57 = arith.constant 8.99999984E-4 : f32
    %143 = vector.broadcast %cst_57 : f32 to vector<16x16xf32>
    %144 = arith.addf %142, %143 : vector<16x16xf32>
    %145 = arith.mulf %140, %144 : vector<16x16xf32>
    %146 = arith.mulf %38, %38 : vector<16x16xf32>
    %147 = arith.mulf %60, %60 : vector<16x16xf32>
    %148 = arith.addf %146, %147 : vector<16x16xf32>
    %cst_58 = arith.constant 9.99999974E-5 : f32
    %149 = vector.broadcast %cst_58 : f32 to vector<16x16xf32>
    %150 = arith.addf %148, %149 : vector<16x16xf32>
    %151 = arith.addf %85, %110 : vector<16x16xf32>
    %cst_59 = arith.constant 8.99999984E-4 : f32
    %152 = vector.broadcast %cst_59 : f32 to vector<16x16xf32>
    %153 = arith.addf %151, %152 : vector<16x16xf32>
    %154 = arith.mulf %150, %153 : vector<16x16xf32>
    %155 = arith.divf %145, %154 : vector<16x16xf32>
    %cst_60 = arith.constant 1.000000e+00 : f32
    %156 = vector.broadcast %cst_60 : f32 to vector<16x16xf32>
    %157 = arith.subf %156, %155 : vector<16x16xf32>
    %cst_61 = arith.constant 5.000000e-01 : f32
    %158 = vector.broadcast %cst_61 : f32 to vector<16x16xf32>
    %159 = arith.mulf %157, %158 : vector<16x16xf32>
    %cst_62 = arith.constant 0.000000e+00 : f32
    %cst_63 = arith.constant 1.000000e+00 : f32
    %160 = vector.broadcast %cst_62 : f32 to vector<16x16xf32>
    %161 = arith.maximumf %160, %159 : vector<16x16xf32>
    %162 = vector.broadcast %cst_63 : f32 to vector<16x16xf32>
    %163 = arith.minimumf %162, %161 : vector<16x16xf32>
    %164 = vector.shape_cast %163 : vector<16x16xf32> to vector<1x16x16xf32>
    %cst_64 = arith.constant dense<0.000000e+00> : vector<1xf32>
    %165 = vector.multi_reduction <add>, %164, %cst_64 [1, 2] : vector<1x16x16xf32> to vector<1xf32>
    %166 = vector.shape_cast %165 : vector<1xf32> to vector<1x1x1xf32>
    %167 = vector.extract %166[0, 0, 0] : f32 from vector<1x1x1xf32>
    %cst_65 = arith.constant 0.000000e+00 : f32
    %168 = arith.addf %cst_65, %167 : f32
    %c15_i32_66 = arith.constant 15 : i32
    %169 = tpu.dynamic_rotate %7 by %c15_i32_66 dim 1 : vector<16x16xf32>, i32 -> vector<16x16xf32>
    %170 = arith.subf %7, %169 : vector<16x16xf32>
    %171 = math.absf %170 : vector<16x16xf32>
    %172 = arith.addf %2, %171 : vector<16x16xf32>
    %c15_i32_67 = arith.constant 15 : i32
    %173 = tpu.dynamic_rotate %7 by %c15_i32_67 dim 0 : vector<16x16xf32>, i32 -> vector<16x16xf32>
    %174 = arith.subf %7, %173 : vector<16x16xf32>
    %175 = math.absf %174 : vector<16x16xf32>
    %176 = arith.addf %3, %175 : vector<16x16xf32>
    %c15_i32_68 = arith.constant 15 : i32
    %177 = tpu.dynamic_rotate %9 by %c15_i32_68 dim 1 : vector<16x16xf32>, i32 -> vector<16x16xf32>
    %178 = arith.subf %9, %177 : vector<16x16xf32>
    %179 = math.absf %178 : vector<16x16xf32>
    %180 = arith.addf %4, %179 : vector<16x16xf32>
    %c15_i32_69 = arith.constant 15 : i32
    %181 = tpu.dynamic_rotate %9 by %c15_i32_69 dim 0 : vector<16x16xf32>, i32 -> vector<16x16xf32>
    %182 = arith.subf %9, %181 : vector<16x16xf32>
    %183 = math.absf %182 : vector<16x16xf32>
    %184 = arith.addf %5, %183 : vector<16x16xf32>
    %c0_70 = arith.constant 0 : index
    %c1 = arith.constant 1 : index
    %c0_71 = arith.constant 0 : index
    %c0_72 = arith.constant 0 : index
    %185 = vector.load %arg1[%c0_70, %c1, %c0_71, %c0_72] : memref<1x3x16x16xf32, #tpu.memory_space<vmem>>, vector<1x1x16x16xf32>
    %186 = vector.shape_cast %185 : vector<1x1x16x16xf32> to vector<16x16xf32>
    %c0_73 = arith.constant 0 : index
    %c1_74 = arith.constant 1 : index
    %c0_75 = arith.constant 0 : index
    %c0_76 = arith.constant 0 : index
    %187 = vector.load %arg2[%c0_73, %c1_74, %c0_75, %c0_76] : memref<1x3x16x16xf32, #tpu.memory_space<vmem>>, vector<1x1x16x16xf32>
    %188 = vector.shape_cast %187 : vector<1x1x16x16xf32> to vector<16x16xf32>
    %189 = arith.subf %188, %186 : vector<16x16xf32>
    %190 = math.absf %189 : vector<16x16xf32>
    %191 = vector.shape_cast %190 : vector<16x16xf32> to vector<1x16x16xf32>
    %cst_77 = arith.constant dense<0.000000e+00> : vector<1xf32>
    %192 = vector.multi_reduction <add>, %191, %cst_77 [1, 2] : vector<1x16x16xf32> to vector<1xf32>
    %193 = vector.shape_cast %192 : vector<1xf32> to vector<1x1x1xf32>
    %194 = vector.extract %193[0, 0, 0] : f32 from vector<1x1x1xf32>
    %195 = arith.addf %16, %194 : f32
    %c1_i32_78 = arith.constant 1 : i32
    %196 = tpu.dynamic_rotate %186 by %c1_i32_78 dim 1 : vector<16x16xf32>, i32 -> vector<16x16xf32>
    %c15_i32_79 = arith.constant 15 : i32
    %197 = tpu.dynamic_rotate %186 by %c15_i32_79 dim 1 : vector<16x16xf32>, i32 -> vector<16x16xf32>
    %c0_i32_80 = arith.constant 0 : i32
    %198 = vector.broadcast %c0_i32_80 : i32 to vector<16x16xi32>
    %199 = arith.cmpi eq, %1, %198 : vector<16x16xi32>
    %200 = arith.select %199, %197, %196 : vector<16x16xi1>, vector<16x16xf32>
    %c15_i32_81 = arith.constant 15 : i32
    %201 = vector.broadcast %c15_i32_81 : i32 to vector<16x16xi32>
    %202 = arith.cmpi eq, %1, %201 : vector<16x16xi32>
    %203 = arith.select %202, %196, %197 : vector<16x16xi1>, vector<16x16xf32>
    %204 = arith.addf %200, %186 : vector<16x16xf32>
    %205 = arith.addf %204, %203 : vector<16x16xf32>
    %c1_i32_82 = arith.constant 1 : i32
    %206 = tpu.dynamic_rotate %205 by %c1_i32_82 dim 0 : vector<16x16xf32>, i32 -> vector<16x16xf32>
    %c15_i32_83 = arith.constant 15 : i32
    %207 = tpu.dynamic_rotate %205 by %c15_i32_83 dim 0 : vector<16x16xf32>, i32 -> vector<16x16xf32>
    %c0_i32_84 = arith.constant 0 : i32
    %208 = vector.broadcast %c0_i32_84 : i32 to vector<16x16xi32>
    %209 = arith.cmpi eq, %0, %208 : vector<16x16xi32>
    %210 = arith.select %209, %207, %206 : vector<16x16xi1>, vector<16x16xf32>
    %c15_i32_85 = arith.constant 15 : i32
    %211 = vector.broadcast %c15_i32_85 : i32 to vector<16x16xi32>
    %212 = arith.cmpi eq, %0, %211 : vector<16x16xi32>
    %213 = arith.select %212, %206, %207 : vector<16x16xi1>, vector<16x16xf32>
    %214 = arith.addf %210, %205 : vector<16x16xf32>
    %215 = arith.addf %214, %213 : vector<16x16xf32>
    %cst_86 = arith.constant 0.111111112 : f32
    %216 = vector.broadcast %cst_86 : f32 to vector<16x16xf32>
    %217 = arith.mulf %215, %216 : vector<16x16xf32>
    %c1_i32_87 = arith.constant 1 : i32
    %218 = tpu.dynamic_rotate %188 by %c1_i32_87 dim 1 : vector<16x16xf32>, i32 -> vector<16x16xf32>
    %c15_i32_88 = arith.constant 15 : i32
    %219 = tpu.dynamic_rotate %188 by %c15_i32_88 dim 1 : vector<16x16xf32>, i32 -> vector<16x16xf32>
    %c0_i32_89 = arith.constant 0 : i32
    %220 = vector.broadcast %c0_i32_89 : i32 to vector<16x16xi32>
    %221 = arith.cmpi eq, %1, %220 : vector<16x16xi32>
    %222 = arith.select %221, %219, %218 : vector<16x16xi1>, vector<16x16xf32>
    %c15_i32_90 = arith.constant 15 : i32
    %223 = vector.broadcast %c15_i32_90 : i32 to vector<16x16xi32>
    %224 = arith.cmpi eq, %1, %223 : vector<16x16xi32>
    %225 = arith.select %224, %218, %219 : vector<16x16xi1>, vector<16x16xf32>
    %226 = arith.addf %222, %188 : vector<16x16xf32>
    %227 = arith.addf %226, %225 : vector<16x16xf32>
    %c1_i32_91 = arith.constant 1 : i32
    %228 = tpu.dynamic_rotate %227 by %c1_i32_91 dim 0 : vector<16x16xf32>, i32 -> vector<16x16xf32>
    %c15_i32_92 = arith.constant 15 : i32
    %229 = tpu.dynamic_rotate %227 by %c15_i32_92 dim 0 : vector<16x16xf32>, i32 -> vector<16x16xf32>
    %c0_i32_93 = arith.constant 0 : i32
    %230 = vector.broadcast %c0_i32_93 : i32 to vector<16x16xi32>
    %231 = arith.cmpi eq, %0, %230 : vector<16x16xi32>
    %232 = arith.select %231, %229, %228 : vector<16x16xi1>, vector<16x16xf32>
    %c15_i32_94 = arith.constant 15 : i32
    %233 = vector.broadcast %c15_i32_94 : i32 to vector<16x16xi32>
    %234 = arith.cmpi eq, %0, %233 : vector<16x16xi32>
    %235 = arith.select %234, %228, %229 : vector<16x16xi1>, vector<16x16xf32>
    %236 = arith.addf %232, %227 : vector<16x16xf32>
    %237 = arith.addf %236, %235 : vector<16x16xf32>
    %cst_95 = arith.constant 0.111111112 : f32
    %238 = vector.broadcast %cst_95 : f32 to vector<16x16xf32>
    %239 = arith.mulf %237, %238 : vector<16x16xf32>
    %240 = arith.mulf %186, %186 : vector<16x16xf32>
    %c1_i32_96 = arith.constant 1 : i32
    %241 = tpu.dynamic_rotate %240 by %c1_i32_96 dim 1 : vector<16x16xf32>, i32 -> vector<16x16xf32>
    %c15_i32_97 = arith.constant 15 : i32
    %242 = tpu.dynamic_rotate %240 by %c15_i32_97 dim 1 : vector<16x16xf32>, i32 -> vector<16x16xf32>
    %c0_i32_98 = arith.constant 0 : i32
    %243 = vector.broadcast %c0_i32_98 : i32 to vector<16x16xi32>
    %244 = arith.cmpi eq, %1, %243 : vector<16x16xi32>
    %245 = arith.select %244, %242, %241 : vector<16x16xi1>, vector<16x16xf32>
    %c15_i32_99 = arith.constant 15 : i32
    %246 = vector.broadcast %c15_i32_99 : i32 to vector<16x16xi32>
    %247 = arith.cmpi eq, %1, %246 : vector<16x16xi32>
    %248 = arith.select %247, %241, %242 : vector<16x16xi1>, vector<16x16xf32>
    %249 = arith.addf %245, %240 : vector<16x16xf32>
    %250 = arith.addf %249, %248 : vector<16x16xf32>
    %c1_i32_100 = arith.constant 1 : i32
    %251 = tpu.dynamic_rotate %250 by %c1_i32_100 dim 0 : vector<16x16xf32>, i32 -> vector<16x16xf32>
    %c15_i32_101 = arith.constant 15 : i32
    %252 = tpu.dynamic_rotate %250 by %c15_i32_101 dim 0 : vector<16x16xf32>, i32 -> vector<16x16xf32>
    %c0_i32_102 = arith.constant 0 : i32
    %253 = vector.broadcast %c0_i32_102 : i32 to vector<16x16xi32>
    %254 = arith.cmpi eq, %0, %253 : vector<16x16xi32>
    %255 = arith.select %254, %252, %251 : vector<16x16xi1>, vector<16x16xf32>
    %c15_i32_103 = arith.constant 15 : i32
    %256 = vector.broadcast %c15_i32_103 : i32 to vector<16x16xi32>
    %257 = arith.cmpi eq, %0, %256 : vector<16x16xi32>
    %258 = arith.select %257, %251, %252 : vector<16x16xi1>, vector<16x16xf32>
    %259 = arith.addf %255, %250 : vector<16x16xf32>
    %260 = arith.addf %259, %258 : vector<16x16xf32>
    %cst_104 = arith.constant 0.111111112 : f32
    %261 = vector.broadcast %cst_104 : f32 to vector<16x16xf32>
    %262 = arith.mulf %260, %261 : vector<16x16xf32>
    %263 = arith.mulf %217, %217 : vector<16x16xf32>
    %264 = arith.subf %262, %263 : vector<16x16xf32>
    %265 = arith.mulf %188, %188 : vector<16x16xf32>
    %c1_i32_105 = arith.constant 1 : i32
    %266 = tpu.dynamic_rotate %265 by %c1_i32_105 dim 1 : vector<16x16xf32>, i32 -> vector<16x16xf32>
    %c15_i32_106 = arith.constant 15 : i32
    %267 = tpu.dynamic_rotate %265 by %c15_i32_106 dim 1 : vector<16x16xf32>, i32 -> vector<16x16xf32>
    %c0_i32_107 = arith.constant 0 : i32
    %268 = vector.broadcast %c0_i32_107 : i32 to vector<16x16xi32>
    %269 = arith.cmpi eq, %1, %268 : vector<16x16xi32>
    %270 = arith.select %269, %267, %266 : vector<16x16xi1>, vector<16x16xf32>
    %c15_i32_108 = arith.constant 15 : i32
    %271 = vector.broadcast %c15_i32_108 : i32 to vector<16x16xi32>
    %272 = arith.cmpi eq, %1, %271 : vector<16x16xi32>
    %273 = arith.select %272, %266, %267 : vector<16x16xi1>, vector<16x16xf32>
    %274 = arith.addf %270, %265 : vector<16x16xf32>
    %275 = arith.addf %274, %273 : vector<16x16xf32>
    %c1_i32_109 = arith.constant 1 : i32
    %276 = tpu.dynamic_rotate %275 by %c1_i32_109 dim 0 : vector<16x16xf32>, i32 -> vector<16x16xf32>
    %c15_i32_110 = arith.constant 15 : i32
    %277 = tpu.dynamic_rotate %275 by %c15_i32_110 dim 0 : vector<16x16xf32>, i32 -> vector<16x16xf32>
    %c0_i32_111 = arith.constant 0 : i32
    %278 = vector.broadcast %c0_i32_111 : i32 to vector<16x16xi32>
    %279 = arith.cmpi eq, %0, %278 : vector<16x16xi32>
    %280 = arith.select %279, %277, %276 : vector<16x16xi1>, vector<16x16xf32>
    %c15_i32_112 = arith.constant 15 : i32
    %281 = vector.broadcast %c15_i32_112 : i32 to vector<16x16xi32>
    %282 = arith.cmpi eq, %0, %281 : vector<16x16xi32>
    %283 = arith.select %282, %276, %277 : vector<16x16xi1>, vector<16x16xf32>
    %284 = arith.addf %280, %275 : vector<16x16xf32>
    %285 = arith.addf %284, %283 : vector<16x16xf32>
    %cst_113 = arith.constant 0.111111112 : f32
    %286 = vector.broadcast %cst_113 : f32 to vector<16x16xf32>
    %287 = arith.mulf %285, %286 : vector<16x16xf32>
    %288 = arith.mulf %239, %239 : vector<16x16xf32>
    %289 = arith.subf %287, %288 : vector<16x16xf32>
    %290 = arith.mulf %186, %188 : vector<16x16xf32>
    %c1_i32_114 = arith.constant 1 : i32
    %291 = tpu.dynamic_rotate %290 by %c1_i32_114 dim 1 : vector<16x16xf32>, i32 -> vector<16x16xf32>
    %c15_i32_115 = arith.constant 15 : i32
    %292 = tpu.dynamic_rotate %290 by %c15_i32_115 dim 1 : vector<16x16xf32>, i32 -> vector<16x16xf32>
    %c0_i32_116 = arith.constant 0 : i32
    %293 = vector.broadcast %c0_i32_116 : i32 to vector<16x16xi32>
    %294 = arith.cmpi eq, %1, %293 : vector<16x16xi32>
    %295 = arith.select %294, %292, %291 : vector<16x16xi1>, vector<16x16xf32>
    %c15_i32_117 = arith.constant 15 : i32
    %296 = vector.broadcast %c15_i32_117 : i32 to vector<16x16xi32>
    %297 = arith.cmpi eq, %1, %296 : vector<16x16xi32>
    %298 = arith.select %297, %291, %292 : vector<16x16xi1>, vector<16x16xf32>
    %299 = arith.addf %295, %290 : vector<16x16xf32>
    %300 = arith.addf %299, %298 : vector<16x16xf32>
    %c1_i32_118 = arith.constant 1 : i32
    %301 = tpu.dynamic_rotate %300 by %c1_i32_118 dim 0 : vector<16x16xf32>, i32 -> vector<16x16xf32>
    %c15_i32_119 = arith.constant 15 : i32
    %302 = tpu.dynamic_rotate %300 by %c15_i32_119 dim 0 : vector<16x16xf32>, i32 -> vector<16x16xf32>
    %c0_i32_120 = arith.constant 0 : i32
    %303 = vector.broadcast %c0_i32_120 : i32 to vector<16x16xi32>
    %304 = arith.cmpi eq, %0, %303 : vector<16x16xi32>
    %305 = arith.select %304, %302, %301 : vector<16x16xi1>, vector<16x16xf32>
    %c15_i32_121 = arith.constant 15 : i32
    %306 = vector.broadcast %c15_i32_121 : i32 to vector<16x16xi32>
    %307 = arith.cmpi eq, %0, %306 : vector<16x16xi32>
    %308 = arith.select %307, %301, %302 : vector<16x16xi1>, vector<16x16xf32>
    %309 = arith.addf %305, %300 : vector<16x16xf32>
    %310 = arith.addf %309, %308 : vector<16x16xf32>
    %cst_122 = arith.constant 0.111111112 : f32
    %311 = vector.broadcast %cst_122 : f32 to vector<16x16xf32>
    %312 = arith.mulf %310, %311 : vector<16x16xf32>
    %313 = arith.mulf %217, %239 : vector<16x16xf32>
    %314 = arith.subf %312, %313 : vector<16x16xf32>
    %cst_123 = arith.constant 2.000000e+00 : f32
    %315 = vector.broadcast %cst_123 : f32 to vector<16x16xf32>
    %316 = arith.mulf %315, %217 : vector<16x16xf32>
    %317 = arith.mulf %316, %239 : vector<16x16xf32>
    %cst_124 = arith.constant 9.99999974E-5 : f32
    %318 = vector.broadcast %cst_124 : f32 to vector<16x16xf32>
    %319 = arith.addf %317, %318 : vector<16x16xf32>
    %cst_125 = arith.constant 2.000000e+00 : f32
    %320 = vector.broadcast %cst_125 : f32 to vector<16x16xf32>
    %321 = arith.mulf %320, %314 : vector<16x16xf32>
    %cst_126 = arith.constant 8.99999984E-4 : f32
    %322 = vector.broadcast %cst_126 : f32 to vector<16x16xf32>
    %323 = arith.addf %321, %322 : vector<16x16xf32>
    %324 = arith.mulf %319, %323 : vector<16x16xf32>
    %325 = arith.mulf %217, %217 : vector<16x16xf32>
    %326 = arith.mulf %239, %239 : vector<16x16xf32>
    %327 = arith.addf %325, %326 : vector<16x16xf32>
    %cst_127 = arith.constant 9.99999974E-5 : f32
    %328 = vector.broadcast %cst_127 : f32 to vector<16x16xf32>
    %329 = arith.addf %327, %328 : vector<16x16xf32>
    %330 = arith.addf %264, %289 : vector<16x16xf32>
    %cst_128 = arith.constant 8.99999984E-4 : f32
    %331 = vector.broadcast %cst_128 : f32 to vector<16x16xf32>
    %332 = arith.addf %330, %331 : vector<16x16xf32>
    %333 = arith.mulf %329, %332 : vector<16x16xf32>
    %334 = arith.divf %324, %333 : vector<16x16xf32>
    %cst_129 = arith.constant 1.000000e+00 : f32
    %335 = vector.broadcast %cst_129 : f32 to vector<16x16xf32>
    %336 = arith.subf %335, %334 : vector<16x16xf32>
    %cst_130 = arith.constant 5.000000e-01 : f32
    %337 = vector.broadcast %cst_130 : f32 to vector<16x16xf32>
    %338 = arith.mulf %336, %337 : vector<16x16xf32>
    %cst_131 = arith.constant 0.000000e+00 : f32
    %cst_132 = arith.constant 1.000000e+00 : f32
    %339 = vector.broadcast %cst_131 : f32 to vector<16x16xf32>
    %340 = arith.maximumf %339, %338 : vector<16x16xf32>
    %341 = vector.broadcast %cst_132 : f32 to vector<16x16xf32>
    %342 = arith.minimumf %341, %340 : vector<16x16xf32>
    %343 = vector.shape_cast %342 : vector<16x16xf32> to vector<1x16x16xf32>
    %cst_133 = arith.constant dense<0.000000e+00> : vector<1xf32>
    %344 = vector.multi_reduction <add>, %343, %cst_133 [1, 2] : vector<1x16x16xf32> to vector<1xf32>
    %345 = vector.shape_cast %344 : vector<1xf32> to vector<1x1x1xf32>
    %346 = vector.extract %345[0, 0, 0] : f32 from vector<1x1x1xf32>
    %347 = arith.addf %168, %346 : f32
    %c15_i32_134 = arith.constant 15 : i32
    %348 = tpu.dynamic_rotate %186 by %c15_i32_134 dim 1 : vector<16x16xf32>, i32 -> vector<16x16xf32>
    %349 = arith.subf %186, %348 : vector<16x16xf32>
    %350 = math.absf %349 : vector<16x16xf32>
    %351 = arith.addf %172, %350 : vector<16x16xf32>
    %c15_i32_135 = arith.constant 15 : i32
    %352 = tpu.dynamic_rotate %186 by %c15_i32_135 dim 0 : vector<16x16xf32>, i32 -> vector<16x16xf32>
    %353 = arith.subf %186, %352 : vector<16x16xf32>
    %354 = math.absf %353 : vector<16x16xf32>
    %355 = arith.addf %176, %354 : vector<16x16xf32>
    %c15_i32_136 = arith.constant 15 : i32
    %356 = tpu.dynamic_rotate %188 by %c15_i32_136 dim 1 : vector<16x16xf32>, i32 -> vector<16x16xf32>
    %357 = arith.subf %188, %356 : vector<16x16xf32>
    %358 = math.absf %357 : vector<16x16xf32>
    %359 = arith.addf %180, %358 : vector<16x16xf32>
    %c15_i32_137 = arith.constant 15 : i32
    %360 = tpu.dynamic_rotate %188 by %c15_i32_137 dim 0 : vector<16x16xf32>, i32 -> vector<16x16xf32>
    %361 = arith.subf %188, %360 : vector<16x16xf32>
    %362 = math.absf %361 : vector<16x16xf32>
    %363 = arith.addf %184, %362 : vector<16x16xf32>
    %c0_138 = arith.constant 0 : index
    %c2 = arith.constant 2 : index
    %c0_139 = arith.constant 0 : index
    %c0_140 = arith.constant 0 : index
    %364 = vector.load %arg1[%c0_138, %c2, %c0_139, %c0_140] : memref<1x3x16x16xf32, #tpu.memory_space<vmem>>, vector<1x1x16x16xf32>
    %365 = vector.shape_cast %364 : vector<1x1x16x16xf32> to vector<16x16xf32>
    %c0_141 = arith.constant 0 : index
    %c2_142 = arith.constant 2 : index
    %c0_143 = arith.constant 0 : index
    %c0_144 = arith.constant 0 : index
    %366 = vector.load %arg2[%c0_141, %c2_142, %c0_143, %c0_144] : memref<1x3x16x16xf32, #tpu.memory_space<vmem>>, vector<1x1x16x16xf32>
    %367 = vector.shape_cast %366 : vector<1x1x16x16xf32> to vector<16x16xf32>
    %368 = arith.subf %367, %365 : vector<16x16xf32>
    %369 = math.absf %368 : vector<16x16xf32>
    %370 = vector.shape_cast %369 : vector<16x16xf32> to vector<1x16x16xf32>
    %cst_145 = arith.constant dense<0.000000e+00> : vector<1xf32>
    %371 = vector.multi_reduction <add>, %370, %cst_145 [1, 2] : vector<1x16x16xf32> to vector<1xf32>
    %372 = vector.shape_cast %371 : vector<1xf32> to vector<1x1x1xf32>
    %373 = vector.extract %372[0, 0, 0] : f32 from vector<1x1x1xf32>
    %374 = arith.addf %195, %373 : f32
    %c1_i32_146 = arith.constant 1 : i32
    %375 = tpu.dynamic_rotate %365 by %c1_i32_146 dim 1 : vector<16x16xf32>, i32 -> vector<16x16xf32>
    %c15_i32_147 = arith.constant 15 : i32
    %376 = tpu.dynamic_rotate %365 by %c15_i32_147 dim 1 : vector<16x16xf32>, i32 -> vector<16x16xf32>
    %c0_i32_148 = arith.constant 0 : i32
    %377 = vector.broadcast %c0_i32_148 : i32 to vector<16x16xi32>
    %378 = arith.cmpi eq, %1, %377 : vector<16x16xi32>
    %379 = arith.select %378, %376, %375 : vector<16x16xi1>, vector<16x16xf32>
    %c15_i32_149 = arith.constant 15 : i32
    %380 = vector.broadcast %c15_i32_149 : i32 to vector<16x16xi32>
    %381 = arith.cmpi eq, %1, %380 : vector<16x16xi32>
    %382 = arith.select %381, %375, %376 : vector<16x16xi1>, vector<16x16xf32>
    %383 = arith.addf %379, %365 : vector<16x16xf32>
    %384 = arith.addf %383, %382 : vector<16x16xf32>
    %c1_i32_150 = arith.constant 1 : i32
    %385 = tpu.dynamic_rotate %384 by %c1_i32_150 dim 0 : vector<16x16xf32>, i32 -> vector<16x16xf32>
    %c15_i32_151 = arith.constant 15 : i32
    %386 = tpu.dynamic_rotate %384 by %c15_i32_151 dim 0 : vector<16x16xf32>, i32 -> vector<16x16xf32>
    %c0_i32_152 = arith.constant 0 : i32
    %387 = vector.broadcast %c0_i32_152 : i32 to vector<16x16xi32>
    %388 = arith.cmpi eq, %0, %387 : vector<16x16xi32>
    %389 = arith.select %388, %386, %385 : vector<16x16xi1>, vector<16x16xf32>
    %c15_i32_153 = arith.constant 15 : i32
    %390 = vector.broadcast %c15_i32_153 : i32 to vector<16x16xi32>
    %391 = arith.cmpi eq, %0, %390 : vector<16x16xi32>
    %392 = arith.select %391, %385, %386 : vector<16x16xi1>, vector<16x16xf32>
    %393 = arith.addf %389, %384 : vector<16x16xf32>
    %394 = arith.addf %393, %392 : vector<16x16xf32>
    %cst_154 = arith.constant 0.111111112 : f32
    %395 = vector.broadcast %cst_154 : f32 to vector<16x16xf32>
    %396 = arith.mulf %394, %395 : vector<16x16xf32>
    %c1_i32_155 = arith.constant 1 : i32
    %397 = tpu.dynamic_rotate %367 by %c1_i32_155 dim 1 : vector<16x16xf32>, i32 -> vector<16x16xf32>
    %c15_i32_156 = arith.constant 15 : i32
    %398 = tpu.dynamic_rotate %367 by %c15_i32_156 dim 1 : vector<16x16xf32>, i32 -> vector<16x16xf32>
    %c0_i32_157 = arith.constant 0 : i32
    %399 = vector.broadcast %c0_i32_157 : i32 to vector<16x16xi32>
    %400 = arith.cmpi eq, %1, %399 : vector<16x16xi32>
    %401 = arith.select %400, %398, %397 : vector<16x16xi1>, vector<16x16xf32>
    %c15_i32_158 = arith.constant 15 : i32
    %402 = vector.broadcast %c15_i32_158 : i32 to vector<16x16xi32>
    %403 = arith.cmpi eq, %1, %402 : vector<16x16xi32>
    %404 = arith.select %403, %397, %398 : vector<16x16xi1>, vector<16x16xf32>
    %405 = arith.addf %401, %367 : vector<16x16xf32>
    %406 = arith.addf %405, %404 : vector<16x16xf32>
    %c1_i32_159 = arith.constant 1 : i32
    %407 = tpu.dynamic_rotate %406 by %c1_i32_159 dim 0 : vector<16x16xf32>, i32 -> vector<16x16xf32>
    %c15_i32_160 = arith.constant 15 : i32
    %408 = tpu.dynamic_rotate %406 by %c15_i32_160 dim 0 : vector<16x16xf32>, i32 -> vector<16x16xf32>
    %c0_i32_161 = arith.constant 0 : i32
    %409 = vector.broadcast %c0_i32_161 : i32 to vector<16x16xi32>
    %410 = arith.cmpi eq, %0, %409 : vector<16x16xi32>
    %411 = arith.select %410, %408, %407 : vector<16x16xi1>, vector<16x16xf32>
    %c15_i32_162 = arith.constant 15 : i32
    %412 = vector.broadcast %c15_i32_162 : i32 to vector<16x16xi32>
    %413 = arith.cmpi eq, %0, %412 : vector<16x16xi32>
    %414 = arith.select %413, %407, %408 : vector<16x16xi1>, vector<16x16xf32>
    %415 = arith.addf %411, %406 : vector<16x16xf32>
    %416 = arith.addf %415, %414 : vector<16x16xf32>
    %cst_163 = arith.constant 0.111111112 : f32
    %417 = vector.broadcast %cst_163 : f32 to vector<16x16xf32>
    %418 = arith.mulf %416, %417 : vector<16x16xf32>
    %419 = arith.mulf %365, %365 : vector<16x16xf32>
    %c1_i32_164 = arith.constant 1 : i32
    %420 = tpu.dynamic_rotate %419 by %c1_i32_164 dim 1 : vector<16x16xf32>, i32 -> vector<16x16xf32>
    %c15_i32_165 = arith.constant 15 : i32
    %421 = tpu.dynamic_rotate %419 by %c15_i32_165 dim 1 : vector<16x16xf32>, i32 -> vector<16x16xf32>
    %c0_i32_166 = arith.constant 0 : i32
    %422 = vector.broadcast %c0_i32_166 : i32 to vector<16x16xi32>
    %423 = arith.cmpi eq, %1, %422 : vector<16x16xi32>
    %424 = arith.select %423, %421, %420 : vector<16x16xi1>, vector<16x16xf32>
    %c15_i32_167 = arith.constant 15 : i32
    %425 = vector.broadcast %c15_i32_167 : i32 to vector<16x16xi32>
    %426 = arith.cmpi eq, %1, %425 : vector<16x16xi32>
    %427 = arith.select %426, %420, %421 : vector<16x16xi1>, vector<16x16xf32>
    %428 = arith.addf %424, %419 : vector<16x16xf32>
    %429 = arith.addf %428, %427 : vector<16x16xf32>
    %c1_i32_168 = arith.constant 1 : i32
    %430 = tpu.dynamic_rotate %429 by %c1_i32_168 dim 0 : vector<16x16xf32>, i32 -> vector<16x16xf32>
    %c15_i32_169 = arith.constant 15 : i32
    %431 = tpu.dynamic_rotate %429 by %c15_i32_169 dim 0 : vector<16x16xf32>, i32 -> vector<16x16xf32>
    %c0_i32_170 = arith.constant 0 : i32
    %432 = vector.broadcast %c0_i32_170 : i32 to vector<16x16xi32>
    %433 = arith.cmpi eq, %0, %432 : vector<16x16xi32>
    %434 = arith.select %433, %431, %430 : vector<16x16xi1>, vector<16x16xf32>
    %c15_i32_171 = arith.constant 15 : i32
    %435 = vector.broadcast %c15_i32_171 : i32 to vector<16x16xi32>
    %436 = arith.cmpi eq, %0, %435 : vector<16x16xi32>
    %437 = arith.select %436, %430, %431 : vector<16x16xi1>, vector<16x16xf32>
    %438 = arith.addf %434, %429 : vector<16x16xf32>
    %439 = arith.addf %438, %437 : vector<16x16xf32>
    %cst_172 = arith.constant 0.111111112 : f32
    %440 = vector.broadcast %cst_172 : f32 to vector<16x16xf32>
    %441 = arith.mulf %439, %440 : vector<16x16xf32>
    %442 = arith.mulf %396, %396 : vector<16x16xf32>
    %443 = arith.subf %441, %442 : vector<16x16xf32>
    %444 = arith.mulf %367, %367 : vector<16x16xf32>
    %c1_i32_173 = arith.constant 1 : i32
    %445 = tpu.dynamic_rotate %444 by %c1_i32_173 dim 1 : vector<16x16xf32>, i32 -> vector<16x16xf32>
    %c15_i32_174 = arith.constant 15 : i32
    %446 = tpu.dynamic_rotate %444 by %c15_i32_174 dim 1 : vector<16x16xf32>, i32 -> vector<16x16xf32>
    %c0_i32_175 = arith.constant 0 : i32
    %447 = vector.broadcast %c0_i32_175 : i32 to vector<16x16xi32>
    %448 = arith.cmpi eq, %1, %447 : vector<16x16xi32>
    %449 = arith.select %448, %446, %445 : vector<16x16xi1>, vector<16x16xf32>
    %c15_i32_176 = arith.constant 15 : i32
    %450 = vector.broadcast %c15_i32_176 : i32 to vector<16x16xi32>
    %451 = arith.cmpi eq, %1, %450 : vector<16x16xi32>
    %452 = arith.select %451, %445, %446 : vector<16x16xi1>, vector<16x16xf32>
    %453 = arith.addf %449, %444 : vector<16x16xf32>
    %454 = arith.addf %453, %452 : vector<16x16xf32>
    %c1_i32_177 = arith.constant 1 : i32
    %455 = tpu.dynamic_rotate %454 by %c1_i32_177 dim 0 : vector<16x16xf32>, i32 -> vector<16x16xf32>
    %c15_i32_178 = arith.constant 15 : i32
    %456 = tpu.dynamic_rotate %454 by %c15_i32_178 dim 0 : vector<16x16xf32>, i32 -> vector<16x16xf32>
    %c0_i32_179 = arith.constant 0 : i32
    %457 = vector.broadcast %c0_i32_179 : i32 to vector<16x16xi32>
    %458 = arith.cmpi eq, %0, %457 : vector<16x16xi32>
    %459 = arith.select %458, %456, %455 : vector<16x16xi1>, vector<16x16xf32>
    %c15_i32_180 = arith.constant 15 : i32
    %460 = vector.broadcast %c15_i32_180 : i32 to vector<16x16xi32>
    %461 = arith.cmpi eq, %0, %460 : vector<16x16xi32>
    %462 = arith.select %461, %455, %456 : vector<16x16xi1>, vector<16x16xf32>
    %463 = arith.addf %459, %454 : vector<16x16xf32>
    %464 = arith.addf %463, %462 : vector<16x16xf32>
    %cst_181 = arith.constant 0.111111112 : f32
    %465 = vector.broadcast %cst_181 : f32 to vector<16x16xf32>
    %466 = arith.mulf %464, %465 : vector<16x16xf32>
    %467 = arith.mulf %418, %418 : vector<16x16xf32>
    %468 = arith.subf %466, %467 : vector<16x16xf32>
    %469 = arith.mulf %365, %367 : vector<16x16xf32>
    %c1_i32_182 = arith.constant 1 : i32
    %470 = tpu.dynamic_rotate %469 by %c1_i32_182 dim 1 : vector<16x16xf32>, i32 -> vector<16x16xf32>
    %c15_i32_183 = arith.constant 15 : i32
    %471 = tpu.dynamic_rotate %469 by %c15_i32_183 dim 1 : vector<16x16xf32>, i32 -> vector<16x16xf32>
    %c0_i32_184 = arith.constant 0 : i32
    %472 = vector.broadcast %c0_i32_184 : i32 to vector<16x16xi32>
    %473 = arith.cmpi eq, %1, %472 : vector<16x16xi32>
    %474 = arith.select %473, %471, %470 : vector<16x16xi1>, vector<16x16xf32>
    %c15_i32_185 = arith.constant 15 : i32
    %475 = vector.broadcast %c15_i32_185 : i32 to vector<16x16xi32>
    %476 = arith.cmpi eq, %1, %475 : vector<16x16xi32>
    %477 = arith.select %476, %470, %471 : vector<16x16xi1>, vector<16x16xf32>
    %478 = arith.addf %474, %469 : vector<16x16xf32>
    %479 = arith.addf %478, %477 : vector<16x16xf32>
    %c1_i32_186 = arith.constant 1 : i32
    %480 = tpu.dynamic_rotate %479 by %c1_i32_186 dim 0 : vector<16x16xf32>, i32 -> vector<16x16xf32>
    %c15_i32_187 = arith.constant 15 : i32
    %481 = tpu.dynamic_rotate %479 by %c15_i32_187 dim 0 : vector<16x16xf32>, i32 -> vector<16x16xf32>
    %c0_i32_188 = arith.constant 0 : i32
    %482 = vector.broadcast %c0_i32_188 : i32 to vector<16x16xi32>
    %483 = arith.cmpi eq, %0, %482 : vector<16x16xi32>
    %484 = arith.select %483, %481, %480 : vector<16x16xi1>, vector<16x16xf32>
    %c15_i32_189 = arith.constant 15 : i32
    %485 = vector.broadcast %c15_i32_189 : i32 to vector<16x16xi32>
    %486 = arith.cmpi eq, %0, %485 : vector<16x16xi32>
    %487 = arith.select %486, %480, %481 : vector<16x16xi1>, vector<16x16xf32>
    %488 = arith.addf %484, %479 : vector<16x16xf32>
    %489 = arith.addf %488, %487 : vector<16x16xf32>
    %cst_190 = arith.constant 0.111111112 : f32
    %490 = vector.broadcast %cst_190 : f32 to vector<16x16xf32>
    %491 = arith.mulf %489, %490 : vector<16x16xf32>
    %492 = arith.mulf %396, %418 : vector<16x16xf32>
    %493 = arith.subf %491, %492 : vector<16x16xf32>
    %cst_191 = arith.constant 2.000000e+00 : f32
    %494 = vector.broadcast %cst_191 : f32 to vector<16x16xf32>
    %495 = arith.mulf %494, %396 : vector<16x16xf32>
    %496 = arith.mulf %495, %418 : vector<16x16xf32>
    %cst_192 = arith.constant 9.99999974E-5 : f32
    %497 = vector.broadcast %cst_192 : f32 to vector<16x16xf32>
    %498 = arith.addf %496, %497 : vector<16x16xf32>
    %cst_193 = arith.constant 2.000000e+00 : f32
    %499 = vector.broadcast %cst_193 : f32 to vector<16x16xf32>
    %500 = arith.mulf %499, %493 : vector<16x16xf32>
    %cst_194 = arith.constant 8.99999984E-4 : f32
    %501 = vector.broadcast %cst_194 : f32 to vector<16x16xf32>
    %502 = arith.addf %500, %501 : vector<16x16xf32>
    %503 = arith.mulf %498, %502 : vector<16x16xf32>
    %504 = arith.mulf %396, %396 : vector<16x16xf32>
    %505 = arith.mulf %418, %418 : vector<16x16xf32>
    %506 = arith.addf %504, %505 : vector<16x16xf32>
    %cst_195 = arith.constant 9.99999974E-5 : f32
    %507 = vector.broadcast %cst_195 : f32 to vector<16x16xf32>
    %508 = arith.addf %506, %507 : vector<16x16xf32>
    %509 = arith.addf %443, %468 : vector<16x16xf32>
    %cst_196 = arith.constant 8.99999984E-4 : f32
    %510 = vector.broadcast %cst_196 : f32 to vector<16x16xf32>
    %511 = arith.addf %509, %510 : vector<16x16xf32>
    %512 = arith.mulf %508, %511 : vector<16x16xf32>
    %513 = arith.divf %503, %512 : vector<16x16xf32>
    %cst_197 = arith.constant 1.000000e+00 : f32
    %514 = vector.broadcast %cst_197 : f32 to vector<16x16xf32>
    %515 = arith.subf %514, %513 : vector<16x16xf32>
    %cst_198 = arith.constant 5.000000e-01 : f32
    %516 = vector.broadcast %cst_198 : f32 to vector<16x16xf32>
    %517 = arith.mulf %515, %516 : vector<16x16xf32>
    %cst_199 = arith.constant 0.000000e+00 : f32
    %cst_200 = arith.constant 1.000000e+00 : f32
    %518 = vector.broadcast %cst_199 : f32 to vector<16x16xf32>
    %519 = arith.maximumf %518, %517 : vector<16x16xf32>
    %520 = vector.broadcast %cst_200 : f32 to vector<16x16xf32>
    %521 = arith.minimumf %520, %519 : vector<16x16xf32>
    %522 = vector.shape_cast %521 : vector<16x16xf32> to vector<1x16x16xf32>
    %cst_201 = arith.constant dense<0.000000e+00> : vector<1xf32>
    %523 = vector.multi_reduction <add>, %522, %cst_201 [1, 2] : vector<1x16x16xf32> to vector<1xf32>
    %524 = vector.shape_cast %523 : vector<1xf32> to vector<1x1x1xf32>
    %525 = vector.extract %524[0, 0, 0] : f32 from vector<1x1x1xf32>
    %526 = arith.addf %347, %525 : f32
    %c15_i32_202 = arith.constant 15 : i32
    %527 = tpu.dynamic_rotate %365 by %c15_i32_202 dim 1 : vector<16x16xf32>, i32 -> vector<16x16xf32>
    %528 = arith.subf %365, %527 : vector<16x16xf32>
    %529 = math.absf %528 : vector<16x16xf32>
    %530 = arith.addf %351, %529 : vector<16x16xf32>
    %c15_i32_203 = arith.constant 15 : i32
    %531 = tpu.dynamic_rotate %365 by %c15_i32_203 dim 0 : vector<16x16xf32>, i32 -> vector<16x16xf32>
    %532 = arith.subf %365, %531 : vector<16x16xf32>
    %533 = math.absf %532 : vector<16x16xf32>
    %534 = arith.addf %355, %533 : vector<16x16xf32>
    %c15_i32_204 = arith.constant 15 : i32
    %535 = tpu.dynamic_rotate %367 by %c15_i32_204 dim 1 : vector<16x16xf32>, i32 -> vector<16x16xf32>
    %536 = arith.subf %367, %535 : vector<16x16xf32>
    %537 = math.absf %536 : vector<16x16xf32>
    %538 = arith.addf %359, %537 : vector<16x16xf32>
    %c15_i32_205 = arith.constant 15 : i32
    %539 = tpu.dynamic_rotate %367 by %c15_i32_205 dim 0 : vector<16x16xf32>, i32 -> vector<16x16xf32>
    %540 = arith.subf %367, %539 : vector<16x16xf32>
    %541 = math.absf %540 : vector<16x16xf32>
    %542 = arith.addf %363, %541 : vector<16x16xf32>
    %cst_206 = arith.constant 0.333333343 : f32
    %543 = vector.broadcast %cst_206 : f32 to vector<16x16xf32>
    %544 = arith.mulf %530, %543 : vector<16x16xf32>
    %cst_207 = arith.constant 0.333333343 : f32
    %545 = vector.broadcast %cst_207 : f32 to vector<16x16xf32>
    %546 = arith.mulf %534, %545 : vector<16x16xf32>
    %cst_208 = arith.constant 0.333333343 : f32
    %547 = vector.broadcast %cst_208 : f32 to vector<16x16xf32>
    %548 = arith.mulf %538, %547 : vector<16x16xf32>
    %cst_209 = arith.constant 0.333333343 : f32
    %549 = vector.broadcast %cst_209 : f32 to vector<16x16xf32>
    %550 = arith.mulf %542, %549 : vector<16x16xf32>
    %c15_i32_210 = arith.constant 15 : i32
    %551 = vector.broadcast %c15_i32_210 : i32 to vector<16x16xi32>
    %552 = arith.cmpi eq, %1, %551 : vector<16x16xi32>
    %c1_i32_211 = arith.constant 1 : i32
    %553 = tpu.dynamic_rotate %544 by %c1_i32_211 dim 1 : vector<16x16xf32>, i32 -> vector<16x16xf32>
    %554 = arith.select %552, %553, %544 : vector<16x16xi1>, vector<16x16xf32>
    %c15_i32_212 = arith.constant 15 : i32
    %555 = vector.broadcast %c15_i32_212 : i32 to vector<16x16xi32>
    %556 = arith.cmpi eq, %0, %555 : vector<16x16xi32>
    %c1_i32_213 = arith.constant 1 : i32
    %557 = tpu.dynamic_rotate %546 by %c1_i32_213 dim 0 : vector<16x16xf32>, i32 -> vector<16x16xf32>
    %558 = arith.select %556, %557, %546 : vector<16x16xi1>, vector<16x16xf32>
    %559 = arith.addf %554, %558 : vector<16x16xf32>
    %c15_i32_214 = arith.constant 15 : i32
    %560 = vector.broadcast %c15_i32_214 : i32 to vector<16x16xi32>
    %561 = arith.cmpi eq, %1, %560 : vector<16x16xi32>
    %c1_i32_215 = arith.constant 1 : i32
    %562 = tpu.dynamic_rotate %548 by %c1_i32_215 dim 1 : vector<16x16xf32>, i32 -> vector<16x16xf32>
    %563 = arith.select %561, %562, %548 : vector<16x16xi1>, vector<16x16xf32>
    %c15_i32_216 = arith.constant 15 : i32
    %564 = vector.broadcast %c15_i32_216 : i32 to vector<16x16xi32>
    %565 = arith.cmpi eq, %0, %564 : vector<16x16xi32>
    %c1_i32_217 = arith.constant 1 : i32
    %566 = tpu.dynamic_rotate %550 by %c1_i32_217 dim 0 : vector<16x16xf32>, i32 -> vector<16x16xf32>
    %567 = arith.select %565, %566, %550 : vector<16x16xi1>, vector<16x16xf32>
    %568 = arith.addf %563, %567 : vector<16x16xf32>
    %c1_i32_218 = arith.constant 1 : i32
    %569 = tpu.dynamic_rotate %559 by %c1_i32_218 dim 1 : vector<16x16xf32>, i32 -> vector<16x16xf32>
    %c15_i32_219 = arith.constant 15 : i32
    %570 = tpu.dynamic_rotate %559 by %c15_i32_219 dim 1 : vector<16x16xf32>, i32 -> vector<16x16xf32>
    %c0_i32_220 = arith.constant 0 : i32
    %571 = vector.broadcast %c0_i32_220 : i32 to vector<16x16xi32>
    %572 = arith.cmpi eq, %1, %571 : vector<16x16xi32>
    %573 = arith.select %572, %570, %569 : vector<16x16xi1>, vector<16x16xf32>
    %c15_i32_221 = arith.constant 15 : i32
    %574 = vector.broadcast %c15_i32_221 : i32 to vector<16x16xi32>
    %575 = arith.cmpi eq, %1, %574 : vector<16x16xi32>
    %576 = arith.select %575, %569, %570 : vector<16x16xi1>, vector<16x16xf32>
    %577 = arith.addf %573, %559 : vector<16x16xf32>
    %578 = arith.addf %577, %576 : vector<16x16xf32>
    %c1_i32_222 = arith.constant 1 : i32
    %579 = tpu.dynamic_rotate %578 by %c1_i32_222 dim 0 : vector<16x16xf32>, i32 -> vector<16x16xf32>
    %c15_i32_223 = arith.constant 15 : i32
    %580 = tpu.dynamic_rotate %578 by %c15_i32_223 dim 0 : vector<16x16xf32>, i32 -> vector<16x16xf32>
    %c0_i32_224 = arith.constant 0 : i32
    %581 = vector.broadcast %c0_i32_224 : i32 to vector<16x16xi32>
    %582 = arith.cmpi eq, %0, %581 : vector<16x16xi32>
    %583 = arith.select %582, %580, %579 : vector<16x16xi1>, vector<16x16xf32>
    %c15_i32_225 = arith.constant 15 : i32
    %584 = vector.broadcast %c15_i32_225 : i32 to vector<16x16xi32>
    %585 = arith.cmpi eq, %0, %584 : vector<16x16xi32>
    %586 = arith.select %585, %579, %580 : vector<16x16xi1>, vector<16x16xf32>
    %587 = arith.addf %583, %578 : vector<16x16xf32>
    %588 = arith.addf %587, %586 : vector<16x16xf32>
    %cst_226 = arith.constant 0.111111112 : f32
    %589 = vector.broadcast %cst_226 : f32 to vector<16x16xf32>
    %590 = arith.mulf %588, %589 : vector<16x16xf32>
    %c1_i32_227 = arith.constant 1 : i32
    %591 = tpu.dynamic_rotate %568 by %c1_i32_227 dim 1 : vector<16x16xf32>, i32 -> vector<16x16xf32>
    %c15_i32_228 = arith.constant 15 : i32
    %592 = tpu.dynamic_rotate %568 by %c15_i32_228 dim 1 : vector<16x16xf32>, i32 -> vector<16x16xf32>
    %c0_i32_229 = arith.constant 0 : i32
    %593 = vector.broadcast %c0_i32_229 : i32 to vector<16x16xi32>
    %594 = arith.cmpi eq, %1, %593 : vector<16x16xi32>
    %595 = arith.select %594, %592, %591 : vector<16x16xi1>, vector<16x16xf32>
    %c15_i32_230 = arith.constant 15 : i32
    %596 = vector.broadcast %c15_i32_230 : i32 to vector<16x16xi32>
    %597 = arith.cmpi eq, %1, %596 : vector<16x16xi32>
    %598 = arith.select %597, %591, %592 : vector<16x16xi1>, vector<16x16xf32>
    %599 = arith.addf %595, %568 : vector<16x16xf32>
    %600 = arith.addf %599, %598 : vector<16x16xf32>
    %c1_i32_231 = arith.constant 1 : i32
    %601 = tpu.dynamic_rotate %600 by %c1_i32_231 dim 0 : vector<16x16xf32>, i32 -> vector<16x16xf32>
    %c15_i32_232 = arith.constant 15 : i32
    %602 = tpu.dynamic_rotate %600 by %c15_i32_232 dim 0 : vector<16x16xf32>, i32 -> vector<16x16xf32>
    %c0_i32_233 = arith.constant 0 : i32
    %603 = vector.broadcast %c0_i32_233 : i32 to vector<16x16xi32>
    %604 = arith.cmpi eq, %0, %603 : vector<16x16xi32>
    %605 = arith.select %604, %602, %601 : vector<16x16xi1>, vector<16x16xf32>
    %c15_i32_234 = arith.constant 15 : i32
    %606 = vector.broadcast %c15_i32_234 : i32 to vector<16x16xi32>
    %607 = arith.cmpi eq, %0, %606 : vector<16x16xi32>
    %608 = arith.select %607, %601, %602 : vector<16x16xi1>, vector<16x16xf32>
    %609 = arith.addf %605, %600 : vector<16x16xf32>
    %610 = arith.addf %609, %608 : vector<16x16xf32>
    %cst_235 = arith.constant 0.111111112 : f32
    %611 = vector.broadcast %cst_235 : f32 to vector<16x16xf32>
    %612 = arith.mulf %610, %611 : vector<16x16xf32>
    %613 = arith.mulf %559, %559 : vector<16x16xf32>
    %c1_i32_236 = arith.constant 1 : i32
    %614 = tpu.dynamic_rotate %613 by %c1_i32_236 dim 1 : vector<16x16xf32>, i32 -> vector<16x16xf32>
    %c15_i32_237 = arith.constant 15 : i32
    %615 = tpu.dynamic_rotate %613 by %c15_i32_237 dim 1 : vector<16x16xf32>, i32 -> vector<16x16xf32>
    %c0_i32_238 = arith.constant 0 : i32
    %616 = vector.broadcast %c0_i32_238 : i32 to vector<16x16xi32>
    %617 = arith.cmpi eq, %1, %616 : vector<16x16xi32>
    %618 = arith.select %617, %615, %614 : vector<16x16xi1>, vector<16x16xf32>
    %c15_i32_239 = arith.constant 15 : i32
    %619 = vector.broadcast %c15_i32_239 : i32 to vector<16x16xi32>
    %620 = arith.cmpi eq, %1, %619 : vector<16x16xi32>
    %621 = arith.select %620, %614, %615 : vector<16x16xi1>, vector<16x16xf32>
    %622 = arith.addf %618, %613 : vector<16x16xf32>
    %623 = arith.addf %622, %621 : vector<16x16xf32>
    %c1_i32_240 = arith.constant 1 : i32
    %624 = tpu.dynamic_rotate %623 by %c1_i32_240 dim 0 : vector<16x16xf32>, i32 -> vector<16x16xf32>
    %c15_i32_241 = arith.constant 15 : i32
    %625 = tpu.dynamic_rotate %623 by %c15_i32_241 dim 0 : vector<16x16xf32>, i32 -> vector<16x16xf32>
    %c0_i32_242 = arith.constant 0 : i32
    %626 = vector.broadcast %c0_i32_242 : i32 to vector<16x16xi32>
    %627 = arith.cmpi eq, %0, %626 : vector<16x16xi32>
    %628 = arith.select %627, %625, %624 : vector<16x16xi1>, vector<16x16xf32>
    %c15_i32_243 = arith.constant 15 : i32
    %629 = vector.broadcast %c15_i32_243 : i32 to vector<16x16xi32>
    %630 = arith.cmpi eq, %0, %629 : vector<16x16xi32>
    %631 = arith.select %630, %624, %625 : vector<16x16xi1>, vector<16x16xf32>
    %632 = arith.addf %628, %623 : vector<16x16xf32>
    %633 = arith.addf %632, %631 : vector<16x16xf32>
    %cst_244 = arith.constant 0.111111112 : f32
    %634 = vector.broadcast %cst_244 : f32 to vector<16x16xf32>
    %635 = arith.mulf %633, %634 : vector<16x16xf32>
    %636 = arith.mulf %590, %590 : vector<16x16xf32>
    %637 = arith.subf %635, %636 : vector<16x16xf32>
    %638 = arith.mulf %568, %568 : vector<16x16xf32>
    %c1_i32_245 = arith.constant 1 : i32
    %639 = tpu.dynamic_rotate %638 by %c1_i32_245 dim 1 : vector<16x16xf32>, i32 -> vector<16x16xf32>
    %c15_i32_246 = arith.constant 15 : i32
    %640 = tpu.dynamic_rotate %638 by %c15_i32_246 dim 1 : vector<16x16xf32>, i32 -> vector<16x16xf32>
    %c0_i32_247 = arith.constant 0 : i32
    %641 = vector.broadcast %c0_i32_247 : i32 to vector<16x16xi32>
    %642 = arith.cmpi eq, %1, %641 : vector<16x16xi32>
    %643 = arith.select %642, %640, %639 : vector<16x16xi1>, vector<16x16xf32>
    %c15_i32_248 = arith.constant 15 : i32
    %644 = vector.broadcast %c15_i32_248 : i32 to vector<16x16xi32>
    %645 = arith.cmpi eq, %1, %644 : vector<16x16xi32>
    %646 = arith.select %645, %639, %640 : vector<16x16xi1>, vector<16x16xf32>
    %647 = arith.addf %643, %638 : vector<16x16xf32>
    %648 = arith.addf %647, %646 : vector<16x16xf32>
    %c1_i32_249 = arith.constant 1 : i32
    %649 = tpu.dynamic_rotate %648 by %c1_i32_249 dim 0 : vector<16x16xf32>, i32 -> vector<16x16xf32>
    %c15_i32_250 = arith.constant 15 : i32
    %650 = tpu.dynamic_rotate %648 by %c15_i32_250 dim 0 : vector<16x16xf32>, i32 -> vector<16x16xf32>
    %c0_i32_251 = arith.constant 0 : i32
    %651 = vector.broadcast %c0_i32_251 : i32 to vector<16x16xi32>
    %652 = arith.cmpi eq, %0, %651 : vector<16x16xi32>
    %653 = arith.select %652, %650, %649 : vector<16x16xi1>, vector<16x16xf32>
    %c15_i32_252 = arith.constant 15 : i32
    %654 = vector.broadcast %c15_i32_252 : i32 to vector<16x16xi32>
    %655 = arith.cmpi eq, %0, %654 : vector<16x16xi32>
    %656 = arith.select %655, %649, %650 : vector<16x16xi1>, vector<16x16xf32>
    %657 = arith.addf %653, %648 : vector<16x16xf32>
    %658 = arith.addf %657, %656 : vector<16x16xf32>
    %cst_253 = arith.constant 0.111111112 : f32
    %659 = vector.broadcast %cst_253 : f32 to vector<16x16xf32>
    %660 = arith.mulf %658, %659 : vector<16x16xf32>
    %661 = arith.mulf %612, %612 : vector<16x16xf32>
    %662 = arith.subf %660, %661 : vector<16x16xf32>
    %663 = arith.mulf %559, %568 : vector<16x16xf32>
    %c1_i32_254 = arith.constant 1 : i32
    %664 = tpu.dynamic_rotate %663 by %c1_i32_254 dim 1 : vector<16x16xf32>, i32 -> vector<16x16xf32>
    %c15_i32_255 = arith.constant 15 : i32
    %665 = tpu.dynamic_rotate %663 by %c15_i32_255 dim 1 : vector<16x16xf32>, i32 -> vector<16x16xf32>
    %c0_i32_256 = arith.constant 0 : i32
    %666 = vector.broadcast %c0_i32_256 : i32 to vector<16x16xi32>
    %667 = arith.cmpi eq, %1, %666 : vector<16x16xi32>
    %668 = arith.select %667, %665, %664 : vector<16x16xi1>, vector<16x16xf32>
    %c15_i32_257 = arith.constant 15 : i32
    %669 = vector.broadcast %c15_i32_257 : i32 to vector<16x16xi32>
    %670 = arith.cmpi eq, %1, %669 : vector<16x16xi32>
    %671 = arith.select %670, %664, %665 : vector<16x16xi1>, vector<16x16xf32>
    %672 = arith.addf %668, %663 : vector<16x16xf32>
    %673 = arith.addf %672, %671 : vector<16x16xf32>
    %c1_i32_258 = arith.constant 1 : i32
    %674 = tpu.dynamic_rotate %673 by %c1_i32_258 dim 0 : vector<16x16xf32>, i32 -> vector<16x16xf32>
    %c15_i32_259 = arith.constant 15 : i32
    %675 = tpu.dynamic_rotate %673 by %c15_i32_259 dim 0 : vector<16x16xf32>, i32 -> vector<16x16xf32>
    %c0_i32_260 = arith.constant 0 : i32
    %676 = vector.broadcast %c0_i32_260 : i32 to vector<16x16xi32>
    %677 = arith.cmpi eq, %0, %676 : vector<16x16xi32>
    %678 = arith.select %677, %675, %674 : vector<16x16xi1>, vector<16x16xf32>
    %c15_i32_261 = arith.constant 15 : i32
    %679 = vector.broadcast %c15_i32_261 : i32 to vector<16x16xi32>
    %680 = arith.cmpi eq, %0, %679 : vector<16x16xi32>
    %681 = arith.select %680, %674, %675 : vector<16x16xi1>, vector<16x16xf32>
    %682 = arith.addf %678, %673 : vector<16x16xf32>
    %683 = arith.addf %682, %681 : vector<16x16xf32>
    %cst_262 = arith.constant 0.111111112 : f32
    %684 = vector.broadcast %cst_262 : f32 to vector<16x16xf32>
    %685 = arith.mulf %683, %684 : vector<16x16xf32>
    %686 = arith.mulf %590, %612 : vector<16x16xf32>
    %687 = arith.subf %685, %686 : vector<16x16xf32>
    %cst_263 = arith.constant 2.000000e+00 : f32
    %688 = vector.broadcast %cst_263 : f32 to vector<16x16xf32>
    %689 = arith.mulf %688, %590 : vector<16x16xf32>
    %690 = arith.mulf %689, %612 : vector<16x16xf32>
    %cst_264 = arith.constant 9.99999974E-5 : f32
    %691 = vector.broadcast %cst_264 : f32 to vector<16x16xf32>
    %692 = arith.addf %690, %691 : vector<16x16xf32>
    %cst_265 = arith.constant 2.000000e+00 : f32
    %693 = vector.broadcast %cst_265 : f32 to vector<16x16xf32>
    %694 = arith.mulf %693, %687 : vector<16x16xf32>
    %cst_266 = arith.constant 8.99999984E-4 : f32
    %695 = vector.broadcast %cst_266 : f32 to vector<16x16xf32>
    %696 = arith.addf %694, %695 : vector<16x16xf32>
    %697 = arith.mulf %692, %696 : vector<16x16xf32>
    %698 = arith.mulf %590, %590 : vector<16x16xf32>
    %699 = arith.mulf %612, %612 : vector<16x16xf32>
    %700 = arith.addf %698, %699 : vector<16x16xf32>
    %cst_267 = arith.constant 9.99999974E-5 : f32
    %701 = vector.broadcast %cst_267 : f32 to vector<16x16xf32>
    %702 = arith.addf %700, %701 : vector<16x16xf32>
    %703 = arith.addf %637, %662 : vector<16x16xf32>
    %cst_268 = arith.constant 8.99999984E-4 : f32
    %704 = vector.broadcast %cst_268 : f32 to vector<16x16xf32>
    %705 = arith.addf %703, %704 : vector<16x16xf32>
    %706 = arith.mulf %702, %705 : vector<16x16xf32>
    %707 = arith.divf %697, %706 : vector<16x16xf32>
    %cst_269 = arith.constant 1.000000e+00 : f32
    %708 = vector.broadcast %cst_269 : f32 to vector<16x16xf32>
    %709 = arith.subf %708, %707 : vector<16x16xf32>
    %cst_270 = arith.constant 5.000000e-01 : f32
    %710 = vector.broadcast %cst_270 : f32 to vector<16x16xf32>
    %711 = arith.mulf %709, %710 : vector<16x16xf32>
    %cst_271 = arith.constant 0.000000e+00 : f32
    %cst_272 = arith.constant 1.000000e+00 : f32
    %712 = vector.broadcast %cst_271 : f32 to vector<16x16xf32>
    %713 = arith.maximumf %712, %711 : vector<16x16xf32>
    %714 = vector.broadcast %cst_272 : f32 to vector<16x16xf32>
    %715 = arith.minimumf %714, %713 : vector<16x16xf32>
    %716 = vector.shape_cast %715 : vector<16x16xf32> to vector<1x16x16xf32>
    %cst_273 = arith.constant dense<0.000000e+00> : vector<1xf32>
    %717 = vector.multi_reduction <add>, %716, %cst_273 [1, 2] : vector<1x16x16xf32> to vector<1xf32>
    %718 = vector.shape_cast %717 : vector<1xf32> to vector<1x1x1xf32>
    %719 = vector.extract %718[0, 0, 0] : f32 from vector<1x1x1xf32>
    %cst_274 = arith.constant 4.000000e-01 : f32
    %720 = arith.mulf %cst_274, %526 : f32
    %cst_275 = arith.constant 7.680000e+02 : f32
    %721 = arith.divf %720, %cst_275 : f32
    %cst_276 = arith.constant 5.000000e-01 : f32
    %722 = arith.mulf %cst_276, %719 : f32
    %cst_277 = arith.constant 2.560000e+02 : f32
    %723 = arith.divf %722, %cst_277 : f32
    %724 = arith.addf %721, %723 : f32
    %cst_278 = arith.constant 1.000000e-01 : f32
    %725 = arith.mulf %cst_278, %374 : f32
    %cst_279 = arith.constant 7.680000e+02 : f32
    %726 = arith.divf %725, %cst_279 : f32
    %727 = arith.addf %724, %726 : f32
    %c0_280 = arith.constant 0 : index
    %c0_281 = arith.constant 0 : index
    %c0_282 = arith.constant 0 : index
    %c0_283 = arith.constant 0 : index
    %728 = vector.load %arg3[%c0_280, %c0_281, %c0_282, %c0_283] : memref<1x1x16x16xf32, #tpu.memory_space<vmem>>, vector<1x1x16x16xf32>
    %729 = vector.shape_cast %728 : vector<1x1x16x16xf32> to vector<16x16xf32>
    %730 = vector.shape_cast %729 : vector<16x16xf32> to vector<1x16x16xf32>
    %cst_284 = arith.constant dense<0.000000e+00> : vector<1xf32>
    %731 = vector.multi_reduction <add>, %730, %cst_284 [1, 2] : vector<1x16x16xf32> to vector<1xf32>
    %732 = vector.shape_cast %731 : vector<1xf32> to vector<1x1x1xf32>
    %733 = vector.extract %732[0, 0, 0] : f32 from vector<1x1x1xf32>
    %cst_285 = arith.constant 2.560000e+02 : f32
    %734 = arith.divf %733, %cst_285 : f32
    %cst_286 = arith.constant 9.99999993E-9 : f32
    %735 = arith.addf %734, %cst_286 : f32
    %736 = vector.broadcast %735 : f32 to vector<16x16xf32>
    %737 = arith.divf %729, %736 : vector<16x16xf32>
    %c15_i32_287 = arith.constant 15 : i32
    %738 = tpu.dynamic_rotate %737 by %c15_i32_287 dim 1 : vector<16x16xf32>, i32 -> vector<16x16xf32>
    %739 = arith.subf %737, %738 : vector<16x16xf32>
    %740 = math.absf %739 : vector<16x16xf32>
    %c15_i32_288 = arith.constant 15 : i32
    %741 = tpu.dynamic_rotate %737 by %c15_i32_288 dim 0 : vector<16x16xf32>, i32 -> vector<16x16xf32>
    %742 = arith.subf %737, %741 : vector<16x16xf32>
    %743 = math.absf %742 : vector<16x16xf32>
    %c15_i32_289 = arith.constant 15 : i32
    %744 = vector.broadcast %c15_i32_289 : i32 to vector<16x16xi32>
    %745 = arith.cmpi slt, %1, %744 : vector<16x16xi32>
    %cst_290 = arith.constant 0.000000e+00 : f32
    %746 = vector.broadcast %cst_290 : f32 to vector<16x16xf32>
    %747 = arith.subf %746, %548 : vector<16x16xf32>
    %748 = math.exp %747 : vector<16x16xf32>
    %749 = arith.mulf %740, %748 : vector<16x16xf32>
    %cst_291 = arith.constant 0.000000e+00 : f32
    %750 = vector.broadcast %cst_291 : f32 to vector<16x16xf32>
    %751 = arith.select %745, %749, %750 : vector<16x16xi1>, vector<16x16xf32>
    %752 = vector.shape_cast %751 : vector<16x16xf32> to vector<1x16x16xf32>
    %cst_292 = arith.constant dense<0.000000e+00> : vector<1xf32>
    %753 = vector.multi_reduction <add>, %752, %cst_292 [1, 2] : vector<1x16x16xf32> to vector<1xf32>
    %754 = vector.shape_cast %753 : vector<1xf32> to vector<1x1x1xf32>
    %755 = vector.extract %754[0, 0, 0] : f32 from vector<1x1x1xf32>
    %cst_293 = arith.constant 2.400000e+02 : f32
    %756 = arith.divf %755, %cst_293 : f32
    %c15_i32_294 = arith.constant 15 : i32
    %757 = vector.broadcast %c15_i32_294 : i32 to vector<16x16xi32>
    %758 = arith.cmpi slt, %0, %757 : vector<16x16xi32>
    %cst_295 = arith.constant 0.000000e+00 : f32
    %759 = vector.broadcast %cst_295 : f32 to vector<16x16xf32>
    %760 = arith.subf %759, %550 : vector<16x16xf32>
    %761 = math.exp %760 : vector<16x16xf32>
    %762 = arith.mulf %743, %761 : vector<16x16xf32>
    %cst_296 = arith.constant 0.000000e+00 : f32
    %763 = vector.broadcast %cst_296 : f32 to vector<16x16xf32>
    %764 = arith.select %758, %762, %763 : vector<16x16xi1>, vector<16x16xf32>
    %765 = vector.shape_cast %764 : vector<16x16xf32> to vector<1x16x16xf32>
    %cst_297 = arith.constant dense<0.000000e+00> : vector<1xf32>
    %766 = vector.multi_reduction <add>, %765, %cst_297 [1, 2] : vector<1x16x16xf32> to vector<1xf32>
    %767 = vector.shape_cast %766 : vector<1xf32> to vector<1x1x1xf32>
    %768 = vector.extract %767[0, 0, 0] : f32 from vector<1x1x1xf32>
    %cst_298 = arith.constant 2.400000e+02 : f32
    %769 = arith.divf %768, %cst_298 : f32
    %770 = arith.addf %756, %769 : f32
    %c0_i32_299 = arith.constant 0 : i32
    %771 = arith.cmpi eq, %arg0, %c0_i32_299 : i32
    %772 = arith.extui %771 : i1 to i32
    %c0_i32_300 = arith.constant 0 : i32
    %773 = arith.cmpi ne, %772, %c0_i32_300 : i32
    scf.if %773 {
      %cst_305 = arith.constant 0.000000e+00 : f32
      %c0_306 = arith.constant 0 : index
      %780 = memref.load %arg4[%c0_306] : memref<2xf32, #tpu.memory_space<smem>>
      memref.store %cst_305, %arg4[%c0_306] : memref<2xf32, #tpu.memory_space<smem>>
      %cst_307 = arith.constant 0.000000e+00 : f32
      %c1_308 = arith.constant 1 : index
      %781 = memref.load %arg4[%c1_308] : memref<2xf32, #tpu.memory_space<smem>>
      memref.store %cst_307, %arg4[%c1_308] : memref<2xf32, #tpu.memory_space<smem>>
    } else {
    }
    %c0_301 = arith.constant 0 : index
    %774 = memref.load %arg4[%c0_301] : memref<2xf32, #tpu.memory_space<smem>>
    %775 = arith.addf %774, %727 : f32
    %c0_302 = arith.constant 0 : index
    %776 = memref.load %arg4[%c0_302] : memref<2xf32, #tpu.memory_space<smem>>
    memref.store %775, %arg4[%c0_302] : memref<2xf32, #tpu.memory_space<smem>>
    %c1_303 = arith.constant 1 : index
    %777 = memref.load %arg4[%c1_303] : memref<2xf32, #tpu.memory_space<smem>>
    %778 = arith.addf %777, %770 : f32
    %c1_304 = arith.constant 1 : index
    %779 = memref.load %arg4[%c1_304] : memref<2xf32, #tpu.memory_space<smem>>
    memref.store %778, %arg4[%c1_304] : memref<2xf32, #tpu.memory_space<smem>>
    return
  }
  func.func @transform_0(%arg0: i32) -> (i32, i32, i32, i32) {
    %c0_i32 = arith.constant 0 : i32
    %c0_i32_0 = arith.constant 0 : i32
    %c0_i32_1 = arith.constant 0 : i32
    %c0_i32_2 = arith.constant 0 : i32
    return %arg0, %c0_i32, %c0_i32_0, %c0_i32_1 : i32, i32, i32, i32
  }
  func.func @transform_1(%arg0: i32) -> (i32, i32, i32, i32) {
    %c0_i32 = arith.constant 0 : i32
    %c0_i32_0 = arith.constant 0 : i32
    %c0_i32_1 = arith.constant 0 : i32
    %c0_i32_2 = arith.constant 0 : i32
    return %arg0, %c0_i32, %c0_i32_0, %c0_i32_1 : i32, i32, i32, i32
  }
  func.func @transform_2(%arg0: i32) -> (i32, i32, i32, i32) {
    %c0_i32 = arith.constant 0 : i32
    %c0_i32_0 = arith.constant 0 : i32
    %c0_i32_1 = arith.constant 0 : i32
    %c0_i32_2 = arith.constant 0 : i32
    return %arg0, %c0_i32, %c0_i32_0, %c0_i32_1 : i32, i32, i32, i32
  }
  func.func @transform_3(%arg0: i32) -> i32 {
    %c0_i32 = arith.constant 0 : i32
    %c0_i32_0 = arith.constant 0 : i32
    return %c0_i32 : i32
  }
}

</mosaic_0001>

<bundles_post_ra>
// kernel: tpu_custom_call.1
= control target key start
LH: loop header
LB: loop body
LE: loop exit
PB: predicated region body
PF: predicated region fallthrough
CT: control target
= control target key end

     0   :  { %s4174_s0 = inlined_call_operand.hbm [shape: f32[2,3,16,16], index: 0, kind: input, shape index: {}]   ;;  %s4175_s1 = inlined_call_operand.hbm [shape: f32[2,3,16,16], index: 1, kind: input, shape index: {}]   ;;  %s4176_s2 = inlined_call_operand.hbm [shape: f32[2,1,16,16], index: 2, kind: input, shape index: {}]   ;;  %s4177_s3 = inlined_call_operand.hbm [shape: f32[2], index: 3, kind: output, shape index: {}]  }
   0x1   :  { %4232 = sst [smem:[#allocation39_spill]] %s4174_s0 }
   0x2   :  { %8 = vsyncpa [#allocation3], 0 }
   0x3   :  { %10 = vsyncpa [#allocation3 + $0x1], 0 }
   0x4   :  { %11 = vsyncpa [#allocation6], 0 }
   0x5   :  { %13 = vsyncpa [#allocation6 + $0x1], 0 }
   0x6   :  { %14 = vsyncpa [#allocation4], 0  ;;  %s2366_s12 = smov 0   ;;  %s2368_s13 = smov 0  }
   0x7   :  { %s2370_s14 = smov 0   ;;  %s2372_s15 = smov 0  }
   0x8 LB: > { %s2385_s16 = sadd.s32 4294967295, %s2334_s15   ;;  %s2388_s17 = sadd.s32 1, %s2334_s15   ;;  %s2334_s15 = sphi %s2372_s15, %s4332_s15   ;;  %s2330_s14 = sphi %s2370_s14, %s4331_s14   ;;  %s2326_s13 = sphi %s2368_s13, %s4330_s13   ;;  %s2322_s12 = sphi %s2366_s12, %s4329_s12  }
   0x9   : > { %s24_s18 = ssub.s32 %s2334_s15, %s2388_s17  ;;  %s27_s19 = sadd.s32 1, %s2330_s14 }
   0xa   : > { %p25_p0 = scmp.eq.s32.totalorder %s24_s18, 0  ;;  %p34_p1 = scmp.ne.s32.totalorder %s2330_s14, %s2326_s13 }
   0xb   : > { %p35_p2 = scmp.eq.s32.totalorder %s2334_s15, 0  ;;  %p40_p3 = scmp.ne.s32.totalorder %s2326_s13, %s2322_s12 }
   0xc   : > { %s2398_s20 = scalar_select %p25_p0, %s2330_s14, %s27_s19  }
   0xd   : > { %p36_p4 = por %p35_p2, %p34_p1  ;;  %p4178_p5 = scmp.eq.s32.totalorder %s2385_s16, 0 }
   0xe   : > { %p2109_p6 = scmp.lt.s32.totalorder %s2334_s15, 2  ;;  %s2409_s22 = sand.u32 1, %s2330_s14  }
   0xf   : > { %p2404_p7 = por %p4178_p5, %p40_p3  ;;  %s2061_s23 = smul.u32 48, %s2409_s22 }
  0x10   : > { %p2412_p8 = pnand %p2109_p6, %p36_p4  ;;  %s2062_s25 = smul.u32 768, %s2334_s15 }
  0x11   : > { %s4233_s21 = scalar_select %p2404_p7, 1, 0 }
  0x12   : > { %s158_s26 = sand.u32 1, %s2334_s15   ;;  %s2423_s29 = scalar_lea.hbm %s4175_s1, %s2062_s25 }
  0x13   : > { %s162_s30 = scalar_lea.vmem [#allocation5], %s2061_s23  ;;  %s2431_s5 = scalar_lea.sflag [#allocation6], %s158_s26 }
  0x14   : > { %s169_s4 = sshll.u32 %s162_s30, 4  ;;  %s2190_s6 = scalar_lea.hbm %s2423_s29, 768  ;;  %s2428_s4 = int_to_ptr.vmem [resolvable:$true] %s169_s4 }
  0x15   : > { %p2191_p11 = scmp.ne.s32.totalorder %s2423_s29, %s2190_s6  ;;  %p2437_p12 = pneg %p2412_p8 }
  0x16   : > { %s2195_s10 = scalar_lea.hbm %s4175_s1, 1536  ;;  %p2196_p1 = scmp.lt.u32.totalorder %s2423_s29, %s4175_s1 }
  0x17   : > { %p2193_p13 = pnand %p2437_p12, %p2191_p11  ;;  %p2197_p2 = scmp.lt.u32.totalorder %s2195_s10, %s2190_s6 }
  0x18   : > { %p2199_p4 = scmp.lt.u32.totalorder %s2190_s6, %s2423_s29 }
  0x19   : > { %p2194_p0 = pneg %p2193_p13  ;;  %p2198_p3 = por %p2197_p2, %p2196_p1 }
  0x1b   : > { %p2200_p6 = por %p2199_p4, %p2198_p3 }
  0x1d   : > { %p2201_p5 = pnand %p2200_p6, %p2194_p0 }
  0x1f   : > { %2204 = shalt.err (!%p2201_p5)
}
  0x20   : > { %s2205_s18 = scalar_lea.vmem %s2428_s4, 768  ;;  %s2336_s19 = smov [#allocation5]  }
  0x21   : > { %p2206_p11 = scmp.ne.s32.totalorder %s2428_s4, %s2205_s18  ;;  %s2210_s26 = sshll.u32 %s2336_s19, 4  ;;  %s2211_s26 = int_to_ptr.vmem [resolvable:$false] %s2210_s26 }
  0x22   : > { %s2212_s27 = scalar_lea.vmem %s2211_s26, 1536  ;;  %p2213_p10 = scmp.lt.s32.totalorder %s2428_s4, %s2211_s26 }
  0x23   : > { %p2208_p13 = pnand %p2206_p11, %p2437_p12  ;;  %p2214_p7 = scmp.lt.s32.totalorder %s2212_s27, %s2205_s18 }
  0x25   : > { %p2209_p9 = pneg %p2208_p13  ;;  %p2215_p1 = por %p2214_p7, %p2213_p10 }
  0x27   : > { %p2216_p2 = pnand %p2215_p1, %p2209_p9 }
  0x29   : > { %2219 = shalt.err (!%p2216_p2)
}
  0x2a   : > { %s2337_s28 = smov 128   ;;  %s2338_s30 = smov 8  }
  0x2b   : > { %2105 = dma.hbm_to_vmem [thread:$0]  (!%p2412_p8), %s2423_s29, 768, %s2428_s4, %s2431_s5, %s2337_s28, %s2337_s28, %s2338_s30  }
  0x2c   : > { %p4236_p5 = scmp.lt.s32.totalorder %s2334_s15, 3  ;;  %p4237_p7 = scmp.ge.s32.totalorder %s2334_s15, 1 }
  0x2d   : > { %s4239_s0 = sld [smem:[#allocation39_spill]]  ;;  %s141_s11 = scalar_lea.vmem [#allocation2], %s2061_s23 }
  0x2e   : > { %p2468_p9 = pnand %p4237_p7, %p4236_p5  ;;  %s148_s12 = sshll.u32 %s141_s11, 4  ;;  %s2482_s12 = int_to_ptr.vmem [resolvable:$true] %s148_s12 }
  0x2f   : > { %s2041_s29 = sshll.u32 %s2409_s22, 4  ;;  %s138_s4 = scalar_lea.sflag [#allocation3], %s2409_s22 }
  0x30   : > { %s4238_s6 = scalar_select %p2468_p9, 1, 0 }
  0x33   : > { %s2477_s10 = scalar_lea.hbm %s4239_s0, %s2062_s25  ;;  %s2225_s25 = scalar_lea.hbm %s4239_s0, 1536 }
  0x34   : > { %s2220_s18 = scalar_lea.hbm %s2477_s10, 768  ;;  %p2226_p4 = scmp.lt.u32.totalorder %s2477_s10, %s4239_s0 }
  0x35   : > { %p2221_p10 = scmp.ne.s32.totalorder %s2477_s10, %s2220_s18  ;;  %p2227_p6 = scmp.lt.u32.totalorder %s2225_s25, %s2220_s18 }
  0x36   : > { %p2229_p13 = scmp.lt.u32.totalorder %s2220_s18, %s2477_s10 }
  0x37   : > { %p2223_p0 = pnand %p2221_p10, %p2437_p12  ;;  %p2228_p11 = por %p2227_p6, %p2226_p4 }
  0x39   : > { %p2224_p3 = pneg %p2223_p0  ;;  %p2230_p1 = por %p2229_p13, %p2228_p11 }
  0x3b   : > { %p2231_p2 = pnand %p2230_p1, %p2224_p3 }
  0x3d   : > { %2234 = shalt.err (!%p2231_p2)
}
  0x3e   : > { %s2235_s23 = scalar_lea.vmem %s2482_s12, 768  ;;  %s2339_s9 = smov [#allocation2]  }
  0x3f   : > { %p2236_p5 = scmp.ne.s32.totalorder %s2482_s12, %s2235_s23  ;;  %s2240_s11 = sshll.u32 %s2339_s9, 4  ;;  %s2241_s11 = int_to_ptr.vmem [resolvable:$false] %s2240_s11 }
  0x40   : > { %s2242_s19 = scalar_lea.vmem %s2241_s11, 1536  ;;  %p2243_p0 = scmp.lt.s32.totalorder %s2482_s12, %s2241_s11 }
  0x41   : > { %p2238_p7 = pnand %p2236_p5, %p2437_p12  ;;  %p2244_p9 = scmp.lt.s32.totalorder %s2242_s19, %s2235_s23 }
  0x43   : > { %p2239_p10 = pneg %p2238_p7  ;;  %p2245_p4 = por %p2244_p9, %p2243_p0 }
  0x45   : > { %p2246_p6 = pnand %p2245_p4, %p2239_p10 }
  0x47   : > { %2249 = shalt.err (!%p2246_p6)
}
  0x48   : > { %2102 = dma.hbm_to_vmem [thread:$0]  (!%p2412_p8), %s2477_s10, 768, %s2482_s12, %s138_s4, %s2337_s28, %s2337_s28, %s2338_s30  }
  0x49   : > { %s2060_s18 = sshll.u32 %s2334_s15, 8  ;;  %s183_s26 = scalar_lea.vmem [#allocation7], %s2041_s29 }
  0x4a   : > { %s190_s25 = sshll.u32 %s183_s26, 4  ;;  %s2517_s23 = scalar_lea.hbm %s4176_s2, %s2060_s18  ;;  %s2519_s25 = int_to_ptr.vmem [resolvable:$true] %s190_s25 }
  0x4b   : > { %s2250_s9 = scalar_lea.hbm %s2517_s23, 256  ;;  %s2255_s10 = scalar_lea.hbm %s4176_s2, 512 }
  0x4c   : > { %p2251_p9 = scmp.ne.s32.totalorder %s2517_s23, %s2250_s9  ;;  %p2256_p13 = scmp.lt.u32.totalorder %s2517_s23, %s4176_s2 }
  0x4d   : > { %p2257_p1 = scmp.lt.u32.totalorder %s2255_s10, %s2250_s9  ;;  %p2259_p5 = scmp.lt.u32.totalorder %s2250_s9, %s2517_s23 }
  0x4e   : > { %p2253_p3 = pnand %p2251_p9, %p2437_p12 }
  0x4f   : > { %p2258_p2 = por %p2257_p1, %p2256_p13 }
  0x50   : > { %p2254_p11 = pneg %p2253_p3 }
  0x51   : > { %p2260_p7 = por %p2259_p5, %p2258_p2 }
  0x53   : > { %p2261_p10 = pnand %p2260_p7, %p2254_p11 }
  0x55   : > { %2264 = shalt.err (!%p2261_p10)
}
  0x56   : > { %s2265_s4 = scalar_lea.vmem %s2519_s25, 256  ;;  %s2340_s11 = smov [#allocation7]  }
  0x57   : > { %p2266_p0 = scmp.ne.s32.totalorder %s2519_s25, %s2265_s4  ;;  %s2270_s19 = sshll.u32 %s2340_s11, 4  ;;  %s2271_s19 = int_to_ptr.vmem [resolvable:$false] %s2270_s19 }
  0x58   : > { %s2272_s18 = scalar_lea.vmem %s2271_s19, 512  ;;  %p2273_p9 = scmp.lt.s32.totalorder %s2519_s25, %s2271_s19 }
  0x59   : > { %p2268_p4 = pnand %p2266_p0, %p2437_p12  ;;  %p2274_p3 = scmp.lt.s32.totalorder %s2272_s18, %s2265_s4 }
  0x5b   : > { %p2269_p6 = pneg %p2268_p4  ;;  %p2275_p13 = por %p2274_p3, %p2273_p9 }
  0x5d   : > { %p2276_p1 = pnand %p2275_p13, %p2269_p6 }
  0x5f   : > { %2279 = shalt.err (!%p2276_p1)
}
  0x60   : > { %2108 = dma.hbm_to_vmem [thread:$0]  (!%p2412_p8), %s2517_s23, 256, %s2519_s25, %s2431_s5, %s2337_s28, %s2337_s28, %s2338_s30  }
  0x61   : > { %p4240_p12 = scmp.ne.s32.totalorder %s4238_s6, 0 }
  0x63   : > { %202 = sbr.rel (%p4240_p12) target bundleno = 2093 (0x82d), region = 32 }
  0x6a   : > { %s2549_s7 = sand.u32 1, %s2326_s13   ;;  %p4241_p11 = scmp.ne.s32.totalorder %s4233_s21, 0 }
  0x6b   : > { %s2065_s26 = smul.u32 48, %s2549_s7  ;;  %s205_s27 = scalar_lea.sflag [#allocation3], %s2549_s7 }
  0x6d   : > { %s2553_s8 = scalar_lea.vmem [#allocation2], %s2065_s26 }
  0x6e   : > { %2309 = dma.done.wait (%p4241_p11), %s205_s27, 768  }
  0x6f   : > { %2311 = vsyncadd (%p4241_p11), %s205_s27, 4294966528  ;;  %s213_s24 = sand.u32 1, %s2385_s16   ;;  %s2560_s28 = scalar_lea.vmem [#allocation5], %s2065_s26 }
  0x70   : > { %s214_s5 = scalar_lea.sflag [#allocation6], %s213_s24 }
  0x71   : > { %2313 = dma.done.wait (%p4241_p11), %s214_s5, 1024  }
  0x72   : > { %2315 = vsyncadd (%p4241_p11), %s214_s5, 4294966272  ;;  %v2567_v0 = vld [vmem:[%s2553_s8] sm:$0xff]  ;;  %s4230_s30 = smov 16   ;;  %v2577_v2 = vld [vmem:[%s2553_s8 + $0x8] sm:$0xff]  ;;  %vm281_vm0 = vcmask 1047680   ;;  %s4228_s21 = smov 127  }
  0x73   : > { %v2570_v1 = vld [vmem:[%s2560_s28] sm:$0xff]  ;;  %282 = vrot.lane.b32.xlu0 %v2567_v0, %s4230_s30  ;;  %v2580_v3 = vld [vmem:[%s2560_s28 + $0x8] sm:$0xff]  ;;  %v2587_v4 = vld [vmem:[%s2553_s8 + $0x10] sm:$0xff]  ;;  %s2343_s6 = smov 113   ;;  %vm267_vm7 = vcmask 130048   ;;  %s2045_s25 = sshll.u32 %s2549_s7, 4 }
  0x74   : > { %342 = vrot.lane.b32.xlu1 %v2570_v1, %s4230_s30  ;;  %v2590_v5 = vld [vmem:[%s2553_s8 + $0x18] sm:$0xff]  ;;  %v2597_v6 = vld [vmem:[%s2560_s28 + $0x10] sm:$0xff]  ;;  %v2607_v8 = vld [vmem:[%s2553_s8 + $0x20] sm:$0xff]  ;;  %s226_s23 = scalar_lea.vmem [#allocation7], %s2045_s25  ;;  %s2344_s9 = smov 0.0  }
  0x75   : > { %v2600_v7 = vld [vmem:[%s2560_s28 + $0x18] sm:$0xff]  ;;  %v2610_v9 = vld [vmem:[%s2553_s8 + $0x28] sm:$0xff]  ;;  %v2617_v10 = vld [vmem:[%s2560_s28 + $0x20] sm:$0xff]  ;;  %p4321_p8 = scmp.eq.s32.totalorder %s2385_s16, 0  ;;  %p2111_p5 = scmp.eq.s32.totalorder %s2385_s16, 1 }
  0x76   : > { %v2620_v11 = vld [vmem:[%s2560_s28 + $0x28] sm:$0xff] }
  0x77   : > { %285 = vrot.lane.b32.xlu0 %v2577_v2, %s4230_s30  ;;  %2093 = sst [smem:[#allocation8]] (%p4321_p8), %s2344_s9  ;;  %p4322_p2 = pmov %p4321_p8 }
  0x78   : > { %345 = vrot.lane.b32.xlu1 %v2580_v3, %s4230_s30 }
  0x79   : > { %2094 = sst [smem:[#allocation8 + $0x1]] (%p4322_p2), %s2344_s9 }
  0x7b   : > { %670 = vrot.lane.b32.xlu0 %v2587_v4, %s4230_s30 }
  0x7c   : > { %673 = vrot.lane.b32.xlu1 %v2590_v5, %s4230_s30 }
  0x7f   : > { %722 = vrot.lane.b32.xlu0 %v2597_v6, %s4230_s30 }
  0x80   : > { %725 = vrot.lane.b32.xlu1 %v2600_v7, %s4230_s30 }
  0x83   : > { %1050 = vrot.lane.b32.xlu0 %v2607_v8, %s4230_s30 }
  0x84   : > { %1053 = vrot.lane.b32.xlu1 %v2610_v9, %s4230_s30 }
  0x87   : > { %1102 = vrot.lane.b32.xlu0 %v2617_v10, %s4230_s30 }
  0x88   : > { %1105 = vrot.lane.b32.xlu1 %v2620_v11, %s4230_s30 }
  0xe5   : > { %v283_v12 = vpop.permute.xlu0 %282 }
  0xe6   : > { %v343_v13 = vpop.permute.xlu1 %342  ;;  %v284_v14 = vsel %vm281_vm0, %v283_v12, %v2567_v0 }
  0xe7   : > { %288 = vrot.lane.b32.xlu0 %v284_v14, %s4230_s30  ;;  %v344_v15 = vsel %vm281_vm0, %v343_v13, %v2570_v1 }
  0xe9   : > { %v286_v16 = vpop.permute.xlu0 %285 }
  0xea   : > { %v346_v17 = vpop.permute.xlu1 %345  ;;  %v287_v18 = vsel %vm281_vm0, %v286_v16, %v2577_v2 }
  0xeb   : > { %348 = vrot.lane.b32.xlu0 %v344_v15, %s4230_s30  ;;  %290 = vrot.lane.b32.xlu1 %v287_v18, %s4230_s30  ;;  %v347_v19 = vsel %vm281_vm0, %v346_v17, %v2580_v3 }
  0xed   : > { %v671_v20 = vpop.permute.xlu0 %670 }
  0xee   : > { %v674_v21 = vpop.permute.xlu1 %673  ;;  %v672_v22 = vsel %vm281_vm0, %v671_v20, %v2587_v4 }
  0xef   : > { %350 = vrot.lane.b32.xlu1 %v347_v19, %s4230_s30  ;;  %676 = vrot.lane.b32.xlu0 %v672_v22, %s4230_s30  ;;  %v675_v23 = vsel %vm281_vm0, %v674_v21, %v2590_v5 }
  0xf1   : > { %v723_v24 = vpop.permute.xlu0 %722 }
  0xf2   : > { %v726_v25 = vpop.permute.xlu1 %725  ;;  %v724_v26 = vsel %vm281_vm0, %v723_v24, %v2597_v6 }
  0xf3   : > { %678 = vrot.lane.b32.xlu1 %v675_v23, %s4230_s30  ;;  %728 = vrot.lane.b32.xlu0 %v724_v26, %s4230_s30  ;;  %v727_v27 = vsel %vm281_vm0, %v726_v25, %v2600_v7 }
  0xf5   : > { %v1051_v28 = vpop.permute.xlu0 %1050 }
  0xf6   : > { %v1054_v29 = vpop.permute.xlu1 %1053  ;;  %v1052_v30 = vsel %vm281_vm0, %v1051_v28, %v2607_v8 }
  0xf7   : > { %730 = vrot.lane.b32.xlu1 %v727_v27, %s4230_s30  ;;  %1056 = vrot.lane.b32.xlu0 %v1052_v30, %s4230_s30  ;;  %v1055_v31 = vsel %vm281_vm0, %v1054_v29, %v2610_v9 }
  0xf9   : > { %v1103_v32 = vpop.permute.xlu0 %1102 }
  0xfa   : > { %v1106_v33 = vpop.permute.xlu1 %1105  ;;  %v1104_v34 = vsel %vm281_vm0, %v1103_v32, %v2617_v10 }
  0xfb   : > { %1058 = vrot.lane.b32.xlu1 %v1055_v31, %s4230_s30  ;;  %1108 = vrot.lane.b32.xlu0 %v1104_v34, %s4230_s30  ;;  %v1107_v35 = vsel %vm281_vm0, %v1106_v33, %v2620_v11 }
  0xff   : > { %1110 = vrot.lane.b32.xlu1 %v1107_v35, %s4230_s30 }
 0x159   : > { %v289_v36 = vpop.permute.xlu0 %288 }
 0x15a   : > { %v2664_v37 = vsel %vm281_vm0, %v289_v36, %v2567_v0 }
 0x15b   : > { %297 = vrot.lane.b32.xlu0 %v2664_v37, %s4228_s21 }
 0x15d   : > { %v291_v38 = vpop.permute.xlu1 %290  ;;  %v349_v39 = vpop.permute.xlu0 %348 }
 0x15e   : > { %v2670_v40 = vsel %vm281_vm0, %v291_v38, %v2577_v2  ;;  %v2674_v41 = vsel %vm281_vm0, %v349_v39, %v2570_v1 }
 0x15f   : > { %299 = vrot.lane.b32.xlu1 %v2670_v40, %s4228_s21  ;;  %356 = vrot.lane.b32.xlu0 %v2674_v41, %s4228_s21 }
 0x161   : > { %v351_v42 = vpop.permute.xlu1 %350  ;;  %v677_v43 = vpop.permute.xlu0 %676 }
 0x162   : > { %v2682_v44 = vsel %vm281_vm0, %v351_v42, %v2580_v3  ;;  %v2686_v45 = vsel %vm281_vm0, %v677_v43, %v2587_v4 }
 0x163   : > { %358 = vrot.lane.b32.xlu1 %v2682_v44, %s4228_s21  ;;  %684 = vrot.lane.b32.xlu0 %v2686_v45, %s4228_s21 }
 0x165   : > { %v679_v46 = vpop.permute.xlu1 %678  ;;  %v729_v47 = vpop.permute.xlu0 %728 }
 0x166   : > { %v2694_v48 = vsel %vm281_vm0, %v679_v46, %v2590_v5  ;;  %v2698_v49 = vsel %vm281_vm0, %v729_v47, %v2597_v6 }
 0x167   : > { %686 = vrot.lane.b32.xlu1 %v2694_v48, %s4228_s21  ;;  %736 = vrot.lane.b32.xlu0 %v2698_v49, %s4228_s21 }
 0x169   : > { %v731_v50 = vpop.permute.xlu1 %730  ;;  %v1057_v51 = vpop.permute.xlu0 %1056 }
 0x16a   : > { %v2706_v52 = vsel %vm281_vm0, %v731_v50, %v2600_v7  ;;  %v2710_v53 = vsel %vm281_vm0, %v1057_v51, %v2607_v8 }
 0x16b   : > { %738 = vrot.lane.b32.xlu1 %v2706_v52, %s4228_s21  ;;  %1064 = vrot.lane.b32.xlu0 %v2710_v53, %s4228_s21 }
 0x16d   : > { %v1059_v54 = vpop.permute.xlu1 %1058  ;;  %v1109_v55 = vpop.permute.xlu0 %1108 }
 0x16e   : > { %v2718_v56 = vsel %vm281_vm0, %v1059_v54, %v2610_v9  ;;  %v2722_v57 = vsel %vm281_vm0, %v1109_v55, %v2617_v10 }
 0x16f   : > { %1066 = vrot.lane.b32.xlu1 %v2718_v56, %s4228_s21  ;;  %1116 = vrot.lane.b32.xlu0 %v2722_v57, %s4228_s21 }
 0x171   : > { %v1111_v58 = vpop.permute.xlu1 %1110 }
 0x172   : > { %v2730_v59 = vsel %vm281_vm0, %v1111_v58, %v2620_v11 }
 0x173   : > { %1118 = vrot.lane.b32.xlu1 %v2730_v59, %s4228_s21 }
 0x1cd   : > { %v2734_v60 = vpop.permute.xlu0 %297 }
 0x1ce   : > { %4242 = vst [vmem:[#allocation12_spill] sm:$0xff] %v2734_v60  ;;  %v615_v16 = vsub.f32 %v2567_v0, %v2734_v60 }
 0x1d0   : > { %v617_v24 = vand.u32 2147483647, %v615_v16 }
 0x1d1   : > { %v2736_v61 = vpop.permute.xlu1 %299  ;;  %v2738_v62 = vpop.permute.xlu0 %356 }
 0x1d2   : > { %4243 = vst [vmem:[#allocation13_spill] sm:$0xff] %v2736_v61  ;;  %4244 = vst [vmem:[#allocation14_spill] sm:$0xff] %v2738_v62  ;;  %v616_v20 = vsub.f32 %v2577_v2, %v2736_v61  ;;  %v631_v21 = vsub.f32 %v2570_v1, %v2738_v62 }
 0x1d4   : > { %v618_v31 = vand.u32 2147483647, %v616_v20  ;;  %v633_v32 = vand.u32 2147483647, %v631_v21 }
 0x1d5   : > { %v2740_v63 = vpop.permute.xlu1 %358  ;;  %v2742_v12 = vpop.permute.xlu0 %684 }
 0x1d6   : > { %4245 = vst [vmem:[#allocation15_spill] sm:$0xff] %v2740_v63  ;;  %4246 = vst [vmem:[#allocation16_spill] sm:$0xff] %v2742_v12  ;;  %v995_v13 = vsub.f32 %v2587_v4, %v2742_v12  ;;  %v632_v35 = vsub.f32 %v2580_v3, %v2740_v63 }
 0x1d8   : > { %v997_v18 = vand.u32 2147483647, %v995_v13  ;;  %v634_v55 = vand.u32 2147483647, %v632_v35  ;;  %v2821_v35 = vmul.f32 %v2570_v1, %v2570_v1 }
 0x1d9   : > { %v2746_v14 = vpop.permute.xlu1 %686  ;;  %v2748_v15 = vpop.permute.xlu0 %736 }
 0x1da   : > { %4247 = vst [vmem:[#allocation17_spill] sm:$0xff] %v2746_v14  ;;  %v996_v17 = vsub.f32 %v2590_v5, %v2746_v14  ;;  %v1011_v19 = vsub.f32 %v2597_v6, %v2748_v15  ;;  %v999_v28 = vadd.f32 %v997_v18, %v617_v24  ;;  %v2796_v24 = vmul.f32 %v2567_v0, %v2567_v0 }
 0x1dc   : > { %v998_v26 = vand.u32 2147483647, %v996_v17  ;;  %v1013_v29 = vand.u32 2147483647, %v1011_v19 }
 0x1dd   : > { %v2760_v22 = vpop.permute.xlu1 %738  ;;  %v2762_v23 = vpop.permute.xlu0 %1064 }
 0x1de   : > { %v1375_v25 = vsub.f32 %v2607_v8, %v2762_v23  ;;  %v1012_v27 = vsub.f32 %v2600_v7, %v2760_v22  ;;  %v1000_v42 = vadd.f32 %v998_v26, %v618_v31  ;;  %v1015_v46 = vadd.f32 %v1013_v29, %v633_v32 }
 0x1df   : > { %v2806_v26 = vmul.f32 %v2577_v2, %v2577_v2 }
 0x1e0   : > { %v1377_v30 = vand.u32 2147483647, %v1375_v25  ;;  %v1014_v43 = vand.u32 2147483647, %v1012_v27 }
 0x1e1   : > { %v2768_v33 = vpop.permute.xlu1 %1066  ;;  %v2770_v34 = vpop.permute.xlu0 %1116 }
 0x1e2   : > { %v1376_v36 = vsub.f32 %v2610_v9, %v2768_v33  ;;  %v1391_v38 = vsub.f32 %v2617_v10, %v2770_v34  ;;  %v1379_v39 = vadd.f32 %v1377_v30, %v999_v28  ;;  %v1016_v17 = vadd.f32 %v1014_v43, %v634_v55 }
 0x1e3   : > { %v2842_v43 = vmul.f32 %v2590_v5, %v2590_v5  ;;  %v2866_v55 = vmul.f32 %v2610_v9, %v2610_v9 }
 0x1e4   : > { %v1378_v47 = vand.u32 2147483647, %v1376_v36  ;;  %v1393_v50 = vand.u32 2147483647, %v1391_v38  ;;  %v2778_v51 = vmul.f32 0.33333334, %v1379_v39  ;;  %v2830_v39 = vmul.f32 %v2580_v3, %v2580_v3 }
 0x1e5   : > { %v2780_v54 = vpop.permute.xlu1 %1118  ;;  %4252 = vst [vmem:[#allocation22_spill] sm:$0xff] %v2842_v43  ;;  %4255 = vst [vmem:[#allocation25_spill] sm:$0xff] %v2866_v55 }
 0x1e6   : > { %4248 = vst [vmem:[#allocation18_spill] sm:$0xff] %v2780_v54  ;;  %v1395_v58 = vadd.f32 %v1393_v50, %v1015_v46  ;;  %v1392_v13 = vsub.f32 %v2620_v11, %v2780_v54  ;;  %1415 = vrot.lane.b32.xlu0 %v2778_v51, %s4230_s30  ;;  %v1380_v16 = vadd.f32 %v1378_v47, %v1000_v42 }
 0x1e7   : > { %v2834_v42 = vmul.f32 %v2587_v4, %v2587_v4  ;;  %v2846_v46 = vmul.f32 %v2597_v6, %v2597_v6  ;;  %v2854_v47 = vmul.f32 %v2600_v7, %v2600_v7  ;;  %v2858_v50 = vmul.f32 %v2607_v8, %v2607_v8 }
 0x1e8   : > { %v2786_v18 = vmul.f32 0.33333334, %v1395_v58  ;;  %v1394_v19 = vand.u32 2147483647, %v1392_v13  ;;  %v2788_v20 = vmul.f32 0.33333334, %v1380_v16  ;;  %v2870_v58 = vmul.f32 %v2617_v10, %v2617_v10 }
 0x1e9   : > { %4251 = vst [vmem:[#allocation21_spill] sm:$0xff] %v2834_v42  ;;  %4253 = vst [vmem:[#allocation23_spill] sm:$0xff] %v2854_v47  ;;  %v2878_v13 = vmul.f32 %v2620_v11, %v2620_v11  ;;  %v2882_v16 = vmul.f32 %v2570_v1, %v2567_v0 }
 0x1ea   : > { %4249 = vst [vmem:[#allocation19_spill] sm:$0xff] %v2786_v18  ;;  %v1396_v21 = vadd.f32 %v1394_v19, %v1016_v17  ;;  %1418 = vrot.lane.b32.xlu1 %v2788_v20, %s4230_s30  ;;  %1445 = vrot.lane.b32.xlu0 %v2786_v18, %s4230_s30  ;;  %4254 = vst [vmem:[#allocation24_spill] sm:$0xff] %v2858_v50  ;;  %v2890_v17 = vmul.f32 %v2580_v3, %v2577_v2 }
 0x1eb   : > { %v2894_v19 = vmul.f32 %v2597_v6, %v2587_v4 }
 0x1ec   : > { %v2798_v25 = vmul.f32 0.33333334, %v1396_v21  ;;  %v2902_v21 = vmul.f32 %v2600_v7, %v2590_v5 }
 0x1ed   : > { %4256 = vst [vmem:[#allocation26_spill] sm:$0xff] %v2894_v19 }
 0x1ee   : > { %4250 = vst [vmem:[#allocation20_spill] sm:$0xff] %v2798_v25  ;;  %1448 = vrot.lane.b32.xlu1 %v2798_v25, %s4230_s30  ;;  %396 = vrot.lane.b32.xlu0 %v2796_v24, %s4230_s30 }
 0x1f2   : > { %399 = vrot.lane.b32.xlu1 %v2806_v26, %s4230_s30 }
 0x258   : > { %v1416_v27 = vpop.permute.xlu0 %1415 }
 0x259   : > { %v1417_v28 = vsel %vm281_vm0, %v1416_v27, %v2778_v51  ;;  %v2906_v27 = vmul.f32 %v2617_v10, %v2607_v8 }
 0x25a   : > { %1421 = vrot.lane.b32.xlu0 %v1417_v28, %s4230_s30  ;;  %v2914_v28 = vmul.f32 %v2620_v11, %v2610_v9 }
 0x25b   : > { %4257 = vst [vmem:[#allocation27_spill] sm:$0xff] %v2906_v27 }
 0x25c   : > { %v1419_v29 = vpop.permute.xlu1 %1418  ;;  %v1446_v30 = vpop.permute.xlu0 %1445  ;;  %4258 = vst [vmem:[#allocation28_spill] sm:$0xff] %v2914_v28 }
 0x25d   : > { %v1420_v31 = vsel %vm281_vm0, %v1419_v29, %v2788_v20  ;;  %v1447_v32 = vsel %vm281_vm0, %v1446_v30, %v2786_v18 }
 0x25e   : > { %1423 = vrot.lane.b32.xlu1 %v1420_v31, %s4230_s30  ;;  %1451 = vrot.lane.b32.xlu0 %v1447_v32, %s4230_s30 }
 0x260   : > { %v1449_v36 = vpop.permute.xlu1 %1448  ;;  %v397_v29 = vpop.permute.xlu0 %396 }
 0x261   : > { %v1450_v38 = vsel %vm281_vm0, %v1449_v36, %v2798_v25  ;;  %v398_v30 = vsel %vm281_vm0, %v397_v29, %v2796_v24 }
 0x262   : > { %1453 = vrot.lane.b32.xlu1 %v1450_v38, %s4230_s30  ;;  %454 = vrot.lane.b32.xlu0 %v2821_v35, %s4230_s30 }
 0x264   : > { %v400_v31 = vpop.permute.xlu1 %399 }
 0x265   : > { %v401_v32 = vsel %vm281_vm0, %v400_v31, %v2806_v26 }
 0x266   : > { %457 = vrot.lane.b32.xlu1 %v2830_v39, %s4230_s30  ;;  %776 = vrot.lane.b32.xlu0 %v2834_v42, %s4230_s30 }
 0x26a   : > { %779 = vrot.lane.b32.xlu1 %v2842_v43, %s4230_s30  ;;  %834 = vrot.lane.b32.xlu0 %v2846_v46, %s4230_s30 }
 0x26e   : > { %837 = vrot.lane.b32.xlu1 %v2854_v47, %s4230_s30  ;;  %1156 = vrot.lane.b32.xlu0 %v2858_v50, %s4230_s30 }
 0x272   : > { %1159 = vrot.lane.b32.xlu1 %v2866_v55, %s4230_s30  ;;  %1214 = vrot.lane.b32.xlu0 %v2870_v58, %s4230_s30 }
 0x276   : > { %1217 = vrot.lane.b32.xlu1 %v2878_v13, %s4230_s30  ;;  %512 = vrot.lane.b32.xlu0 %v2882_v16, %s4230_s30 }
 0x27a   : > { %515 = vrot.lane.b32.xlu1 %v2890_v17, %s4230_s30  ;;  %892 = vrot.lane.b32.xlu0 %v2894_v19, %s4230_s30 }
 0x27e   : > { %895 = vrot.lane.b32.xlu1 %v2902_v21, %s4230_s30  ;;  %1272 = vrot.lane.b32.xlu0 %v2906_v27, %s4230_s30 }
 0x282   : > { %1275 = vrot.lane.b32.xlu1 %v2914_v28, %s4230_s30  ;;  %402 = vrot.lane.b32.xlu0 %v398_v30, %s4230_s30 }
 0x286   : > { %404 = vrot.lane.b32.xlu1 %v401_v32, %s4230_s30 }
 0x2cc   : > { %v1422_v36 = vpop.permute.xlu0 %1421 }
 0x2d0   : > { %v1424_v38 = vpop.permute.xlu1 %1423  ;;  %v1452_v14 = vpop.permute.xlu0 %1451 }
 0x2d4   : > { %v1454_v12 = vpop.permute.xlu1 %1453  ;;  %v455_v62 = vpop.permute.xlu0 %454 }
 0x2d5   : > { %v456_v63 = vsel %vm281_vm0, %v455_v62, %v2821_v35 }
 0x2d6   : > { %460 = vrot.lane.b32.xlu0 %v456_v63, %s4230_s30 }
 0x2d8   : > { %v458_v29 = vpop.permute.xlu1 %457  ;;  %v777_v60 = vpop.permute.xlu0 %776 }
 0x2d9   : > { %v459_v30 = vsel %vm281_vm0, %v458_v29, %v2830_v39  ;;  %v778_v31 = vsel %vm281_vm0, %v777_v60, %v2834_v42 }
 0x2da   : > { %462 = vrot.lane.b32.xlu1 %v459_v30, %s4230_s30  ;;  %782 = vrot.lane.b32.xlu0 %v778_v31, %s4230_s30 }
 0x2dc   : > { %v780_v32 = vpop.permute.xlu1 %779  ;;  %v835_v61 = vpop.permute.xlu0 %834 }
 0x2dd   : > { %v781_v54 = vsel %vm281_vm0, %v780_v32, %v2842_v43  ;;  %v836_v62 = vsel %vm281_vm0, %v835_v61, %v2846_v46 }
 0x2de   : > { %784 = vrot.lane.b32.xlu1 %v781_v54, %s4230_s30  ;;  %840 = vrot.lane.b32.xlu0 %v836_v62, %s4230_s30  ;;  %v1425_v54 = vsel %vm281_vm0, %v1422_v36, %v2778_v51 }
 0x2e0   : > { %v838_v63 = vpop.permute.xlu1 %837  ;;  %v1157_v29 = vpop.permute.xlu0 %1156 }
 0x2e1   : > { %v839_v60 = vsel %vm281_vm0, %v838_v63, %v2854_v47  ;;  %v1158_v30 = vsel %vm281_vm0, %v1157_v29, %v2858_v50  ;;  %v1426_v29 = vsel %vm281_vm0, %v1424_v38, %v2788_v20 }
 0x2e2   : > { %842 = vrot.lane.b32.xlu1 %v839_v60, %s4230_s30  ;;  %1162 = vrot.lane.b32.xlu0 %v1158_v30, %s4230_s30  ;;  %v1455_v60 = vsel %vm281_vm0, %v1452_v14, %v2786_v18 }
 0x2e4   : > { %v1160_v31 = vpop.permute.xlu1 %1159  ;;  %v1215_v32 = vpop.permute.xlu0 %1214 }
 0x2e5   : > { %v1161_v61 = vsel %vm281_vm0, %v1160_v31, %v2866_v55  ;;  %v1216_v36 = vsel %vm281_vm0, %v1215_v32, %v2870_v58  ;;  %v1456_v31 = vsel %vm281_vm0, %v1454_v12, %v2798_v25 }
 0x2e6   : > { %1164 = vrot.lane.b32.xlu1 %v1161_v61, %s4230_s30  ;;  %1429 = vrot.lane.b32.xlu0 %v1425_v54, %s2343_s6 }
 0x2e8   : > { %v1218_v62 = vpop.permute.xlu1 %1217  ;;  %v513_v63 = vpop.permute.xlu0 %512 }
 0x2e9   : > { %v1219_v38 = vsel %vm281_vm0, %v1218_v62, %v2878_v13  ;;  %v514_v14 = vsel %vm281_vm0, %v513_v63, %v2882_v16 }
 0x2ea   : > { %1431 = vrot.lane.b32.xlu1 %v1426_v29, %s2343_s6  ;;  %1459 = vrot.lane.b32.xlu0 %v1455_v60, %s2343_s6 }
 0x2ec   : > { %v516_v30 = vpop.permute.xlu1 %515  ;;  %v893_v61 = vpop.permute.xlu0 %892 }
 0x2ed   : > { %v517_v54 = vsel %vm281_vm0, %v516_v30, %v2890_v17  ;;  %v894_v12 = vsel %vm281_vm0, %v893_v61, %v2894_v19  ;;  %v1381_v30 = vrot.slane %v2607_v8, 1 }
 0x2ee   : > { %1461 = vrot.lane.b32.xlu1 %v1456_v31, %s2343_s6  ;;  %1220 = vrot.lane.b32.xlu0 %v1216_v36, %s4230_s30  ;;  %v1382_v31 = vrot.slane %v2610_v9, 1 }
 0x2f0   : > { %v896_v32 = vpop.permute.xlu1 %895  ;;  %v1273_v29 = vpop.permute.xlu0 %1272 }
 0x2f1   : > { %v897_v62 = vsel %vm281_vm0, %v896_v32, %v2902_v21  ;;  %v1274_v63 = vsel %vm281_vm0, %v1273_v29, %v2906_v27  ;;  %v638_v32 = vrot.slane %v2580_v3, 1 }
 0x2f2   : > { %1222 = vrot.lane.b32.xlu1 %v1219_v38, %s4230_s30  ;;  %518 = vrot.lane.b32.xlu0 %v514_v14, %s4230_s30  ;;  %v637_v14 = vrot.slane %v2570_v1, 1 }
 0x2f4   : > { %v1276_v60 = vpop.permute.xlu1 %1275 }
 0x2f5   : > { %v1277_v36 = vsel %vm281_vm0, %v1276_v60, %v2914_v28 }
 0x2f6   : > { %520 = vrot.lane.b32.xlu1 %v517_v54, %s4230_s30  ;;  %898 = vrot.lane.b32.xlu0 %v894_v12, %s4230_s30  ;;  %v1017_v54 = vrot.slane %v2597_v6, 1  ;;  %v1018_v12 = vrot.slane %v2600_v7, 1 }
 0x2fa   : > { %900 = vrot.lane.b32.xlu1 %v897_v62, %s4230_s30  ;;  %1278 = vrot.lane.b32.xlu0 %v1274_v63, %s4230_s30 }
 0x2fe   : > { %1280 = vrot.lane.b32.xlu1 %v1277_v36, %s4230_s30  ;;  %303 = vrot.lane.b32.xlu0 %v2664_v37, %s2343_s6  ;;  %v403_v37 = vpop.permute.xlu0 %402 }
 0x302   : > { %305 = vrot.lane.b32.xlu1 %v2670_v40, %s2343_s6  ;;  %362 = vrot.lane.b32.xlu0 %v2674_v41, %s2343_s6  ;;  %v3008_v40 = vsel %vm281_vm0, %v403_v37, %v2796_v24  ;;  %v405_v41 = vpop.permute.xlu1 %404 }
 0x306   : > { %364 = vrot.lane.b32.xlu1 %v2682_v44, %s2343_s6  ;;  %690 = vrot.lane.b32.xlu0 %v2686_v45, %s2343_s6  ;;  %v3016_v44 = vsel %vm281_vm0, %v405_v41, %v2806_v26  ;;  %v4194_v45 = vlaneseq }
 0x30a   : > { %692 = vrot.lane.b32.xlu1 %v2694_v48, %s2343_s6  ;;  %742 = vrot.lane.b32.xlu0 %v2698_v49, %s2343_s6  ;;  %v3021_v48 = vshrl.u32 %v4194_v45, 7  ;;  %v621_v49 = vrot.slane %v2567_v0, 1 }
 0x30c   : > { %vm325_vm1 = vcmp.lt.s32.totalorder %v3021_v48, 7  ;;  %vm320_vm2 = vcmp.lt.s32.totalorder %v3021_v48, 1  ;;  %vm328_vm6 = vcmp.eq.s32.totalorder %v3021_v48, 0 }
 0x30d   : > { %v1383_v63 = vsel %vm325_vm1, %v1381_v30, %v1382_v31  ;;  %v1384_v37 = vsel %vm325_vm1, %v1382_v31, %v1381_v30  ;;  %v639_v41 = vsel %vm325_vm1, %v637_v14, %v638_v32 }
 0x30e   : > { %744 = vrot.lane.b32.xlu1 %v2706_v52, %s2343_s6  ;;  %1070 = vrot.lane.b32.xlu0 %v2710_v53, %s2343_s6  ;;  %v622_v52 = vrot.slane %v2577_v2, 1  ;;  %v1001_v53 = vrot.slane %v2587_v4, 1  ;;  %v641_v31 = vsub.f32 %v2570_v1, %v639_v41 }
 0x310   : > { %v624_v38 = vsel %vm325_vm1, %v622_v52, %v621_v49 }
 0x311   : > { %v626_v36 = vsub.f32 %v2577_v2, %v624_v38 }
 0x312   : > { %1072 = vrot.lane.b32.xlu1 %v2718_v56, %s2343_s6  ;;  %1122 = vrot.lane.b32.xlu0 %v2722_v57, %s2343_s6  ;;  %v1002_v56 = vrot.slane %v2590_v5, 1  ;;  %v623_v57 = vsel %vm325_vm1, %v621_v49, %v622_v52  ;;  %v1397_v49 = vrot.slane %v2617_v10, 1  ;;  %v1398_v52 = vrot.slane %v2620_v11, 1 }
 0x313   : > { %v625_v29 = vsub.f32 %v2567_v0, %v623_v57  ;;  %v1019_v0 = vsel %vm325_vm1, %v1017_v54, %v1018_v12  ;;  %v628_v30 = vand.u32 2147483647, %v626_v36 }
 0x314   : > { %v1004_v61 = vsel %vm325_vm1, %v1002_v56, %v1001_v53  ;;  %v1399_v38 = vsel %vm325_vm1, %v1397_v49, %v1398_v52 }
 0x315   : > { %v1006_v60 = vsub.f32 %v2590_v5, %v1004_v61  ;;  %v1020_v5 = vsel %vm325_vm1, %v1018_v12, %v1017_v54  ;;  %v627_v2 = vand.u32 2147483647, %v625_v29  ;;  %v1021_v61 = vsub.f32 %v2597_v6, %v1019_v0 }
 0x316   : > { %1124 = vrot.lane.b32.xlu1 %v2730_v59, %s2343_s6  ;;  %410 = vrot.lane.b32.xlu0 %v3008_v40, %s4228_s21  ;;  %v1003_v59 = vsel %vm325_vm1, %v1001_v53, %v1002_v56  ;;  %v1385_v56 = vsub.f32 %v2607_v8, %v1383_v63  ;;  %v1400_v54 = vsel %vm325_vm1, %v1398_v52, %v1397_v49 }
 0x317   : > { %v1005_v62 = vsub.f32 %v2587_v4, %v1003_v59  ;;  %v640_v4 = vsel %vm325_vm1, %v638_v32, %v637_v14  ;;  %v1008_v57 = vand.u32 2147483647, %v1006_v60  ;;  %v1386_v59 = vsub.f32 %v2610_v9, %v1384_v37 }
 0x318   : > { %v642_v14 = vsub.f32 %v2580_v3, %v640_v4  ;;  %v1022_v32 = vsub.f32 %v2600_v7, %v1020_v5  ;;  %v1387_v29 = vand.u32 2147483647, %v1385_v56  ;;  %v643_v60 = vand.u32 2147483647, %v641_v31 }
 0x319   : > { %v1007_v53 = vand.u32 2147483647, %v1005_v62  ;;  %v1388_v62 = vand.u32 2147483647, %v1386_v59  ;;  %v1010_v63 = vadd.f32 %v1008_v57, %v628_v30  ;;  %v1401_v36 = vsub.f32 %v2617_v10, %v1399_v38 }
 0x31a   : > { %412 = vrot.lane.b32.xlu1 %v3016_v44, %s4228_s21  ;;  %v1023_v37 = vand.u32 2147483647, %v1021_v61  ;;  %v644_v41 = vand.u32 2147483647, %v642_v14  ;;  %v1024_v0 = vand.u32 2147483647, %v1022_v32  ;;  %v1402_v45 = vsub.f32 %v2620_v11, %v1400_v54 }
 0x31b   : > { %v1009_v12 = vadd.f32 %v1007_v53, %v627_v2  ;;  %v1390_v4 = vadd.f32 %v1388_v62, %v1010_v63  ;;  %v1403_v52 = vand.u32 2147483647, %v1401_v36  ;;  %v4259_v38 = vlaneseq }
 0x31c   : > { %v1025_v49 = vadd.f32 %v1023_v37, %v643_v60  ;;  %v1026_v2 = vadd.f32 %v1024_v0, %v644_v41  ;;  %v1404_v53 = vand.u32 2147483647, %v1402_v45  ;;  %v3086_v32 = vadd.s32 8, %v3021_v48 }
 0x31d   : > { %v1389_v3 = vadd.f32 %v1387_v29, %v1009_v12  ;;  %v1410_v30 = vmul.f32 0.33333334, %v1390_v4  ;;  %v3083_v14 = vand.u32 127, %v4259_v38 }
 0x31e   : > { %v1405_v31 = vadd.f32 %v1403_v52, %v1025_v49  ;;  %v1406_v61 = vadd.f32 %v1404_v53, %v1026_v2  ;;  %vm333_vm4 = vcmp.eq.s32.totalorder %v3086_v32, 15  ;;  %vm1894_vm8 = vcmp.lt.s32.totalorder %v3086_v32, 15 }
 0x31f   : > { %v1409_v59 = vmul.f32 0.33333334, %v1389_v3  ;;  %v1438_v45 = vrot.slane %v1410_v30, 7  ;;  %vm311_vm3 = vcmp.eq.s32.totalorder %v3083_v14, 15  ;;  %vm294_vm5 = vcmp.eq.s32.totalorder %v3083_v14, 0 }
 0x320   : > { %v3092_v62 = vmul.f32 0.33333334, %v1405_v31  ;;  %v3094_v63 = vmul.f32 0.33333334, %v1406_v61  ;;  %vm1867_vm9 = vcmp.lt.s32.totalorder %v3083_v14, 15 }
 0x321   : > { %v1437_v29 = vrot.slane %v1409_v59, 7 }
 0x322   : > { %4260 = vst [vmem:[#allocation29_spill] sm:$0xff] %v3092_v62  ;;  %4261 = vst [vmem:[#allocation30_spill] sm:$0xff] %v3094_v63  ;;  %v1467_v41 = vrot.slane %v3092_v62, 7  ;;  %v1468_v0 = vrot.slane %v3094_v63, 7 }
 0x323   : > { %v1439_v37 = vsel %vm320_vm2, %v1437_v29, %v1438_v45 }
 0x324   : > { %v1442_v49 = vsel %vm333_vm4, %v1439_v37, %v1410_v30  ;;  %v1469_v53 = vsel %vm320_vm2, %v1467_v41, %v1468_v0 }
 0x325   : > { %v1472_v61 = vsel %vm333_vm4, %v1469_v53, %v3094_v63 }
 0x348   : > { %v3071_v1 = vpop.permute.xlu0 %460 }
 0x34c   : > { %v3074_v5 = vpop.permute.xlu1 %462  ;;  %v3076_v28 = vpop.permute.xlu0 %782 }
 0x350   : > { %v3078_v56 = vpop.permute.xlu1 %784  ;;  %v3080_v57 = vpop.permute.xlu0 %840 }
 0x354   : > { %v3088_v54 = vpop.permute.xlu1 %842  ;;  %v3090_v12 = vpop.permute.xlu0 %1162 }
 0x358   : > { %v3098_v60 = vpop.permute.xlu1 %1164  ;;  %v1430_v36 = vpop.permute.xlu0 %1429 }
 0x359   : > { %v1435_v3 = vsel %vm311_vm3, %v1430_v36, %v2778_v51 }
 0x35a   : > { %v3108_v4 = vadd.f32 %v1435_v3, %v1409_v59 }
 0x35c   : > { %v1432_v52 = vpop.permute.xlu1 %1431  ;;  %1475 = vrot.lane.b32.xlu0 %v3108_v4, %s4230_s30  ;;  %v1460_v2 = vpop.permute.xlu0 %1459  ;;  %v3143_v36 = vmul.f32 %v3108_v4, %v3108_v4 }
 0x35d   : > { %v1436_v31 = vsel %vm311_vm3, %v1432_v52, %v2788_v20  ;;  %v1465_v51 = vsel %vm311_vm3, %v1460_v2, %v2786_v18 }
 0x35e   : > { %v3122_v59 = vadd.f32 %v1442_v49, %v1436_v31  ;;  %v3125_v30 = vadd.f32 %v1465_v51, %v3092_v62  ;;  %v464_v51 = vsel %vm281_vm0, %v3071_v1, %v2821_v35  ;;  %v786_v62 = vsel %vm281_vm0, %v3076_v28, %v2834_v42 }
 0x360   : > { %v1462_v38 = vpop.permute.xlu1 %1461  ;;  %1478 = vrot.lane.b32.xlu1 %v3122_v59, %s4230_s30  ;;  %1527 = vrot.lane.b32.xlu0 %v3125_v30, %s4230_s30  ;;  %v3134_v20 = vpop.permute.xlu0 %1220  ;;  %v3155_v0 = vmul.f32 %v3122_v59, %v3122_v59  ;;  %v3159_v3 = vmul.f32 %v3125_v30, %v3125_v30 }
 0x361   : > { %v1466_v29 = vsel %vm311_vm3, %v1462_v38, %v2798_v25 }
 0x362   : > { %v3139_v45 = vadd.f32 %v1472_v61, %v1466_v29  ;;  %v3193_v29 = vmul.f32 %v3125_v30, %v3108_v4 }
 0x364   : > { %v3145_v37 = vpop.permute.xlu1 %1222  ;;  %1530 = vrot.lane.b32.xlu1 %v3139_v45, %s4230_s30  ;;  %1581 = vrot.lane.b32.xlu0 %v3143_v36, %s4230_s30  ;;  %v3151_v41 = vpop.permute.xlu0 %518  ;;  %v3171_v2 = vmul.f32 %v3139_v45, %v3139_v45  ;;  %v3207_v1 = vmul.f32 %v3139_v45, %v3122_v59 }
 0x368   : > { %v3161_v49 = vpop.permute.xlu1 %520  ;;  %1584 = vrot.lane.b32.xlu1 %v3155_v0, %s4230_s30  ;;  %1639 = vrot.lane.b32.xlu0 %v3159_v3, %s4230_s30  ;;  %v3167_v52 = vpop.permute.xlu0 %898 }
 0x36c   : > { %v3173_v53 = vpop.permute.xlu1 %900  ;;  %1642 = vrot.lane.b32.xlu1 %v3171_v2, %s4230_s30  ;;  %416 = vrot.lane.b32.xlu0 %v3008_v40, %s2343_s6  ;;  %v3179_v31 = vpop.permute.xlu0 %1278  ;;  %v465_v40 = vsel %vm281_vm0, %v3074_v5, %v2830_v39 }
 0x36d   : > { %4262 = vst [vmem:[#allocation31_spill] sm:$0xff] %v3173_v53  ;;  %4263 = vst [vmem:[#allocation32_spill] sm:$0xff] %v3179_v31  ;;  %v787_v31 = vsel %vm281_vm0, %v3078_v56, %v2842_v43 }
 0x370   : > { %v3184_v61 = vpop.permute.xlu1 %1280  ;;  %418 = vrot.lane.b32.xlu1 %v3016_v44, %s2343_s6  ;;  %468 = vrot.lane.b32.xlu0 %v464_v51, %s4228_s21  ;;  %v3189_v38 = vpop.permute.xlu0 %303 }
 0x371   : > { %4264 = vst [vmem:[#allocation33_spill] sm:$0xff] %v3184_v61 }
 0x374   : > { %v3198_v25 = vpop.permute.xlu1 %305  ;;  %470 = vrot.lane.b32.xlu1 %v465_v40, %s4228_s21  ;;  %1697 = vrot.lane.b32.xlu0 %v3193_v29, %s4230_s30  ;;  %v3203_v44 = vpop.permute.xlu0 %362 }
 0x378   : > { %v3209_v18 = vpop.permute.xlu1 %364  ;;  %1700 = vrot.lane.b32.xlu1 %v3207_v1, %s4230_s30  ;;  %474 = vrot.lane.b32.xlu0 %v464_v51, %s2343_s6  ;;  %v3214_v5 = vpop.permute.xlu0 %690 }
 0x37c   : > { %v3219_v63 = vpop.permute.xlu1 %692  ;;  %476 = vrot.lane.b32.xlu1 %v465_v40, %s2343_s6  ;;  %790 = vrot.lane.b32.xlu0 %v786_v62, %s4228_s21  ;;  %v743_v61 = vpop.permute.xlu0 %742  ;;  %v844_v40 = vsel %vm281_vm0, %v3080_v57, %v2846_v46 }
 0x37d   : > { %v748_v51 = vsel %vm294_vm5, %v2748_v15, %v743_v61  ;;  %v750_v27 = vsel %vm311_vm3, %v743_v61, %v2748_v15 }
 0x37e   : > { %v752_v42 = vadd.f32 %v2597_v6, %v748_v51  ;;  %v845_v6 = vsel %vm281_vm0, %v3088_v54, %v2854_v47 }
 0x380   : > { %792 = vrot.lane.b32.xlu1 %v787_v31, %s4228_s21  ;;  %v745_v28 = vpop.permute.xlu1 %744  ;;  %796 = vrot.lane.b32.xlu0 %v786_v62, %s2343_s6  ;;  %v1071_v43 = vpop.permute.xlu0 %1070  ;;  %v754_v62 = vadd.f32 %v752_v42, %v750_v27 }
 0x381   : > { %v749_v56 = vsel %vm294_vm5, %v2760_v22, %v745_v28  ;;  %v1076_v57 = vsel %vm294_vm5, %v2762_v23, %v1071_v43  ;;  %v1078_v42 = vsel %vm311_vm3, %v1071_v43, %v2762_v23  ;;  %v1167_v23 = vsel %vm281_vm0, %v3098_v60, %v2866_v55 }
 0x382   : > { %v753_v53 = vadd.f32 %v2600_v7, %v749_v56  ;;  %v756_v15 = vrot.slane %v754_v62, 7  ;;  %v1080_v27 = vadd.f32 %v2607_v8, %v1076_v57 }
 0x384   : > { %798 = vrot.lane.b32.xlu1 %v787_v31, %s2343_s6  ;;  %848 = vrot.lane.b32.xlu0 %v844_v40, %s4228_s21  ;;  %v1073_v51 = vpop.permute.xlu1 %1072  ;;  %v751_v31 = vsel %vm311_vm3, %v745_v28, %v2760_v22  ;;  %v1123_v61 = vpop.permute.xlu0 %1122  ;;  %v760_v22 = vrot.slane %v754_v62, 1  ;;  %v1082_v43 = vadd.f32 %v1080_v27, %v1078_v42 }
 0x385   : > { %v755_v7 = vadd.f32 %v753_v53, %v751_v31  ;;  %v1077_v54 = vsel %vm294_vm5, %v2768_v33, %v1073_v51  ;;  %v1166_v53 = vsel %vm281_vm0, %v3090_v12, %v2858_v50  ;;  %v1079_v8 = vsel %vm311_vm3, %v1073_v51, %v2768_v33 }
 0x386   : > { %v1081_v47 = vadd.f32 %v2610_v9, %v1077_v54  ;;  %v1128_v60 = vsel %vm294_vm5, %v2770_v34, %v1123_v61  ;;  %v1130_v31 = vsel %vm311_vm3, %v1123_v61, %v2770_v34  ;;  %v1084_v27 = vrot.slane %v1082_v43, 7 }
 0x387   : > { %v757_v28 = vrot.slane %v755_v7, 7  ;;  %v761_v56 = vrot.slane %v755_v7, 1  ;;  %v1088_v55 = vrot.slane %v1082_v43, 1  ;;  %v1132_v50 = vadd.f32 %v2617_v10, %v1128_v60 }
 0x388   : > { %850 = vrot.lane.b32.xlu1 %v845_v6, %s4228_s21  ;;  %854 = vrot.lane.b32.xlu0 %v844_v40, %s2343_s6  ;;  %v1125_v57 = vpop.permute.xlu1 %1124  ;;  %v1083_v54 = vadd.f32 %v1081_v47, %v1079_v8  ;;  %v3308_v47 = vsel %vm281_vm0, %v3134_v20, %v2870_v58  ;;  %v3327_v20 = vsel %vm281_vm0, %v3145_v37, %v2878_v13 }
 0x389   : > { %v758_v40 = vsel %vm320_vm2, %v756_v15, %v757_v28  ;;  %v759_v9 = vsel %vm320_vm2, %v757_v28, %v756_v15  ;;  %v762_v12 = vsel %vm325_vm1, %v760_v22, %v761_v56  ;;  %v763_v33 = vsel %vm325_vm1, %v761_v56, %v760_v22  ;;  %v4265_v22 = vld [vmem:[#allocation18_spill] sm:$0xff] }
 0x38a   : > { %v769_v51 = vadd.f32 %v758_v40, %v755_v7  ;;  %v767_v15 = vsel %vm333_vm4, %v758_v40, %v763_v33  ;;  %v1129_v56 = vsel %vm294_vm5, %v4265_v22, %v1125_v57  ;;  %v1085_v34 = vrot.slane %v1083_v54, 7 }
 0x38b   : > { %v1089_v61 = vrot.slane %v1083_v54, 1  ;;  %v1133_v40 = vadd.f32 %v2620_v11, %v1129_v56  ;;  %v1134_v10 = vadd.f32 %v1132_v50, %v1130_v31  ;;  %v1131_v50 = vsel %vm311_vm3, %v1125_v57, %v4265_v22 }
 0x38c   : > { %856 = vrot.lane.b32.xlu1 %v845_v6, %s2343_s6  ;;  %1170 = vrot.lane.b32.xlu0 %v1166_v53, %s4228_s21  ;;  %v764_v6 = vsel %vm328_vm6, %v762_v12, %v759_v9  ;;  %v3294_v28 = vadd.f32 %v769_v51, %v767_v15  ;;  %v1087_v8 = vsel %vm320_vm2, %v1085_v34, %v1084_v27 }
 0x38d   : > { %v768_v42 = vadd.f32 %v764_v6, %v754_v62  ;;  %v1086_v62 = vsel %vm320_vm2, %v1084_v27, %v1085_v34  ;;  %v1090_v9 = vsel %vm325_vm1, %v1088_v55, %v1089_v61  ;;  %v1091_v11 = vsel %vm325_vm1, %v1089_v61, %v1088_v55 }
 0x38e   : > { %v1095_v60 = vsel %vm333_vm4, %v1086_v62, %v1091_v11  ;;  %v1135_v55 = vadd.f32 %v1133_v40, %v1131_v50  ;;  %v1136_v51 = vrot.slane %v1134_v10, 7  ;;  %v1140_v15 = vrot.slane %v1134_v10, 1 }
 0x38f   : > { %v3301_v7 = vadd.f32 %v768_v42, %v762_v12  ;;  %v1097_v12 = vadd.f32 %v1086_v62, %v1083_v54 }
 0x390   : > { %1172 = vrot.lane.b32.xlu1 %v1167_v23, %s4228_s21  ;;  %1176 = vrot.lane.b32.xlu0 %v1166_v53, %s2343_s6  ;;  %v1092_v53 = vsel %vm328_vm6, %v1090_v9, %v1087_v8  ;;  %v1137_v57 = vrot.slane %v1135_v55, 7  ;;  %v1141_v42 = vrot.slane %v1135_v55, 1 }
 0x391   : > { %v1096_v33 = vadd.f32 %v1092_v53, %v1082_v43  ;;  %v1099_v6 = vadd.f32 %v1097_v12, %v1095_v60 }
 0x392   : > { %v1138_v37 = vsel %vm320_vm2, %v1136_v51, %v1137_v57  ;;  %v1142_v43 = vsel %vm325_vm1, %v1140_v15, %v1141_v42  ;;  %v1143_v27 = vsel %vm325_vm1, %v1141_v42, %v1140_v15  ;;  %v411_v42 = vpop.permute.xlu0 %410 }
 0x393   : > { %v1098_v31 = vadd.f32 %v1096_v33, %v1090_v9  ;;  %v1149_v22 = vadd.f32 %v1138_v37, %v1135_v55  ;;  %v1147_v56 = vsel %vm333_vm4, %v1138_v37, %v1143_v27  ;;  %v1101_v61 = vmul.f32 0.11111111, %v1099_v6  ;;  %v3371_v37 = vpop.permute.xlu1 %412  ;;  %v4272_v27 = vld [vmem:[#allocation13_spill] sm:$0xff] }
 0x394   : > { %1178 = vrot.lane.b32.xlu1 %v1167_v23, %s2343_s6  ;;  %1228 = vrot.lane.b32.xlu0 %v3308_v47, %s4228_s21  ;;  %v1139_v23 = vsel %vm320_vm2, %v1137_v57, %v1136_v51 }
 0x395   : > { %v1144_v54 = vsel %vm328_vm6, %v1142_v43, %v1139_v23  ;;  %v1151_v40 = vadd.f32 %v1149_v22, %v1147_v56  ;;  %v1100_v62 = vmul.f32 0.11111111, %v1098_v31  ;;  %v3347_v53 = vmul.f32 %v1101_v61, %v1101_v61 }
 0x396   : > { %v1148_v34 = vadd.f32 %v1144_v54, %v1134_v10  ;;  %v1329_v55 = vmul.f32 2.0, %v1101_v61  ;;  %v310_v54 = vsel %vm294_vm5, %v4272_v27, %v3198_v25 }
 0x397   : > { %v1153_v9 = vmul.f32 0.11111111, %v1151_v40  ;;  %v3351_v50 = vmul.f32 %v1100_v62, %v1100_v62  ;;  %v1328_v31 = vmul.f32 2.0, %v1100_v62  ;;  %v4274_v40 = vld [vmem:[#allocation15_spill] sm:$0xff] }
 0x398   : > { %1230 = vrot.lane.b32.xlu1 %v3327_v20, %s4228_s21  ;;  %v1150_v8 = vadd.f32 %v1148_v34, %v1142_v43  ;;  %v4273_v34 = vld [vmem:[#allocation12_spill] sm:$0xff] }
 0x399   : > { %v3349_v12 = vmul.f32 %v1153_v9, %v1153_v9  ;;  %v3355_v33 = vmul.f32 %v1153_v9, %v1101_v61  ;;  %v3367_v15 = vmul.f32 %v1329_v55, %v1153_v9  ;;  %v309_v61 = vsel %vm294_vm5, %v4273_v34, %v3189_v38 }
 0x39a   : > { %v1152_v11 = vmul.f32 0.11111111, %v1150_v8 }
 0x39b   : > { %4267 = vst [vmem:[#allocation34_spill] sm:$0xff] %v3355_v33  ;;  %v3359_v10 = vadd.f32 %v3349_v12, %v3347_v53  ;;  %4270 = vst [vmem:[#allocation37_spill] sm:$0xff] %v3367_v15  ;;  %v3419_v33 = vld [vmem:[%s2560_s28] sm:$0xff] }
 0x39c   : > { %v3353_v60 = vmul.f32 %v1152_v11, %v1152_v11  ;;  %v3361_v6 = vmul.f32 %v1152_v11, %v1100_v62  ;;  %v3369_v57 = vmul.f32 %v1328_v31, %v1152_v11  ;;  %v369_v62 = vsel %vm294_vm5, %v4274_v40, %v3209_v18  ;;  %v3395_v11 = vld [vmem:[%s2553_s8 + $0x8] sm:$0xff]  ;;  %v4276_v31 = vld [vmem:[#allocation14_spill] sm:$0xff] }
 0x39d   : > { %4275 = vst [vmem:[#allocation13_spill] sm:$0xff] %v3395_v11  ;;  %v315_v55 = vadd.f32 %v3395_v11, %v310_v54  ;;  %4279 = vst [vmem:[#allocation14_spill] sm:$0xff] %v3419_v33  ;;  %v3479_v11 = vld [vmem:[%s2553_s8 + $0x10] sm:$0xff] }
 0x39e   : > { %4266 = vst [vmem:[#allocation18_spill] sm:$0xff] %v3353_v60  ;;  %4268 = vst [vmem:[#allocation35_spill] sm:$0xff] %v3361_v6  ;;  %v3365_v51 = vadd.f32 %v3353_v60, %v3351_v50  ;;  %v313_v6 = vsel %vm311_vm3, %v3198_v25, %v4272_v27 }
 0x39f   : > { %4271 = vst [vmem:[#allocation38_spill] sm:$0xff] %v3369_v57  ;;  %v3407_v57 = vld [vmem:[%s2560_s28 + $0x8] sm:$0xff] }
 0x3a0   : > { %4269 = vst [vmem:[#allocation36_spill] sm:$0xff] %v3365_v51  ;;  %4278 = vst [vmem:[#allocation15_spill] sm:$0xff] %v3407_v57 }
 0x3ce   : > { %v1476_v23 = vpop.permute.xlu0 %1475 }
 0x3cf   : > { %v1477_v43 = vsel %vm281_vm0, %v1476_v23, %v3108_v4  ;;  %v368_v23 = vsel %vm294_vm5, %v4276_v31, %v3203_v44 }
 0x3d0   : > { %1481 = vrot.lane.b32.xlu0 %v1477_v43, %s4230_s30  ;;  %v3403_v43 = vld [vmem:[%s2553_s8] sm:$0xff] }
 0x3d1   : > { %4277 = vst [vmem:[#allocation12_spill] sm:$0xff] %v3403_v43 }
 0x3d2   : > { %v1479_v22 = vpop.permute.xlu1 %1478  ;;  %v1528_v56 = vpop.permute.xlu0 %1527 }
 0x3d3   : > { %v1480_v8 = vsel %vm281_vm0, %v1479_v22, %v3122_v59  ;;  %v1529_v9 = vsel %vm281_vm0, %v1528_v56, %v3125_v30  ;;  %v314_v22 = vadd.f32 %v3403_v43, %v309_v61  ;;  %v373_v56 = vadd.f32 %v3407_v57, %v369_v62 }
 0x3d4   : > { %1483 = vrot.lane.b32.xlu1 %v1480_v8, %s4230_s30  ;;  %1533 = vrot.lane.b32.xlu0 %v1529_v9, %s4230_s30  ;;  %v372_v61 = vadd.f32 %v3419_v33, %v368_v23  ;;  %v312_v62 = vsel %vm311_vm3, %v3189_v38, %v4273_v34 }
 0x3d5   : > { %v316_v25 = vadd.f32 %v314_v22, %v312_v62 }
 0x3d6   : > { %v1531_v8 = vpop.permute.xlu1 %1530  ;;  %v1582_v15 = vpop.permute.xlu0 %1581 }
 0x3d7   : > { %v1532_v9 = vsel %vm281_vm0, %v1531_v8, %v3139_v45  ;;  %v1583_v54 = vsel %vm281_vm0, %v1582_v15, %v3143_v36  ;;  %v317_v8 = vadd.f32 %v315_v55, %v313_v6  ;;  %v371_v15 = vsel %vm311_vm3, %v3209_v18, %v4274_v40 }
 0x3d8   : > { %1535 = vrot.lane.b32.xlu1 %v1532_v9, %s4230_s30  ;;  %1587 = vrot.lane.b32.xlu0 %v1583_v54, %s4230_s30  ;;  %v3432_v27 = vadd.f32 %v373_v56, %v371_v15  ;;  %v370_v9 = vsel %vm311_vm3, %v3203_v44, %v4276_v31  ;;  %v318_v40 = vrot.slane %v316_v25, 7  ;;  %v323_v55 = vrot.slane %v316_v25, 1  ;;  %v4280_v44 = vld [vmem:[#allocation16_spill] sm:$0xff] }
 0x3d9   : > { %v3442_v6 = vadd.f32 %v372_v61, %v370_v9  ;;  %v319_v18 = vrot.slane %v317_v8, 7  ;;  %v324_v34 = vrot.slane %v317_v8, 1  ;;  %v3461_v9 = vsel %vm281_vm0, %v3151_v41, %v2882_v16  ;;  %4281 = vst [vmem:[#allocation16_spill] sm:$0xff] %v3479_v11 }
 0x3da   : > { %v1585_v57 = vpop.permute.xlu1 %1584  ;;  %v1640_v23 = vpop.permute.xlu0 %1639  ;;  %v377_v22 = vrot.slane %v3432_v27, 7  ;;  %v381_v61 = vrot.slane %v3432_v27, 1 }
 0x3db   : > { %v1586_v54 = vsel %vm281_vm0, %v1585_v57, %v3155_v0  ;;  %v1641_v38 = vsel %vm281_vm0, %v1640_v23, %v3159_v3  ;;  %v696_v57 = vsel %vm294_vm5, %v4280_v44, %v3214_v5  ;;  %v326_v41 = vsel %vm325_vm1, %v323_v55, %v324_v34 }
 0x3dc   : > { %1589 = vrot.lane.b32.xlu1 %v1586_v54, %s4230_s30  ;;  %1645 = vrot.lane.b32.xlu0 %v1641_v38, %s4230_s30  ;;  %v3466_v54 = vsel %vm281_vm0, %v3161_v49, %v2890_v17  ;;  %v376_v38 = vrot.slane %v3442_v6, 7  ;;  %v700_v49 = vadd.f32 %v3479_v11, %v696_v57 }
 0x3de   : > { %v1643_v31 = vpop.permute.xlu1 %1642  ;;  %v417_v56 = vpop.permute.xlu0 %416  ;;  %v379_v60 = vsel %vm320_vm2, %v377_v22, %v376_v38 }
 0x3df   : > { %v1644_v62 = vsel %vm281_vm0, %v1643_v31, %v3171_v2  ;;  %v422_v15 = vsel %vm294_vm5, %v411_v42, %v417_v56  ;;  %v424_v23 = vsel %vm311_vm3, %v417_v56, %v411_v42  ;;  %v322_v42 = vsel %vm320_vm2, %v319_v18, %v318_v40 }
 0x3e0   : > { %v426_v31 = vadd.f32 %v422_v15, %v2796_v24  ;;  %1647 = vrot.lane.b32.xlu1 %v1644_v62, %s4230_s30  ;;  %1234 = vrot.lane.b32.xlu0 %v3308_v47, %s2343_s6  ;;  %v380_v56 = vrot.slane %v3442_v6, 1  ;;  %v321_v24 = vsel %vm320_vm2, %v318_v40, %v319_v18  ;;  %v327_v62 = vsel %vm325_vm1, %v324_v34, %v323_v55  ;;  %v4282_v47 = vld [vmem:[#allocation17_spill] sm:$0xff] }
 0x3e1   : > { %v697_v15 = vsel %vm294_vm5, %v4282_v47, %v3219_v63  ;;  %v3503_v40 = vsel %vm281_vm0, %v3167_v52, %v2894_v19  ;;  %v330_v55 = vsel %vm328_vm6, %v326_v41, %v322_v42  ;;  %v698_v52 = vsel %vm311_vm3, %v3214_v5, %v4280_v44 }
 0x3e2   : > { %v428_v33 = vadd.f32 %v426_v31, %v424_v23  ;;  %v419_v43 = vpop.permute.xlu1 %418  ;;  %v469_v51 = vpop.permute.xlu0 %468  ;;  %v382_v57 = vsel %vm325_vm1, %v380_v56, %v381_v61  ;;  %v335_v31 = vsel %vm333_vm4, %v321_v24, %v327_v62  ;;  %v336_v11 = vadd.f32 %v330_v55, %v316_v25 }
 0x3e3   : > { %v423_v18 = vsel %vm294_vm5, %v3371_v37, %v419_v43  ;;  %v425_v34 = vsel %vm311_vm3, %v419_v43, %v3371_v37  ;;  %v337_v37 = vadd.f32 %v321_v24, %v317_v8  ;;  %v3519_v43 = vld [vmem:[%s2553_s8 + $0x18] sm:$0xff]  ;;  %v3528_v19 = vadd.f32 %v700_v49, %v698_v52 }
 0x3e4   : > { %v427_v23 = vadd.f32 %v423_v18, %v2806_v26  ;;  %1236 = vrot.lane.b32.xlu1 %v3327_v20, %s2343_s6  ;;  %526 = vrot.lane.b32.xlu0 %v3461_v9, %s4228_s21  ;;  %4283 = vst [vmem:[#allocation17_spill] sm:$0xff] %v3519_v43  ;;  %v701_v42 = vadd.f32 %v3519_v43, %v697_v15  ;;  %v430_v44 = vrot.slane %v428_v33, 7 }
 0x3e5   : > { %v378_v26 = vsel %vm320_vm2, %v376_v38, %v377_v22  ;;  %v383_v20 = vsel %vm325_vm1, %v381_v61, %v380_v56  ;;  %v384_v18 = vsel %vm328_vm6, %v382_v57, %v379_v60  ;;  %v699_v5 = vsel %vm311_vm3, %v3219_v63, %v4282_v47 }
 0x3e6   : > { %v429_v62 = vadd.f32 %v427_v23, %v425_v34  ;;  %v471_v8 = vpop.permute.xlu1 %470  ;;  %v1698_v24 = vpop.permute.xlu0 %1697  ;;  %v434_v38 = vrot.slane %v428_v33, 1  ;;  %v387_v60 = vsel %vm333_vm4, %v378_v26, %v383_v20  ;;  %v388_v25 = vadd.f32 %v384_v18, %v3442_v6 }
 0x3e7   : > { %v1699_v22 = vsel %vm281_vm0, %v1698_v24, %v3193_v29  ;;  %v389_v49 = vadd.f32 %v378_v26, %v3432_v27  ;;  %v703_v63 = vadd.f32 %v701_v42, %v699_v5  ;;  %v338_v5 = vadd.f32 %v336_v11, %v326_v41  ;;  %v4284_v41 = vld [vmem:[#allocation31_spill] sm:$0xff] }
 0x3e8   : > { %v431_v61 = vrot.slane %v429_v62, 7  ;;  %v435_v56 = vrot.slane %v429_v62, 1  ;;  %528 = vrot.lane.b32.xlu1 %v3466_v54, %s4228_s21  ;;  %1703 = vrot.lane.b32.xlu0 %v1699_v22, %s4230_s30  ;;  %v339_v22 = vadd.f32 %v337_v37, %v335_v31  ;;  %v704_v11 = vrot.slane %v3528_v19, 7  ;;  %v4285_v31 = vld [vmem:[#allocation27_spill] sm:$0xff]  ;;  %v4286_v37 = vld [vmem:[#allocation32_spill] sm:$0xff] }
 0x3ea   : > { %v432_v47 = vsel %vm320_vm2, %v430_v44, %v431_v61  ;;  %v433_v15 = vsel %vm320_vm2, %v431_v61, %v430_v44  ;;  %v436_v34 = vsel %vm325_vm1, %v434_v38, %v435_v56  ;;  %v437_v55 = vsel %vm325_vm1, %v435_v56, %v434_v38  ;;  %v1701_v23 = vpop.permute.xlu1 %1700  ;;  %v475_v52 = vpop.permute.xlu0 %474 }
 0x3eb   : > { %v438_v6 = vsel %vm328_vm6, %v436_v34, %v433_v15  ;;  %v441_v27 = vsel %vm333_vm4, %v432_v47, %v437_v55  ;;  %v443_v42 = vadd.f32 %v432_v47, %v429_v62  ;;  %v1702_v26 = vsel %vm281_vm0, %v1701_v23, %v3207_v1 }
 0x3ec   : > { %v442_v20 = vadd.f32 %v438_v6, %v428_v33  ;;  %v480_v18 = vsel %vm294_vm5, %v469_v51, %v475_v52  ;;  %v482_v24 = vsel %vm311_vm3, %v475_v52, %v469_v51  ;;  %1705 = vrot.lane.b32.xlu1 %v1702_v26, %s4230_s30  ;;  %532 = vrot.lane.b32.xlu0 %v3461_v9, %s2343_s6  ;;  %v705_v61 = vrot.slane %v703_v63, 7 }
 0x3ed   : > { %v445_v44 = vadd.f32 %v443_v42, %v441_v27  ;;  %v484_v62 = vadd.f32 %v480_v18, %v2821_v35  ;;  %v391_v38 = vadd.f32 %v389_v49, %v387_v60  ;;  %v709_v56 = vrot.slane %v703_v63, 1  ;;  %v4288_v27 = vld [vmem:[#allocation28_spill] sm:$0xff]  ;;  %v4289_v42 = vld [vmem:[#allocation33_spill] sm:$0xff] }
 0x3ee   : > { %v444_v33 = vadd.f32 %v442_v20, %v436_v34  ;;  %v477_v47 = vpop.permute.xlu1 %476  ;;  %v390_v15 = vadd.f32 %v388_v25, %v382_v57  ;;  %v791_v52 = vpop.permute.xlu0 %790  ;;  %v708_v9 = vrot.slane %v3528_v19, 1  ;;  %v903_v57 = vsel %vm281_vm0, %v4284_v41, %v2902_v21 }
 0x3ef   : > { %v486_v55 = vadd.f32 %v484_v62, %v482_v24  ;;  %v481_v51 = vsel %vm294_vm5, %v471_v8, %v477_v47  ;;  %v483_v23 = vsel %vm311_vm3, %v477_v47, %v471_v8  ;;  %v3582_v8 = vsel %vm281_vm0, %v4286_v37, %v4285_v31 }
 0x3f0   : > { %v485_v35 = vadd.f32 %v481_v51, %v2830_v39  ;;  %534 = vrot.lane.b32.xlu1 %v3466_v54, %s2343_s6  ;;  %906 = vrot.lane.b32.xlu0 %v3503_v40, %s4228_s21  ;;  %v3584_v60 = vmul.f32 0.11111111, %v338_v5  ;;  %v3586_v25 = vmul.f32 0.11111111, %v339_v22  ;;  %v706_v39 = vsel %vm320_vm2, %v704_v11, %v705_v61 }
 0x3f1   : > { %v707_v54 = vsel %vm320_vm2, %v705_v61, %v704_v11  ;;  %v3594_v49 = vsel %vm325_vm1, %v708_v9, %v709_v56  ;;  %v3599_v26 = vsel %vm281_vm0, %v4289_v42, %v4288_v27  ;;  %v3601_v20 = vmul.f32 0.11111111, %v390_v15 }
 0x3f2   : > { %4287 = vst [vmem:[#allocation31_spill] sm:$0xff] %v3584_v60  ;;  %v487_v34 = vadd.f32 %v485_v35, %v483_v23  ;;  %v793_v6 = vpop.permute.xlu1 %792  ;;  %v3603_v18 = vmul.f32 0.11111111, %v391_v38  ;;  %v488_v24 = vrot.slane %v486_v55, 7  ;;  %v797_v5 = vpop.permute.xlu0 %796  ;;  %v492_v22 = vrot.slane %v486_v55, 1  ;;  %v4291_v23 = vld [vmem:[#allocation21_spill] sm:$0xff] }
 0x3f3   : > { %4290 = vst [vmem:[#allocation32_spill] sm:$0xff] %v3601_v20  ;;  %v802_v47 = vsel %vm294_vm5, %v791_v52, %v797_v5  ;;  %v711_v51 = vsel %vm325_vm1, %v709_v56, %v708_v9  ;;  %v712_v38 = vsel %vm328_vm6, %v3594_v49, %v707_v54  ;;  %v717_v15 = vadd.f32 %v706_v39, %v703_v63 }
 0x3f4   : > { %v489_v62 = vrot.slane %v487_v34, 7  ;;  %v493_v61 = vrot.slane %v487_v34, 1  ;;  %908 = vrot.lane.b32.xlu1 %v903_v57, %s4228_s21  ;;  %912 = vrot.lane.b32.xlu0 %v3503_v40, %s2343_s6  ;;  %v806_v11 = vadd.f32 %v802_v47, %v4291_v23  ;;  %v804_v42 = vsel %vm311_vm3, %v797_v5, %v791_v52  ;;  %v4292_v52 = vld [vmem:[#allocation22_spill] sm:$0xff] }
 0x3f5   : > { %v447_v23 = vmul.f32 0.11111111, %v445_v44  ;;  %v446_v44 = vmul.f32 0.11111111, %v444_v33 }
 0x3f6   : > { %v490_v35 = vsel %vm320_vm2, %v488_v24, %v489_v62  ;;  %v491_v41 = vsel %vm320_vm2, %v489_v62, %v488_v24  ;;  %v494_v37 = vsel %vm325_vm1, %v492_v22, %v493_v61  ;;  %v495_v40 = vsel %vm325_vm1, %v493_v61, %v492_v22  ;;  %v799_v56 = vpop.permute.xlu1 %798  ;;  %v849_v47 = vpop.permute.xlu0 %848 }
 0x3f7   : > { %v496_v9 = vsel %vm328_vm6, %v494_v37, %v491_v41  ;;  %v499_v63 = vsel %vm333_vm4, %v490_v35, %v495_v40  ;;  %v501_v54 = vadd.f32 %v490_v35, %v487_v34  ;;  %v808_v62 = vadd.f32 %v806_v11, %v804_v42 }
 0x3f8   : > { %v500_v24 = vadd.f32 %v496_v9, %v486_v55  ;;  %v803_v27 = vsel %vm294_vm5, %v793_v6, %v799_v56  ;;  %914 = vrot.lane.b32.xlu1 %v903_v57, %s2343_s6  ;;  %1286 = vrot.lane.b32.xlu0 %v3582_v8, %s4228_s21  ;;  %v716_v22 = vadd.f32 %v712_v38, %v3528_v19 }
 0x3f9   : > { %v3638_v34 = vmul.f32 %v3584_v60, %v3584_v60  ;;  %v503_v61 = vadd.f32 %v501_v54, %v499_v63  ;;  %v807_v5 = vadd.f32 %v803_v27, %v4292_v52  ;;  %v3643_v55 = vmul.f32 %v3586_v25, %v3586_v25 }
 0x3fa   : > { %v502_v11 = vadd.f32 %v500_v24, %v494_v37  ;;  %v805_v57 = vsel %vm311_vm3, %v799_v56, %v793_v6  ;;  %v851_v35 = vpop.permute.xlu1 %850  ;;  %v3649_v19 = vmul.f32 %v3601_v20, %v3601_v20  ;;  %v3653_v38 = vmul.f32 %v3603_v18, %v3603_v18  ;;  %v855_v33 = vpop.permute.xlu0 %854 }
 0x3fb   : > { %v505_v41 = vmul.f32 0.11111111, %v503_v61  ;;  %v809_v27 = vadd.f32 %v807_v5, %v805_v57  ;;  %v451_v40 = vsub.f32 %v447_v23, %v3643_v55  ;;  %v810_v63 = vrot.slane %v808_v62, 7 }
 0x3fc   : > { %v504_v9 = vmul.f32 0.11111111, %v502_v11  ;;  %v860_v37 = vsel %vm294_vm5, %v849_v47, %v855_v33  ;;  %1288 = vrot.lane.b32.xlu1 %v3599_v26, %s4228_s21  ;;  %v814_v56 = vrot.slane %v808_v62, 1  ;;  %v715_v24 = vsel %vm333_vm4, %v706_v39, %v711_v51 }
 0x3fd   : > { %v509_v6 = vsub.f32 %v505_v41, %v3653_v38  ;;  %v811_v54 = vrot.slane %v809_v27, 7  ;;  %v815_v42 = vrot.slane %v809_v27, 1  ;;  %v450_v61 = vsub.f32 %v446_v44, %v3638_v34 }
 0x3fe   : > { %v508_v23 = vsub.f32 %v504_v9, %v3649_v19  ;;  %v864_v52 = vadd.f32 %v860_v37, %v2846_v46  ;;  %v857_v5 = vpop.permute.xlu1 %856  ;;  %v1171_v43 = vpop.permute.xlu0 %1170  ;;  %v718_v39 = vadd.f32 %v716_v22, %v3594_v49  ;;  %v719_v44 = vadd.f32 %v717_v15, %v715_v24 }
 0x3ff   : > { %v3666_v11 = vadd.f32 %v509_v6, %v451_v40  ;;  %v812_v57 = vsel %vm320_vm2, %v810_v63, %v811_v54  ;;  %v813_v41 = vsel %vm320_vm2, %v811_v54, %v810_v63  ;;  %v816_v31 = vsel %vm325_vm1, %v814_v56, %v815_v42 }
 0x400   : > { %v3675_v51 = vadd.f32 %v508_v23, %v450_v61  ;;  %v817_v46 = vsel %vm325_vm1, %v815_v42, %v814_v56  ;;  %v818_v40 = vsel %vm328_vm6, %v816_v31, %v813_v41  ;;  %v823_v9 = vadd.f32 %v812_v57, %v809_v27  ;;  %v4295_v56 = vld [vmem:[#allocation23_spill] sm:$0xff]  ;;  %v4296_v23 = vld [vmem:[#allocation24_spill] sm:$0xff] }
 0x401   : > { %v862_v37 = vsel %vm311_vm3, %v855_v33, %v849_v47  ;;  %v861_v63 = vsel %vm294_vm5, %v851_v35, %v857_v5  ;;  %v821_v49 = vsel %vm333_vm4, %v812_v57, %v817_v46  ;;  %v3687_v61 = vmul.f32 0.11111111, %v718_v39 }
 0x402   : > { %v1173_v6 = vpop.permute.xlu1 %1172  ;;  %v866_v22 = vadd.f32 %v864_v52, %v862_v37  ;;  %v1177_v54 = vpop.permute.xlu0 %1176  ;;  %v3690_v15 = vmul.f32 0.11111111, %v3294_v28  ;;  %v865_v42 = vadd.f32 %v861_v63, %v4295_v56  ;;  %v822_v47 = vadd.f32 %v818_v40, %v808_v62  ;;  %v4298_v56 = vld [vmem:[#allocation25_spill] sm:$0xff] }
 0x403   : > { %4293 = vst [vmem:[#allocation33_spill] sm:$0xff] %v3687_v61  ;;  %v1182_v27 = vsel %vm294_vm5, %v1171_v43, %v1177_v54  ;;  %v863_v33 = vsel %vm311_vm3, %v857_v5, %v851_v35  ;;  %v1184_v24 = vsel %vm311_vm3, %v1177_v54, %v1171_v43  ;;  %v3700_v57 = vmul.f32 0.11111111, %v719_v44 }
 0x404   : > { %4294 = vst [vmem:[#allocation21_spill] sm:$0xff] %v3690_v15  ;;  %v1186_v52 = vadd.f32 %v1182_v27, %v4296_v23  ;;  %v825_v41 = vadd.f32 %v823_v9, %v821_v49  ;;  %v867_v39 = vadd.f32 %v865_v42, %v863_v33  ;;  %v868_v46 = vrot.slane %v866_v22, 7 }
 0x405   : > { %4297 = vst [vmem:[#allocation22_spill] sm:$0xff] %v3700_v57  ;;  %v872_v40 = vrot.slane %v866_v22, 1  ;;  %v3708_v54 = vmul.f32 0.11111111, %v3301_v7  ;;  %v824_v44 = vadd.f32 %v822_v47, %v816_v31  ;;  %v828_v9 = vmul.f32 %v3687_v61, %v3687_v61 }
 0x406   : > { %v1179_v28 = vpop.permute.xlu1 %1178  ;;  %v1188_v37 = vadd.f32 %v1186_v52, %v1184_v24  ;;  %v869_v35 = vrot.slane %v867_v39, 7  ;;  %v873_v5 = vrot.slane %v867_v39, 1  ;;  %v887_v49 = vmul.f32 %v3690_v15, %v3690_v15 }
 0x407   : > { %v1183_v63 = vsel %vm294_vm5, %v1173_v6, %v1179_v28  ;;  %v1185_v62 = vsel %vm311_vm3, %v1179_v28, %v1173_v6  ;;  %4299 = vst [vmem:[#allocation23_spill] sm:$0xff] %v3708_v54  ;;  %v827_v23 = vmul.f32 0.11111111, %v825_v41  ;;  %v829_v52 = vmul.f32 %v3700_v57, %v3700_v57 }
 0x408   : > { %v1187_v43 = vadd.f32 %v1183_v63, %v4298_v56  ;;  %v870_v42 = vsel %vm320_vm2, %v868_v46, %v869_v35  ;;  %v871_v6 = vsel %vm320_vm2, %v869_v35, %v868_v46  ;;  %v874_v27 = vsel %vm325_vm1, %v872_v40, %v873_v5 }
 0x409   : > { %v875_v7 = vsel %vm325_vm1, %v873_v5, %v872_v40  ;;  %v876_v31 = vsel %vm328_vm6, %v874_v27, %v871_v6  ;;  %v881_v33 = vadd.f32 %v870_v42, %v867_v39  ;;  %v1190_v46 = vrot.slane %v1188_v37, 7 }
 0x40a   : > { %v879_v47 = vsel %vm333_vm4, %v870_v42, %v875_v7  ;;  %v1189_v24 = vadd.f32 %v1187_v43, %v1185_v62  ;;  %v880_v28 = vadd.f32 %v876_v31, %v866_v22  ;;  %v1194_v35 = vrot.slane %v1188_v37, 1 }
 0x40b   : > { %v883_v63 = vadd.f32 %v881_v33, %v879_v47  ;;  %v826_v15 = vmul.f32 0.11111111, %v824_v44  ;;  %v886_v5 = vmul.f32 %v3708_v54, %v3708_v54  ;;  %v961_v6 = vadd.f32 %v887_v49, %v829_v52 }
 0x40c   : > { %v1191_v56 = vrot.slane %v1189_v24, 7  ;;  %v1195_v61 = vrot.slane %v1189_v24, 1  ;;  %v882_v40 = vadd.f32 %v880_v28, %v874_v27  ;;  %v831_v27 = vsub.f32 %v827_v23, %v829_v52  ;;  %v1231_v52 = vpop.permute.xlu1 %1230 }
 0x40d   : > { %v885_v20 = vmul.f32 0.11111111, %v883_v63  ;;  %v830_v33 = vsub.f32 %v826_v15, %v828_v9 }
 0x40e   : > { %v1192_v39 = vsel %vm320_vm2, %v1190_v46, %v1191_v56  ;;  %v1193_v41 = vsel %vm320_vm2, %v1191_v56, %v1190_v46  ;;  %v1196_v22 = vsel %vm325_vm1, %v1194_v35, %v1195_v61  ;;  %v884_v62 = vmul.f32 0.11111111, %v882_v40 }
 0x40f   : > { %v1197_v43 = vsel %vm325_vm1, %v1195_v61, %v1194_v35  ;;  %v1198_v44 = vsel %vm328_vm6, %v1196_v22, %v1193_v41  ;;  %v1203_v42 = vadd.f32 %v1192_v39, %v1189_v24  ;;  %v889_v7 = vsub.f32 %v885_v20, %v887_v49 }
 0x410   : > { %v1201_v31 = vsel %vm333_vm4, %v1192_v39, %v1197_v43  ;;  %v1202_v47 = vadd.f32 %v1198_v44, %v1188_v37  ;;  %v888_v28 = vsub.f32 %v884_v62, %v886_v5  ;;  %v960_v46 = vadd.f32 %v886_v5, %v828_v9  ;;  %v1229_v9 = vpop.permute.xlu0 %1228 }
 0x411   : > { %v1205_v63 = vadd.f32 %v1203_v42, %v1201_v31  ;;  %v965_v56 = vadd.f32 %v889_v7, %v831_v27  ;;  %v963_v61 = vadd.f32 0.0001, %v961_v6 }
 0x412   : > { %v1204_v54 = vadd.f32 %v1202_v47, %v1196_v22  ;;  %v964_v40 = vadd.f32 %v888_v28, %v830_v33  ;;  %v962_v24 = vadd.f32 0.0001, %v960_v46 }
 0x413   : > { %v3742_v57 = vmul.f32 0.11111111, %v1205_v63  ;;  %v967_v35 = vadd.f32 0.0009, %v965_v56 }
 0x414   : > { %v3744_v60 = vmul.f32 0.11111111, %v1204_v54  ;;  %v966_v23 = vadd.f32 0.0009, %v964_v40 }
 0x415   : > { %v1211_v20 = vsub.f32 %v3742_v57, %v3347_v53  ;;  %v3748_v49 = vmul.f32 %v967_v35, %v963_v61 }
 0x416   : > { %v1210_v15 = vsub.f32 %v3744_v60, %v3351_v50  ;;  %v3752_v37 = vmul.f32 %v966_v23, %v962_v24 }
 0x442   : > { %v1482_v5 = vpop.permute.xlu0 %1481 }
 0x443   : > { %v1485_v6 = vsel %vm281_vm0, %v1482_v5, %v3108_v4 }
 0x444   : > { %1489 = vrot.lane.b32.xlu0 %v1485_v6, %s4228_s21 }
 0x446   : > { %v1484_v54 = vpop.permute.xlu1 %1483  ;;  %v1534_v39 = vpop.permute.xlu0 %1533 }
 0x447   : > { %v1486_v41 = vsel %vm281_vm0, %v1484_v54, %v3122_v59  ;;  %v1537_v43 = vsel %vm281_vm0, %v1534_v39, %v3125_v30 }
 0x448   : > { %1491 = vrot.lane.b32.xlu1 %v1486_v41, %s4228_s21  ;;  %1495 = vrot.lane.b32.xlu0 %v1485_v6, %s2343_s6 }
 0x44a   : > { %v1536_v22 = vpop.permute.xlu1 %1535  ;;  %v1588_v62 = vpop.permute.xlu0 %1587 }
 0x44b   : > { %v1538_v27 = vsel %vm281_vm0, %v1536_v22, %v3139_v45  ;;  %v1591_v47 = vsel %vm281_vm0, %v1588_v62, %v3143_v36 }
 0x44c   : > { %1497 = vrot.lane.b32.xlu1 %v1486_v41, %s2343_s6  ;;  %1541 = vrot.lane.b32.xlu0 %v1537_v43, %s4228_s21 }
 0x44e   : > { %v1590_v44 = vpop.permute.xlu1 %1589  ;;  %v1646_v42 = vpop.permute.xlu0 %1645 }
 0x44f   : > { %v1592_v61 = vsel %vm281_vm0, %v1590_v44, %v3155_v0  ;;  %v1649_v6 = vsel %vm281_vm0, %v1646_v42, %v3159_v3 }
 0x450   : > { %1543 = vrot.lane.b32.xlu1 %v1538_v27, %s4228_s21  ;;  %1547 = vrot.lane.b32.xlu0 %v1537_v43, %s2343_s6 }
 0x452   : > { %v1648_v7 = vpop.permute.xlu1 %1647  ;;  %v1235_v31 = vpop.permute.xlu0 %1234 }
 0x453   : > { %v1240_v33 = vsel %vm294_vm5, %v1229_v9, %v1235_v31  ;;  %v1242_v28 = vsel %vm311_vm3, %v1235_v31, %v1229_v9  ;;  %v1650_v31 = vsel %vm281_vm0, %v1648_v7, %v3171_v2 }
 0x454   : > { %v1244_v46 = vadd.f32 %v1240_v33, %v2870_v58  ;;  %1549 = vrot.lane.b32.xlu1 %v1538_v27, %s2343_s6  ;;  %1595 = vrot.lane.b32.xlu0 %v1591_v47, %s4228_s21  ;;  %v581_v33 = vadd.f32 %v3653_v38, %v3643_v55 }
 0x456   : > { %v1246_v63 = vadd.f32 %v1244_v46, %v1242_v28  ;;  %v1237_v56 = vpop.permute.xlu1 %1236  ;;  %v527_v40 = vpop.permute.xlu0 %526 }
 0x457   : > { %v1241_v35 = vsel %vm294_vm5, %v1231_v52, %v1237_v56  ;;  %v1243_v24 = vsel %vm311_vm3, %v1237_v56, %v1231_v52 }
 0x458   : > { %v1245_v23 = vadd.f32 %v1241_v35, %v2878_v13  ;;  %1597 = vrot.lane.b32.xlu1 %v1592_v61, %s4228_s21  ;;  %1601 = vrot.lane.b32.xlu0 %v1591_v47, %s2343_s6  ;;  %v1248_v54 = vrot.slane %v1246_v63, 7  ;;  %v1252_v39 = vrot.slane %v1246_v63, 1  ;;  %v580_v13 = vadd.f32 %v3649_v19, %v3638_v34 }
 0x45a   : > { %v1247_v58 = vadd.f32 %v1245_v23, %v1243_v24  ;;  %v529_v9 = vpop.permute.xlu1 %528  ;;  %v1704_v5 = vpop.permute.xlu0 %1703 }
 0x45c   : > { %v1249_v41 = vrot.slane %v1247_v58, 7  ;;  %v1253_v22 = vrot.slane %v1247_v58, 1  ;;  %1603 = vrot.lane.b32.xlu1 %v1592_v61, %s2343_s6  ;;  %1653 = vrot.lane.b32.xlu0 %v1649_v6, %s4228_s21 }
 0x45e   : > { %v1250_v52 = vsel %vm320_vm2, %v1248_v54, %v1249_v41  ;;  %v1251_v62 = vsel %vm320_vm2, %v1249_v41, %v1248_v54  ;;  %v1254_v43 = vsel %vm325_vm1, %v1252_v39, %v1253_v22  ;;  %v1255_v44 = vsel %vm325_vm1, %v1253_v22, %v1252_v39  ;;  %v1706_v42 = vpop.permute.xlu1 %1705  ;;  %v533_v27 = vpop.permute.xlu0 %532 }
 0x45f   : > { %v1256_v34 = vsel %vm328_vm6, %v1254_v43, %v1251_v62  ;;  %v1259_v19 = vsel %vm333_vm4, %v1250_v52, %v1255_v44  ;;  %v1261_v47 = vadd.f32 %v1250_v52, %v1247_v58  ;;  %v538_v46 = vsel %vm294_vm5, %v527_v40, %v533_v27  ;;  %v4300_v62 = vld [vmem:[#allocation18_spill] sm:$0xff] }
 0x460   : > { %v1260_v28 = vadd.f32 %v1256_v34, %v1246_v63  ;;  %1655 = vrot.lane.b32.xlu1 %v1650_v31, %s4228_s21  ;;  %1659 = vrot.lane.b32.xlu0 %v1649_v6, %s2343_s6  ;;  %v542_v7 = vadd.f32 %v538_v46, %v2882_v16  ;;  %v540_v35 = vsel %vm311_vm3, %v533_v27, %v527_v40  ;;  %v582_v58 = vadd.f32 0.0001, %v580_v13 }
 0x461   : > { %v1263_v56 = vadd.f32 %v1261_v47, %v1259_v19  ;;  %v583_v63 = vadd.f32 0.0001, %v581_v33  ;;  %v569_v16 = vmul.f32 2.0, %v3586_v25  ;;  %v587_v40 = vadd.f32 0.0009, %v3666_v11 }
 0x462   : > { %v1262_v61 = vadd.f32 %v1260_v28, %v1254_v43  ;;  %v535_v24 = vpop.permute.xlu1 %534  ;;  %v907_v23 = vpop.permute.xlu0 %906  ;;  %v544_v55 = vadd.f32 %v542_v7, %v540_v35  ;;  %v1343_v22 = vadd.f32 0.0001, %v3359_v10  ;;  %v586_v52 = vadd.f32 0.0009, %v3675_v51  ;;  %v4301_v43 = vld [vmem:[#allocation36_spill] sm:$0xff] }
 0x463   : > { %v1265_v54 = vmul.f32 0.11111111, %v1263_v56  ;;  %v539_v38 = vsel %vm294_vm5, %v529_v9, %v535_v24  ;;  %v541_v13 = vsel %vm311_vm3, %v535_v24, %v529_v9  ;;  %v1342_v44 = vadd.f32 0.0001, %v4301_v43 }
 0x464   : > { %v1264_v39 = vmul.f32 0.11111111, %v1262_v61  ;;  %v543_v41 = vadd.f32 %v539_v38, %v2890_v17  ;;  %1661 = vrot.lane.b32.xlu1 %v1650_v31, %s2343_s6  ;;  %1292 = vrot.lane.b32.xlu0 %v3582_v8, %s2343_s6  ;;  %v546_v10 = vrot.slane %v544_v55, 7  ;;  %v550_v34 = vrot.slane %v544_v55, 1 }
 0x465   : > { %v1269_v6 = vsub.f32 %v1265_v54, %v3349_v12  ;;  %v1707_v12 = vsel %vm281_vm0, %v1704_v5, %v3193_v29  ;;  %v589_v53 = vmul.f32 %v587_v40, %v583_v63  ;;  %v4302_v5 = vld [vmem:[#allocation26_spill] sm:$0xff]  ;;  %v588_v38 = vmul.f32 %v586_v52, %v582_v58 }
 0x466   : > { %v1268_v17 = vsub.f32 %v1264_v39, %v4300_v62  ;;  %v545_v27 = vadd.f32 %v543_v41, %v541_v13  ;;  %v909_v31 = vpop.permute.xlu1 %908  ;;  %v913_v8 = vpop.permute.xlu0 %912  ;;  %v571_v58 = vmul.f32 %v569_v16, %v3603_v18  ;;  %v4303_v62 = vld [vmem:[#allocation31_spill] sm:$0xff] }
 0x467   : > { %v1345_v11 = vadd.f32 %v1269_v6, %v1211_v20  ;;  %v918_v9 = vsel %vm294_vm5, %v907_v23, %v913_v8  ;;  %v1708_v20 = vsel %vm281_vm0, %v1706_v42, %v3207_v1  ;;  %v920_v54 = vsel %vm311_vm3, %v913_v8, %v907_v23 }
 0x468   : > { %v1344_v51 = vadd.f32 %v1268_v17, %v1210_v15  ;;  %v547_v19 = vrot.slane %v545_v27, 7  ;;  %v551_v47 = vrot.slane %v545_v27, 1  ;;  %1294 = vrot.lane.b32.xlu1 %v3599_v26, %s2343_s6  ;;  %1711 = vrot.lane.b32.xlu0 %v1707_v12, %s4228_s21  ;;  %v922_v33 = vadd.f32 %v918_v9, %v4302_v5  ;;  %v4304_v17 = vld [vmem:[#allocation32_spill] sm:$0xff]  ;;  %v4305_v5 = vld [vmem:[#allocation22_spill] sm:$0xff] }
 0x469   : > { %v1347_v57 = vadd.f32 0.0009, %v1345_v11  ;;  %2152 = vrcp.f32 %v589_v53  ;;  %v564_v43 = vmul.f32 %v4304_v17, %v4303_v62 }
 0x46a   : > { %v1346_v28 = vadd.f32 0.0009, %v1344_v51  ;;  %v548_v50 = vsel %vm320_vm2, %v546_v10, %v547_v19  ;;  %v549_v60 = vsel %vm320_vm2, %v547_v19, %v546_v10  ;;  %v552_v15 = vsel %vm325_vm1, %v550_v34, %v551_v47  ;;  %v915_v26 = vpop.permute.xlu1 %914 }
 0x46b   : > { %v3853_v46 = vmul.f32 %v1347_v57, %v1343_v22  ;;  %v553_v56 = vsel %vm325_vm1, %v551_v47, %v550_v34  ;;  %v554_v42 = vsel %vm328_vm6, %v552_v15, %v549_v60  ;;  %v559_v7 = vadd.f32 %v548_v50, %v545_v27 }
 0x46c   : > { %v3859_v61 = vmul.f32 %v1346_v28, %v1342_v44  ;;  %v557_v35 = vsel %vm333_vm4, %v548_v50, %v553_v56  ;;  %v558_v24 = vadd.f32 %v554_v42, %v544_v55  ;;  %1713 = vrot.lane.b32.xlu1 %v1708_v20, %s4228_s21  ;;  %v924_v39 = vadd.f32 %v922_v33, %v920_v54  ;;  %v4306_v33 = vld [vmem:[#allocation21_spill] sm:$0xff] }
 0x46d   : > { %v561_v63 = vadd.f32 %v559_v7, %v557_v35  ;;  %v919_v41 = vsel %vm294_vm5, %v909_v31, %v915_v26  ;;  %1717 = vrot.lane.b32.xlu0 %v1707_v12, %s2343_s6  ;;  %v565_v55 = vmul.f32 %v3603_v18, %v3586_v25  ;;  %v921_v23 = vsel %vm311_vm3, %v915_v26, %v909_v31 }
 0x46e   : > { %v560_v40 = vadd.f32 %v558_v24, %v552_v15  ;;  %v923_v6 = vadd.f32 %v919_v41, %v2902_v21  ;;  %v926_v27 = vrot.slane %v924_v39, 7  ;;  %v568_v21 = vmul.f32 2.0, %v4303_v62  ;;  %v4307_v15 = vld [vmem:[#allocation33_spill] sm:$0xff] }
 0x46f   : > { %v563_v22 = vmul.f32 0.11111111, %v561_v63  ;;  %2154 = vrcp.f32 %v588_v38  ;;  %v930_v8 = vrot.slane %v924_v39, 1  ;;  %v573_v18 = vadd.f32 0.0001, %v571_v58  ;;  %v4308_v63 = vld [vmem:[#allocation23_spill] sm:$0xff] }
 0x470   : > { %v562_v13 = vmul.f32 0.11111111, %v560_v40  ;;  %v925_v52 = vadd.f32 %v923_v6, %v921_v23  ;;  %1719 = vrot.lane.b32.xlu1 %v1708_v20, %s2343_s6  ;;  %v570_v31 = vmul.f32 %v568_v21, %v4304_v17  ;;  %v945_v28 = vmul.f32 %v4306_v33, %v4305_v5  ;;  %v4311_v17 = vld [vmem:[#allocation13_spill] sm:$0xff] }
 0x471   : > { %v567_v44 = vsub.f32 %v563_v22, %v565_v55  ;;  %v948_v26 = vmul.f32 2.0, %v4307_v15  ;;  %v949_v56 = vmul.f32 2.0, %v4305_v5  ;;  %2156 = vrcp.f32 %v3748_v49  ;;  %v4310_v49 = vld [vmem:[#allocation14_spill] sm:$0xff] }
 0x472   : > { %v927_v11 = vrot.slane %v925_v52, 7  ;;  %v931_v25 = vrot.slane %v925_v52, 1  ;;  %v566_v12 = vsub.f32 %v562_v13, %v564_v43  ;;  %v572_v24 = vadd.f32 0.0001, %v570_v31  ;;  %v4309_v13 = vld [vmem:[#allocation12_spill] sm:$0xff]  ;;  %v4312_v43 = vld [vmem:[#allocation15_spill] sm:$0xff] }
 0x473   : > { %v575_v10 = vmul.f32 2.0, %v567_v44  ;;  %v2153_v7 = vpop.eup %2152  ;;  %2158 = vrcp.f32 %v3752_v37  ;;  %v950_v6 = vmul.f32 %v948_v26, %v4308_v63  ;;  %v951_v22 = vmul.f32 %v949_v56, %v4306_v33 }
 0x474   : > { %v928_v16 = vsel %vm320_vm2, %v926_v27, %v927_v11  ;;  %v929_v9 = vsel %vm320_vm2, %v927_v11, %v926_v27  ;;  %v932_v51 = vsel %vm325_vm1, %v930_v8, %v931_v25  ;;  %v933_v34 = vsel %vm325_vm1, %v931_v25, %v930_v8 }
 0x475   : > { %v577_v19 = vadd.f32 0.0009, %v575_v10  ;;  %v934_v47 = vsel %vm328_vm6, %v932_v51, %v929_v9  ;;  %v937_v53 = vsel %vm333_vm4, %v928_v16, %v933_v34  ;;  %v939_v57 = vadd.f32 %v928_v16, %v925_v52  ;;  %v4313_v34 = vld [vmem:[#allocation16_spill] sm:$0xff] }
 0x476   : > { %v938_v20 = vadd.f32 %v934_v47, %v924_v39  ;;  %v574_v50 = vmul.f32 2.0, %v566_v12  ;;  %v944_v39 = vmul.f32 %v4308_v63, %v4307_v15  ;;  %v263_v52 = vsub.f32 %v4310_v49, %v4309_v13 }
 0x477   : > { %v941_v60 = vadd.f32 %v939_v57, %v937_v53  ;;  %v579_v42 = vmul.f32 %v577_v19, %v573_v18  ;;  %v264_v44 = vsub.f32 %v4312_v43, %v4311_v17  ;;  %v952_v11 = vadd.f32 0.0001, %v950_v6  ;;  %v2185_v57 = vld [vmem:[%s2560_s28 + $0x18] sm:$0xff]  ;;  %v2188_v43 = vld [vmem:[%s2553_s8 + $0x28] sm:$0xff] }
 0x478   : > { %v940_v35 = vadd.f32 %v938_v20, %v932_v51  ;;  %v576_v54 = vadd.f32 0.0009, %v574_v50  ;;  %v953_v25 = vadd.f32 0.0001, %v951_v22  ;;  %v265_v18 = vand.u32 2147483647, %v263_v52 }
 0x479   : > { %v943_v38 = vmul.f32 0.11111111, %v941_v60  ;;  %v593_v41 = vmul.f32 %v2153_v7, %v579_v42  ;;  %v2155_v23 = vpop.eup %2154  ;;  %v266_v9 = vand.u32 2147483647, %v264_v44  ;;  %v2184_v51 = vld [vmem:[%s2560_s28 + $0x10] sm:$0xff]  ;;  %v4314_v20 = vld [vmem:[#allocation17_spill] sm:$0xff]  ;;  %2160 = vrcp.f32 %v3853_v46 }
 0x47a   : > { %v942_v40 = vmul.f32 0.11111111, %v940_v35  ;;  %v578_v55 = vmul.f32 %v576_v54, %v572_v24  ;;  %v653_v19 = vsub.f32 %v2184_v51, %v4313_v34  ;;  %v654_v5 = vsub.f32 %v2185_v57, %v4314_v20  ;;  %v2186_v52 = vld [vmem:[%s2553_s8 + $0x20] sm:$0xff]  ;;  %v2189_v44 = vld [vmem:[%s2560_s28 + $0x28] sm:$0xff]  ;;  %v3924_v34 = vpop.permute.xlu0 %1286  ;;  %s1929_s8 = sld [smem:[#allocation8]] }
 0x47b   : > { %v947_v58 = vsub.f32 %v943_v38, %v945_v28  ;;  %v595_v62 = vsub.f32 1.0, %v593_v41  ;;  %v2157_v50 = vpop.eup %2156  ;;  %v268_v54 = vsel %vm267_vm7, %v265_v18, 0.0  ;;  %v269_v38 = vsel %vm267_vm7, %v266_v9, 0.0 }
 0x47c   : > { %v946_v27 = vsub.f32 %v942_v40, %v944_v39  ;;  %v591_v21 = vmul.f32 %v2155_v23, %v578_v55  ;;  %v655_v42 = vand.u32 2147483647, %v653_v19  ;;  %v656_v63 = vand.u32 2147483647, %v654_v5  ;;  %v3926_v19 = vpop.permute.xlu1 %1288 }
 0x47d   : > { %v955_v37 = vmul.f32 2.0, %v947_v58  ;;  %v597_v8 = vmul.f32 0.5, %v595_v62  ;;  %v2159_v26 = vpop.eup %2158  ;;  %v270_v55 = vadd.f32 %v269_v38, %v268_v54  ;;  %v2187_v62 = vld [vmem:[%s2560_s28 + $0x20] sm:$0xff]  ;;  %2162 = vrcp.f32 %v3859_v61 }
 0x47e   : > { %v954_v12 = vmul.f32 2.0, %v946_v27  ;;  %v594_v10 = vsub.f32 1.0, %v591_v21  ;;  %v657_v23 = vsel %vm267_vm7, %v655_v42, 0.0  ;;  %v658_v13 = vsel %vm267_vm7, %v656_v63, 0.0 }
 0x47f   : > { %v957_v31 = vadd.f32 0.0009, %v955_v37  ;;  %v599_v16 = vmax.f32 %v597_v8, 0.0  ;;  %v1033_v17 = vsub.f32 %v2187_v62, %v2186_v52  ;;  %v1034_v27 = vsub.f32 %v2189_v44, %v2188_v43 }
 0x480   : > { %v956_v47 = vadd.f32 0.0009, %v954_v12  ;;  %v596_v53 = vmul.f32 0.5, %v594_v10  ;;  %v659_v8 = vadd.f32 %v658_v13, %v657_v23 }
 0x481   : > { %v959_v33 = vmul.f32 %v957_v31, %v953_v25  ;;  %v601_v28 = vmin.f32 %v599_v16, 1.0  ;;  %v1035_v12 = vand.u32 2147483647, %v1033_v17  ;;  %v1036_v10 = vand.u32 2147483647, %v1034_v27 }
 0x482   : > { %v958_v60 = vmul.f32 %v956_v47, %v952_v11  ;;  %v598_v15 = vmax.f32 %v596_v53, 0.0 }
 0x483   : > { %v973_v56 = vmul.f32 %v2157_v50, %v959_v33  ;;  %v603_v24 = vsel %vm267_vm7, %v601_v28, 0.0  ;;  %v1037_v16 = vsel %vm267_vm7, %v1035_v12, 0.0  ;;  %v1038_v9 = vsel %vm267_vm7, %v1036_v10, 0.0 }
 0x484   : > { %v971_v7 = vmul.f32 %v2159_v26, %v958_v60  ;;  %v600_v35 = vmin.f32 %v598_v15, 1.0  ;;  %v1039_v51 = vadd.f32 %v1038_v9, %v1037_v16 }
 0x485   : > { %v975_v39 = vsub.f32 1.0, %v973_v56 }
 0x486   : > { %v974_v41 = vsub.f32 1.0, %v971_v7  ;;  %v602_v40 = vsel %vm267_vm7, %v600_v35, 0.0 }
 0x487   : > { %v977_v6 = vmul.f32 0.5, %v975_v39  ;;  %v604_v22 = vadd.f32 %v603_v24, %v602_v40 }
 0x488   : > { %v976_v58 = vmul.f32 0.5, %v974_v41 }
 0x489   : > { %v979_v49 = vmax.f32 %v977_v6, 0.0 }
 0x48a   : > { %v978_v21 = vmax.f32 %v976_v58, 0.0 }
 0x48b   : > { %v981_v37 = vmin.f32 %v979_v49, 1.0 }
 0x48c   : > { %271 = vadd.xlane.f32.xlu0 %v270_v55  ;;  %v980_v11 = vmin.f32 %v978_v21, 1.0 }
 0x48d   : > { %v983_v25 = vsel %vm267_vm7, %v981_v37, 0.0 }
 0x48e   : > { %v982_v31 = vsel %vm267_vm7, %v980_v11, 0.0 }
 0x48f   : > { %v984_v18 = vadd.f32 %v983_v25, %v982_v31 }
 0x490   : > { %660 = vadd.xlane.f32.xlu0 %v659_v8 }
 0x494   : > { %985 = vadd.xlane.f32.xlu0 %v984_v18  ;;  %605 = vadd.xlane.f32.xlu1 %v604_v22 }
 0x498   : > { %1040 = vadd.xlane.f32.xlu1 %v1039_v51 }
 0x4b6   : > { %v1490_v47 = vpop.permute.xlu0 %1489 }
 0x4ba   : > { %v1492_v53 = vpop.permute.xlu1 %1491  ;;  %v1496_v57 = vpop.permute.xlu0 %1495 }
 0x4bb   : > { %v1501_v20 = vsel %vm294_vm5, %v1490_v47, %v1496_v57  ;;  %v1503_v33 = vsel %vm311_vm3, %v1496_v57, %v1490_v47 }
 0x4bc   : > { %v1505_v5 = vadd.f32 %v1501_v20, %v3108_v4 }
 0x4be   : > { %v1498_v28 = vpop.permute.xlu1 %1497  ;;  %v1542_v50 = vpop.permute.xlu0 %1541  ;;  %v1507_v60 = vadd.f32 %v1505_v5, %v1503_v33 }
 0x4bf   : > { %v1502_v15 = vsel %vm294_vm5, %v1492_v53, %v1498_v28  ;;  %v1504_v56 = vsel %vm311_vm3, %v1498_v28, %v1492_v53 }
 0x4c0   : > { %v1506_v26 = vadd.f32 %v1502_v15, %v3122_v59  ;;  %v1509_v24 = vrot.slane %v1507_v60, 7  ;;  %v1513_v54 = vrot.slane %v1507_v60, 1 }
 0x4c2   : > { %v1508_v42 = vadd.f32 %v1506_v26, %v1504_v56  ;;  %v1544_v7 = vpop.permute.xlu1 %1543  ;;  %v1548_v35 = vpop.permute.xlu0 %1547 }
 0x4c3   : > { %v1553_v4 = vsel %vm294_vm5, %v1542_v50, %v1548_v35  ;;  %v1555_v55 = vsel %vm311_vm3, %v1548_v35, %v1542_v50 }
 0x4c4   : > { %v1510_v38 = vrot.slane %v1508_v42, 7  ;;  %v1514_v63 = vrot.slane %v1508_v42, 1  ;;  %v1557_v39 = vadd.f32 %v1553_v4, %v3125_v30 }
 0x4c6   : > { %v1512_v41 = vsel %vm320_vm2, %v1510_v38, %v1509_v24  ;;  %v1515_v59 = vsel %vm325_vm1, %v1513_v54, %v1514_v63  ;;  %v1550_v40 = vpop.permute.xlu1 %1549  ;;  %v1596_v6 = vpop.permute.xlu0 %1595  ;;  %v1511_v22 = vsel %vm320_vm2, %v1509_v24, %v1510_v38  ;;  %v1516_v23 = vsel %vm325_vm1, %v1514_v63, %v1513_v54 }
 0x4c7   : > { %v1559_v58 = vadd.f32 %v1557_v39, %v1555_v55  ;;  %v1554_v30 = vsel %vm294_vm5, %v1544_v7, %v1550_v40  ;;  %v1517_v13 = vsel %vm328_vm6, %v1515_v59, %v1512_v41  ;;  %v1522_v52 = vadd.f32 %v1511_v22, %v1508_v42 }
 0x4c8   : > { %v1558_v49 = vadd.f32 %v1554_v30, %v3139_v45  ;;  %v1556_v62 = vsel %vm311_vm3, %v1550_v40, %v1544_v7  ;;  %v1520_v44 = vsel %vm333_vm4, %v1511_v22, %v1516_v23  ;;  %v1521_v37 = vadd.f32 %v1517_v13, %v1507_v60 }
 0x4c9   : > { %v1561_v8 = vrot.slane %v1559_v58, 7  ;;  %v1565_v11 = vrot.slane %v1559_v58, 1  ;;  %v1524_v10 = vadd.f32 %v1522_v52, %v1520_v44 }
 0x4ca   : > { %v1598_v17 = vpop.permute.xlu1 %1597  ;;  %v1602_v43 = vpop.permute.xlu0 %1601  ;;  %v1560_v27 = vadd.f32 %v1558_v49, %v1556_v62  ;;  %v1523_v5 = vadd.f32 %v1521_v37, %v1515_v59 }
 0x4cb   : > { %v1607_v21 = vsel %vm294_vm5, %v1596_v6, %v1602_v43  ;;  %v1609_v20 = vsel %vm311_vm3, %v1602_v43, %v1596_v6  ;;  %v3987_v54 = vmul.f32 0.11111111, %v1524_v10 }
 0x4cc   : > { %v1562_v25 = vrot.slane %v1560_v27, 7  ;;  %v1566_v12 = vrot.slane %v1560_v27, 1  ;;  %v1611_v45 = vadd.f32 %v1607_v21, %v3143_v36  ;;  %v3985_v4 = vmul.f32 0.11111111, %v1523_v5 }
 0x4ce   : > { %v1604_v31 = vpop.permute.xlu1 %1603  ;;  %v1654_v18 = vpop.permute.xlu0 %1653  ;;  %v1563_v16 = vsel %vm320_vm2, %v1561_v8, %v1562_v25  ;;  %v1564_v9 = vsel %vm320_vm2, %v1562_v25, %v1561_v8  ;;  %v1567_v51 = vsel %vm325_vm1, %v1565_v11, %v1566_v12  ;;  %v1568_v47 = vsel %vm325_vm1, %v1566_v12, %v1565_v11 }
 0x4cf   : > { %v1569_v53 = vsel %vm328_vm6, %v1567_v51, %v1564_v9  ;;  %v1572_v36 = vsel %vm333_vm4, %v1563_v16, %v1568_v47  ;;  %v1574_v57 = vadd.f32 %v1563_v16, %v1560_v27  ;;  %v1613_v28 = vadd.f32 %v1611_v45, %v1609_v20  ;;  %v4315_v45 = vld [vmem:[#allocation27_spill] sm:$0xff] }
 0x4d0   : > { %v1573_v33 = vadd.f32 %v1569_v53, %v1559_v58  ;;  %v1608_v50 = vsel %vm294_vm5, %v1598_v17, %v1604_v31  ;;  %v1610_v7 = vsel %vm311_vm3, %v1604_v31, %v1598_v17  ;;  %v4015_v44 = vmul.f32 %v3985_v4, %v3985_v4 }
 0x4d1   : > { %v1612_v60 = vadd.f32 %v1608_v50, %v3155_v0  ;;  %v1576_v42 = vadd.f32 %v1574_v57, %v1572_v36  ;;  %v1615_v38 = vrot.slane %v1613_v28, 7  ;;  %v1619_v39 = vrot.slane %v1613_v28, 1  ;;  %v4035_v36 = vpop.eup %2160 }
 0x4d2   : > { %v1656_v15 = vpop.permute.xlu1 %1655  ;;  %v1660_v26 = vpop.permute.xlu0 %1659  ;;  %v1575_v56 = vadd.f32 %v1573_v33, %v1567_v51  ;;  %v1634_v9 = vmul.f32 %v3987_v54, %v3987_v54  ;;  %v4316_v33 = vld [vmem:[#allocation28_spill] sm:$0xff] }
 0x4d3   : > { %v1665_v35 = vsel %vm294_vm5, %v1654_v18, %v1660_v26  ;;  %v1614_v24 = vadd.f32 %v1612_v60, %v1610_v7  ;;  %v3992_v22 = vmul.f32 0.11111111, %v1576_v42  ;;  %v1667_v46 = vsel %vm311_vm3, %v1660_v26, %v1654_v18 }
 0x4d4   : > { %v1669_v0 = vadd.f32 %v1665_v35, %v3159_v3  ;;  %v3990_v63 = vmul.f32 0.11111111, %v1575_v56 }
 0x4d5   : > { %v1616_v41 = vrot.slane %v1614_v24, 7  ;;  %v1620_v59 = vrot.slane %v1614_v24, 1  ;;  %v1692_v12 = vmul.f32 %v3992_v22, %v3992_v22 }
 0x4d6   : > { %v1662_v40 = vpop.permute.xlu1 %1661  ;;  %v1293_v6 = vpop.permute.xlu0 %1292  ;;  %v1671_v17 = vadd.f32 %v1669_v0, %v1667_v46  ;;  %v4020_v21 = vmul.f32 %v3990_v63, %v3990_v63 }
 0x4d7   : > { %v1666_v55 = vsel %vm294_vm5, %v1656_v15, %v1662_v40  ;;  %v1298_v23 = vsel %vm294_vm5, %v3924_v34, %v1293_v6  ;;  %v1617_v3 = vsel %vm320_vm2, %v1615_v38, %v1616_v41  ;;  %v1618_v58 = vsel %vm320_vm2, %v1616_v41, %v1615_v38 }
 0x4d8   : > { %v1621_v30 = vsel %vm325_vm1, %v1619_v39, %v1620_v59  ;;  %v1622_v13 = vsel %vm325_vm1, %v1620_v59, %v1619_v39  ;;  %v1628_v62 = vadd.f32 %v1617_v3, %v1614_v24  ;;  %v1670_v27 = vadd.f32 %v1666_v55, %v3171_v2 }
 0x4d9   : > { %v1623_v49 = vsel %vm328_vm6, %v1621_v30, %v1618_v58  ;;  %v1626_v52 = vsel %vm333_vm4, %v1617_v3, %v1622_v13  ;;  %v1668_v25 = vsel %vm311_vm3, %v1662_v40, %v1656_v15  ;;  %v1302_v10 = vadd.f32 %v1298_v23, %v4315_v45 }
 0x4da   : > { %v1627_v43 = vadd.f32 %v1623_v49, %v1613_v28  ;;  %v1295_v37 = vpop.permute.xlu1 %1294  ;;  %v1712_v8 = vpop.permute.xlu0 %1711  ;;  %v1630_v11 = vadd.f32 %v1628_v62, %v1626_v52  ;;  %v1672_v18 = vadd.f32 %v1670_v27, %v1668_v25  ;;  %v1300_v2 = vsel %vm311_vm3, %v1293_v6, %v3924_v34 }
 0x4db   : > { %v1299_v16 = vsel %vm294_vm5, %v3926_v19, %v1295_v37  ;;  %v1673_v51 = vrot.slane %v1671_v17, 7  ;;  %v1677_v47 = vrot.slane %v1671_v17, 1  ;;  %v1304_v53 = vadd.f32 %v1302_v10, %v1300_v2 }
 0x4dc   : > { %v1629_v31 = vadd.f32 %v1627_v43, %v1621_v30  ;;  %v1674_v57 = vrot.slane %v1672_v18, 7  ;;  %v1678_v20 = vrot.slane %v1672_v18, 1  ;;  %v1765_v5 = vadd.f32 %v4020_v21, %v4015_v44 }
 0x4dd   : > { %v1303_v28 = vadd.f32 %v1299_v16, %v4316_v33  ;;  %v1632_v60 = vmul.f32 0.11111111, %v1630_v11  ;;  %v1766_v15 = vadd.f32 %v1692_v12, %v1634_v9  ;;  %v1301_v26 = vsel %vm311_vm3, %v1295_v37, %v3926_v19 }
 0x4de   : > { %v1714_v34 = vpop.permute.xlu1 %1713  ;;  %v1631_v50 = vmul.f32 0.11111111, %v1629_v31  ;;  %v1675_v42 = vsel %vm320_vm2, %v1673_v51, %v1674_v57  ;;  %v1676_v7 = vsel %vm320_vm2, %v1674_v57, %v1673_v51  ;;  %v1679_v35 = vsel %vm325_vm1, %v1677_v47, %v1678_v20 }
 0x4df   : > { %v1718_v56 = vpop.permute.xlu0 %1717  ;;  %v1306_v24 = vrot.slane %v1304_v53, 7  ;;  %v1680_v38 = vsel %vm325_vm1, %v1678_v20, %v1677_v47  ;;  %v1681_v0 = vsel %vm328_vm6, %v1679_v35, %v1676_v7  ;;  %v1686_v39 = vadd.f32 %v1675_v42, %v1672_v18 }
 0x4e0   : > { %v1305_v41 = vadd.f32 %v1303_v28, %v1301_v26  ;;  %v1684_v19 = vsel %vm333_vm4, %v1675_v42, %v1680_v38  ;;  %v1685_v59 = vadd.f32 %v1681_v0, %v1671_v17  ;;  %v1310_v40 = vrot.slane %v1304_v53, 1  ;;  %v4319_v38 = vld [vmem:[#allocation37_spill] sm:$0xff] }
 0x4e1   : > { %v1723_v6 = vsel %vm294_vm5, %v1712_v8, %v1718_v56  ;;  %v1688_v55 = vadd.f32 %v1686_v39, %v1684_v19  ;;  %v1636_v30 = vsub.f32 %v1632_v60, %v1634_v9  ;;  %v1725_v49 = vsel %vm311_vm3, %v1718_v56, %v1712_v8 }
 0x4e2   : > { %v1720_v46 = vpop.permute.xlu1 %1719  ;;  %v1307_v23 = vrot.slane %v1305_v41, 7  ;;  %v1311_v3 = vrot.slane %v1305_v41, 1  ;;  %v1727_v58 = vadd.f32 %v1723_v6, %v3193_v29  ;;  %v1687_v13 = vadd.f32 %v1685_v59, %v1679_v35  ;;  %v4318_v35 = vld [vmem:[#allocation35_spill] sm:$0xff] }
 0x4e3   : > { %v1724_v52 = vsel %vm294_vm5, %v1714_v34, %v1720_v46  ;;  %v1690_v62 = vmul.f32 0.11111111, %v1688_v55  ;;  %v1635_v18 = vsub.f32 %v1631_v50, %v4015_v44  ;;  %v1767_v51 = vadd.f32 0.0001, %v1765_v5 }
 0x4e4   : > { %v1308_v17 = vsel %vm320_vm2, %v1306_v24, %v1307_v23  ;;  %v1309_v43 = vsel %vm320_vm2, %v1307_v23, %v1306_v24  ;;  %v1312_v27 = vsel %vm325_vm1, %v1310_v40, %v1311_v3  ;;  %v1689_v37 = vmul.f32 0.11111111, %v1687_v13 }
 0x4e5   : > { %v1313_v29 = vsel %vm325_vm1, %v1311_v3, %v1310_v40  ;;  %v1314_v8 = vsel %vm328_vm6, %v1312_v27, %v1309_v43  ;;  %v1319_v11 = vadd.f32 %v1308_v17, %v1305_v41  ;;  %v1694_v25 = vsub.f32 %v1690_v62, %v1692_v12 }
 0x4e6   : > { %v1317_v45 = vsel %vm333_vm4, %v1308_v17, %v1313_v29  ;;  %v1318_v10 = vadd.f32 %v1314_v8, %v1304_v53  ;;  %v1729_v31 = vadd.f32 %v1727_v58, %v1725_v49  ;;  %v1693_v2 = vsub.f32 %v1689_v37, %v4020_v21  ;;  %v4317_v21 = vld [vmem:[#allocation34_spill] sm:$0xff]  ;;  %v2163_v8 = vpop.eup %2162 }
 0x4e7   : > { %v1321_v16 = vadd.f32 %v1319_v11, %v1317_v45  ;;  %v1728_v9 = vadd.f32 %v1724_v52, %v3207_v1  ;;  %v1770_v47 = vadd.f32 %v1694_v25, %v1636_v30  ;;  %v1726_v20 = vsel %vm311_vm3, %v1720_v46, %v1714_v34  ;;  %v4320_v58 = vld [vmem:[#allocation38_spill] sm:$0xff] }
 0x4e8   : > { %v1320_v57 = vadd.f32 %v1318_v10, %v1312_v27  ;;  %v1768_v33 = vadd.f32 0.0001, %v1766_v15  ;;  %v1769_v12 = vadd.f32 %v1693_v2, %v1635_v18  ;;  %v1731_v56 = vrot.slane %v1729_v31, 7 }
 0x4e9   : > { %v1323_v28 = vmul.f32 0.11111111, %v1321_v16  ;;  %v1730_v60 = vadd.f32 %v1728_v9, %v1726_v20  ;;  %v1772_v26 = vadd.f32 0.0009, %v1770_v47  ;;  %v1735_v7 = vrot.slane %v1729_v31, 1 }
 0x4ea   : > { %v1322_v53 = vmul.f32 0.11111111, %v1320_v57  ;;  %v1771_v44 = vadd.f32 0.0009, %v1769_v12  ;;  %v1333_v34 = vadd.f32 0.0001, %v4319_v38  ;;  %v1750_v43 = vmul.f32 %v3992_v22, %v3987_v54 }
 0x4eb   : > { %v1327_v50 = vsub.f32 %v1323_v28, %v4317_v21  ;;  %v1732_v42 = vrot.slane %v1730_v60, 7  ;;  %v1736_v1 = vrot.slane %v1730_v60, 1  ;;  %v1774_v5 = vmul.f32 %v1772_v26, %v1768_v33 }
 0x4ec   : > { %v1326_v24 = vsub.f32 %v1322_v53, %v4318_v35  ;;  %v1773_v15 = vmul.f32 %v1771_v44, %v1767_v51  ;;  %v1332_v30 = vadd.f32 0.0001, %v4320_v58  ;;  %v1754_v52 = vmul.f32 2.0, %v3987_v54  ;;  %v4108_v44 = vld [vmem:[%s226_s23 + $0x8] sm:$0xff] }
 0x4ed   : > { %v1335_v0 = vmul.f32 2.0, %v1327_v50  ;;  %v1733_v39 = vsel %vm320_vm2, %v1731_v56, %v1732_v42  ;;  %v1734_v41 = vsel %vm320_vm2, %v1732_v42, %v1731_v56  ;;  %2164 = vrcp.f32 %v1774_v5  ;;  %v4106_v56 = vld [vmem:[%s226_s23] sm:$0xff] }
 0x4ee   : > { %v1737_v61 = vsel %vm325_vm1, %v1735_v7, %v1736_v1  ;;  %v1738_v19 = vsel %vm325_vm1, %v1736_v1, %v1735_v7  ;;  %v1744_v59 = vadd.f32 %v1733_v39, %v1730_v60  ;;  %v1334_v55 = vmul.f32 2.0, %v1326_v24 }
 0x4ef   : > { %v1337_v40 = vadd.f32 0.0009, %v1335_v0  ;;  %v1739_v6 = vsel %vm328_vm6, %v1737_v61, %v1734_v41  ;;  %v1742_v46 = vsel %vm333_vm4, %v1733_v39, %v1738_v19  ;;  %2166 = vrcp.f32 %v1773_v15 }
 0x4f0   : > { %v1743_v23 = vadd.f32 %v1739_v6, %v1729_v31  ;;  %v1746_v3 = vadd.f32 %v1744_v59, %v1742_v46  ;;  %v1336_v13 = vadd.f32 0.0009, %v1334_v55  ;;  %v1753_v29 = vmul.f32 2.0, %v3985_v4 }
 0x4f1   : > { %v1339_v49 = vmul.f32 %v1337_v40, %v1333_v34  ;;  %v1749_v45 = vmul.f32 %v3990_v63, %v3985_v4  ;;  %v1756_v10 = vmul.f32 %v1754_v52, %v3992_v22  ;;  %v1815_v35 = vsel %vm267_vm7, %v4106_v56, 0.0 }
 0x4f2   : > { %v1745_v62 = vadd.f32 %v1743_v23, %v1737_v61  ;;  %v1748_v17 = vmul.f32 0.11111111, %v1746_v3  ;;  %v1338_v27 = vmul.f32 %v1336_v13, %v1332_v30  ;;  %v1755_v54 = vmul.f32 %v1753_v29, %v3990_v63 }
 0x4f3   : > { %v1353_v37 = vmul.f32 %v4035_v36, %v1339_v49  ;;  %v1758_v57 = vadd.f32 0.0001, %v1756_v10  ;;  %v1816_v24 = vsel %vm267_vm7, %v4108_v44, 0.0 }
 0x4f4   : > { %v1747_v11 = vmul.f32 0.11111111, %v1745_v62  ;;  %v1752_v25 = vsub.f32 %v1748_v17, %v1750_v43  ;;  %v1351_v31 = vmul.f32 %v2163_v8, %v1338_v27  ;;  %v1757_v28 = vadd.f32 0.0001, %v1755_v54 }
 0x4f5   : > { %v1355_v18 = vsub.f32 1.0, %v1353_v37  ;;  %v1817_v0 = vadd.f32 %v1816_v24, %v1815_v35 }
 0x4f6   : > { %v1760_v2 = vmul.f32 2.0, %v1752_v25  ;;  %v1751_v16 = vsub.f32 %v1747_v11, %v1749_v45  ;;  %v1354_v9 = vsub.f32 1.0, %v1351_v31 }
 0x4f7   : > { %v1357_v51 = vmul.f32 0.5, %v1355_v18  ;;  %v2165_v36 = vpop.eup %2164 }
 0x4f8   : > { %v1762_v47 = vadd.f32 0.0009, %v1760_v2  ;;  %v1759_v20 = vmul.f32 2.0, %v1751_v16  ;;  %v1356_v33 = vmul.f32 0.5, %v1354_v9 }
 0x4f9   : > { %v1359_v12 = vmax.f32 %v1357_v51, 0.0  ;;  %v2167_v26 = vpop.eup %2166 }
 0x4fa   : > { %v1761_v60 = vadd.f32 0.0009, %v1759_v20  ;;  %v1764_v4 = vmul.f32 %v1762_v47, %v1758_v57  ;;  %v1358_v22 = vmax.f32 %v1356_v33, 0.0 }
 0x4fb   : > { %v1361_v53 = vmin.f32 %v1359_v12, 1.0 }
 0x4fc   : > { %v1763_v63 = vmul.f32 %v1761_v60, %v1757_v28  ;;  %v1778_v21 = vmul.f32 %v2165_v36, %v1764_v4  ;;  %v1360_v50 = vmin.f32 %v1358_v22, 1.0 }
 0x4fd   : > { %v1363_v42 = vsel %vm267_vm7, %v1361_v53, 0.0 }
 0x4fe   : > { %v1776_v1 = vmul.f32 %v2167_v26, %v1763_v63  ;;  %v1780_v5 = vsub.f32 1.0, %v1778_v21  ;;  %v1362_v7 = vsel %vm267_vm7, %v1360_v50, 0.0 }
 0x4ff   : > { %v1364_v38 = vadd.f32 %v1363_v42, %v1362_v7 }
 0x500   : > { %v1779_v34 = vsub.f32 1.0, %v1776_v1  ;;  %v1782_v15 = vmul.f32 0.5, %v1780_v5 }
 0x501   : > { %1365 = vadd.xlane.f32.xlu0 %v1364_v38 }
 0x502   : > { %v1781_v39 = vmul.f32 0.5, %v1779_v34  ;;  %v1784_v41 = vmax.f32 %v1782_v15, 0.0 }
 0x504   : > { %v1783_v61 = vmax.f32 %v1781_v39, 0.0  ;;  %v1786_v19 = vmin.f32 %v1784_v41, 1.0 }
 0x505   : > { %1818 = vadd.xlane.f32.xlu0 %v1817_v0 }
 0x506   : > { %v1785_v59 = vmin.f32 %v1783_v61, 1.0  ;;  %v1788_v40 = vsel %vm267_vm7, %v1786_v19, 0.0 }
 0x508   : > { %v1787_v6 = vsel %vm267_vm7, %v1785_v59, 0.0 }
 0x509   : > { %v1789_v46 = vadd.f32 %v1788_v40, %v1787_v6 }
 0x50b   : > { %1790 = vadd.xlane.f32.xlu1 %v1789_v46 }
 0x519   : > { %v272_v55 = vpop.xlane.xlu0 %271 }
 0x51a   : > { %v273_v23 = vrot.slane %v272_v55, 4 }
 0x51c   : > { %v274_v3 = vadd.f32 %v273_v23, %v272_v55 }
 0x51d   : > { %v661_v58 = vpop.xlane.xlu0 %660 }
 0x51e   : > { %v275_v30 = vrot.slane %v274_v3, 2  ;;  %v662_v13 = vrot.slane %v661_v58, 4 }
 0x520   : > { %v663_v49 = vadd.f32 %v662_v13, %v661_v58  ;;  %v276_v52 = vadd.f32 %v275_v30, %v274_v3 }
 0x521   : > { %v986_v62 = vpop.xlane.xlu0 %985  ;;  %v606_v17 = vpop.xlane.xlu1 %605 }
 0x522   : > { %v664_v43 = vrot.slane %v663_v49, 2  ;;  %v987_v27 = vrot.slane %v986_v62, 4  ;;  %v607_v37 = vrot.slane %v606_v17, 4  ;;  %v277_v29 = vrot.slane %v276_v52, 1 }
 0x524   : > { %v988_v8 = vadd.f32 %v987_v27, %v986_v62  ;;  %v608_v11 = vadd.f32 %v607_v37, %v606_v17  ;;  %v278_v25 = vadd.f32 %v277_v29, %v276_v52  ;;  %v665_v45 = vadd.f32 %v664_v43, %v663_v49  ;;  %v4325_v52 = vld [vmem:[#allocation30_spill] sm:$0xff]  ;;  %v4326_v17 = vld [vmem:[#allocation29_spill] sm:$0xff] }
 0x525   : > { %v1041_v10 = vpop.xlane.xlu1 %1040  ;;  %v1896_v62 = vsub.f32 0.0, %v4325_v52  ;;  %v1895_v43 = vsub.f32 0.0, %v4326_v17 }
 0x526   : > { %v989_v31 = vrot.slane %v988_v8, 2  ;;  %v609_v18 = vrot.slane %v608_v11, 2  ;;  %2066 = vpush %v278_v25  ;;  %v1042_v2 = vrot.slane %v1041_v10, 4  ;;  %v666_v16 = vrot.slane %v665_v45, 1 }
 0x527   : > { %v1899_v27 = vmul.f32 1.442695, %v1896_v62 }
 0x528   : > { %v610_v54 = vadd.f32 %v609_v18, %v608_v11  ;;  %v990_v9 = vadd.f32 %v989_v31, %v988_v8  ;;  %v1043_v51 = vadd.f32 %v1042_v2, %v1041_v10  ;;  %v667_v20 = vadd.f32 %v666_v16, %v665_v45 }
 0x529   : > { %v1897_v8 = vmul.f32 1.442695, %v1895_v43 }
 0x52a   : > { %v611_v36 = vrot.slane %v610_v54, 1  ;;  %v991_v47 = vrot.slane %v990_v9, 1  ;;  %v1044_v57 = vrot.slane %v1043_v51, 2 }
 0x52c   : > { %v612_v33 = vadd.f32 %v611_v36, %v610_v54  ;;  %v992_v12 = vadd.f32 %v991_v47, %v990_v9  ;;  %v1045_v28 = vadd.f32 %v1044_v57, %v1043_v51 }
 0x52e   : > { %2068 = vpush %v612_v33  ;;  %v1046_v60 = vrot.slane %v1045_v28, 1 }
 0x52f   : > { %2070 = vpush %v667_v20  ;;  %v4327_v20 = vld [vmem:[#allocation19_spill] sm:$0xff] }
 0x530   : > { %2072 = vpush %v992_v12  ;;  %v1047_v4 = vadd.f32 %v1046_v60, %v1045_v28  ;;  %v1868_v48 = vsub.f32 0.0, %v4327_v20  ;;  %v4328_v12 = vld [vmem:[#allocation20_spill] sm:$0xff] }
 0x531   : > { %v1869_v28 = vsub.f32 0.0, %v4328_v12 }
 0x532   : > { %2074 = vpush %v1047_v4  ;;  %v1870_v33 = vmul.f32 1.442695, %v1868_v48 }
 0x533   : > { %v1872_v60 = vmul.f32 1.442695, %v1869_v28 }
 0x557   : > { %s2067_s15 = spop %2066 }
 0x55f   : > { %s2069_s22 = spop %2068 }
 0x560   : > { %s2071_s10 = spop %2070 }
 0x561   : > { %s2073_s12 = spop %2072  ;;  %s669_s11 = sadd.f32 %s2071_s10, %s2067_s15 }
 0x562   : > { %s994_s29 = sadd.f32 %s2073_s12, %s2069_s22  ;;  %s4323_s15 = smov 16  }
 0x563   : > { %s2075_s4 = spop %2074 }
 0x564   : > { %s1049_s7 = sadd.f32 %s2075_s4, %s669_s11 }
 0x566   : > { %s1808_s27 = smul.f32 0.1, %s1049_s7  ;;  %s2280_s7 = scalar_lea.hbm %s4177_s3, 16 }
 0x567   : > { %p2281_p7 = scmp.ne.s32.totalorder %s4177_s3, %s2280_s7  ;;  %p2286_p4 = scmp.lt.u32.totalorder %s2280_s7, %s4177_s3 }
 0x568   : > { %s1811_s21 = smul.f32 0.0013020834, %s1808_s27 }
 0x569   : > { %p2282_p10 = pnand %p2281_p7, %p2111_p5 }
 0x56b   : > { %p2283_p0 = pneg %p2282_p10 }
 0x56d   : > { %p2288_p6 = pnand %p2286_p4, %p2283_p0 }
 0x58e   : > { %v1366_v26 = vpop.xlane.xlu0 %1365 }
 0x58f   : > { %v1367_v22 = vrot.slane %v1366_v26, 4 }
 0x591   : > { %v1368_v53 = vadd.f32 %v1367_v22, %v1366_v26 }
 0x592   : > { %v1819_v63 = vpop.xlane.xlu0 %1818 }
 0x593   : > { %v1369_v21 = vrot.slane %v1368_v53, 2  ;;  %v1820_v50 = vrot.slane %v1819_v63, 4 }
 0x595   : > { %v1821_v42 = vadd.f32 %v1820_v50, %v1819_v63  ;;  %v1370_v1 = vadd.f32 %v1369_v21, %v1368_v53 }
 0x597   : > { %v1822_v5 = vrot.slane %v1821_v42, 2  ;;  %v1371_v35 = vrot.slane %v1370_v1, 1 }
 0x598   : > { %v1791_v7 = vpop.xlane.xlu1 %1790 }
 0x599   : > { %v1792_v24 = vrot.slane %v1791_v7, 4  ;;  %v1372_v38 = vadd.f32 %v1371_v35, %v1370_v1  ;;  %v1823_v15 = vadd.f32 %v1822_v5, %v1821_v42 }
 0x59b   : > { %v1793_v34 = vadd.f32 %v1792_v24, %v1791_v7  ;;  %2076 = vpush %v1372_v38  ;;  %v1824_v41 = vrot.slane %v1823_v15, 1 }
 0x59d   : > { %v1794_v0 = vrot.slane %v1793_v34, 2  ;;  %v1825_v59 = vadd.f32 %v1824_v41, %v1823_v15 }
 0x59f   : > { %v1795_v39 = vadd.f32 %v1794_v0, %v1793_v34 }
 0x5a1   : > { %v1796_v61 = vrot.slane %v1795_v39, 1 }
 0x5a3   : > { %v1797_v19 = vadd.f32 %v1796_v61, %v1795_v39 }
 0x5a5   : > { %2078 = vpush %v1797_v19 }
 0x5a6   : > { %2080 = vpush %v1825_v59 }
 0x5cc   : > { %s2077_s19 = spop %2076 }
 0x5cd   : > { %s1374_s18 = sadd.f32 %s2077_s19, %s994_s29 }
 0x5cf   : > { %s1799_s26 = smul.f32 0.4, %s1374_s18 }
 0x5d1   : > { %s1802_s24 = smul.f32 0.0013020834, %s1799_s26 }
 0x5d6   : > { %s2079_s5 = spop %2078 }
 0x5d7   : > { %s1803_s28 = smul.f32 0.5, %s2079_s5  ;;  %s2081_s6 = spop %2080 }
 0x5d8   : > { %s1829_s25 = smul.f32 0.00390625, %s2081_s6 }
 0x5d9   : > { %s1806_s23 = smul.f32 0.00390625, %s1803_s28 }
 0x5da   : > { %s1830_s9 = sadd.f32 1e-08, %s1829_s25 }
 0x5db   : > { %s1807_s30 = sadd.f32 %s1806_s23, %s1802_s24 }
 0x5dc   : > { %v1831_v40 = vstv %s1830_s9 }
 0x5dd   : > { %s1812_s0 = sadd.f32 %s1811_s21, %s1807_s30  ;;  %2168 = vrcp.f32 %v1831_v40  ;;  %s2055_s30 = sld [smem:[#allocation8 + $0x1]] }
 0x5de   : > { %2170 = vpow2.f32 %v1899_v27 }
 0x5df   : > { %s1930_s22 = sadd.f32 %s1929_s8, %s1812_s0  ;;  %s4324_s0 = smov 127   ;;  %2172 = vpow2.f32 %v1897_v8 }
 0x5e0   : > { %2174 = vpow2.f32 %v1870_v33 }
 0x5e1   : > { %1932 = sst [smem:[#allocation8]] %s1930_s22  ;;  %2176 = vpow2.f32 %v1872_v60 }
 0x5e7   : > { %v2169_v6 = vpop.eup %2168 }
 0x5e8   : > { %v1833_v46 = vmul.f32 %v2169_v6, %v4106_v56  ;;  %v1834_v55 = vmul.f32 %v2169_v6, %v4108_v44  ;;  %v2171_v18 = vpop.eup %2170 }
 0x5e9   : > { %v2173_v16 = vpop.eup %2172 }
 0x5ea   : > { %1838 = vrot.lane.b32.xlu0 %v1834_v55, %s4323_s15  ;;  %1835 = vrot.lane.b32.xlu1 %v1833_v46, %s4323_s15  ;;  %v1859_v37 = vrot.slane %v1833_v46, 1  ;;  %v1860_v29 = vrot.slane %v1834_v55, 1  ;;  %v2175_v32 = vpop.eup %2174 }
 0x5eb   : > { %v2177_v42 = vpop.eup %2176 }
 0x5ec   : > { %v1862_v11 = vsel %vm325_vm1, %v1860_v29, %v1859_v37  ;;  %v1861_v25 = vsel %vm325_vm1, %v1859_v37, %v1860_v29 }
 0x5ed   : > { %v1864_v45 = vsub.f32 %v1834_v55, %v1862_v11  ;;  %v1863_v10 = vsub.f32 %v1833_v46, %v1861_v25 }
 0x5ef   : > { %v1866_v31 = vand.u32 2147483647, %v1864_v45  ;;  %v1865_v2 = vand.u32 2147483647, %v1863_v10 }
 0x5f1   : > { %v1902_v54 = vmul.f32 %v2171_v18, %v1866_v31  ;;  %v1901_v9 = vmul.f32 %v2173_v16, %v1865_v2 }
 0x5f3   : > { %v1904_v51 = vsel %vm1894_vm8, %v1902_v54, 0.0  ;;  %v1905_v36 = vsel %vm267_vm7, %v1901_v9, 0.0 }
 0x5f4   : > { %v1906_v47 = vsel %vm267_vm7, %v1904_v51, 0.0 }
 0x5f5   : > { %v1907_v57 = vadd.f32 %v1906_v47, %v1905_v36 }
 0x65c   : > { %v1836_v23 = vpop.permute.xlu1 %1835  ;;  %v1839_v58 = vpop.permute.xlu0 %1838 }
 0x65d   : > { %v1837_v3 = vsel %vm281_vm0, %v1836_v23, %v1833_v46  ;;  %v1840_v30 = vsel %vm281_vm0, %v1839_v58, %v1834_v55 }
 0x65e   : > { %1841 = vrot.lane.b32.xlu1 %v1837_v3, %s4323_s15 }
 0x662   : > { %1843 = vrot.lane.b32.xlu1 %v1840_v30, %s4323_s15 }
 0x6d0   : > { %v1842_v13 = vpop.permute.xlu1 %1841 }
 0x6d1   : > { %v1845_v49 = vsel %vm281_vm0, %v1842_v13, %v1833_v46 }
 0x6d2   : > { %1849 = vrot.lane.b32.xlu0 %v1845_v49, %s4324_s0 }
 0x6d4   : > { %v1844_v56 = vpop.permute.xlu1 %1843 }
 0x6d5   : > { %v1846_v44 = vsel %vm281_vm0, %v1844_v56, %v1834_v55 }
 0x6d6   : > { %1851 = vrot.lane.b32.xlu1 %v1846_v44, %s4324_s0 }
 0x6fa   : > { %1908 = vadd.xlane.f32.xlu1 %v1907_v57 }
 0x744   : > { %v1850_v4 = vpop.permute.xlu0 %1849 }
 0x745   : > { %v1855_v26 = vsub.f32 %v1833_v46, %v1850_v4 }
 0x747   : > { %v1857_v22 = vand.u32 2147483647, %v1855_v26 }
 0x748   : > { %v1852_v53 = vpop.permute.xlu1 %1851 }
 0x749   : > { %v1874_v63 = vmul.f32 %v2175_v32, %v1857_v22  ;;  %v1856_v21 = vsub.f32 %v1834_v55, %v1852_v53 }
 0x74b   : > { %v1858_v50 = vand.u32 2147483647, %v1856_v21  ;;  %v1876_v1 = vsel %vm1867_vm9, %v1874_v63, 0.0 }
 0x74c   : > { %v1878_v35 = vsel %vm267_vm7, %v1876_v1, 0.0 }
 0x74d   : > { %v1875_v5 = vmul.f32 %v2177_v42, %v1858_v50 }
 0x74f   : > { %v1877_v7 = vsel %vm1867_vm9, %v1875_v5, 0.0 }
 0x750   : > { %v1879_v24 = vsel %vm267_vm7, %v1877_v7, 0.0 }
 0x751   : > { %v1880_v38 = vadd.f32 %v1879_v24, %v1878_v35 }
 0x753   : > { %1881 = vadd.xlane.f32.xlu0 %v1880_v38 }
 0x787   : > { %v1909_v34 = vpop.xlane.xlu1 %1908 }
 0x788   : > { %v1910_v15 = vrot.slane %v1909_v34, 4 }
 0x78a   : > { %v1911_v0 = vadd.f32 %v1910_v15, %v1909_v34 }
 0x78c   : > { %v1912_v39 = vrot.slane %v1911_v0, 2 }
 0x78e   : > { %v1913_v14 = vadd.f32 %v1912_v39, %v1911_v0 }
 0x790   : > { %v1914_v6 = vrot.slane %v1913_v14, 1 }
 0x792   : > { %v1915_v23 = vadd.f32 %v1914_v6, %v1913_v14 }
 0x7e0   : > { %v1882_v41 = vpop.xlane.xlu0 %1881 }
 0x7e1   : > { %v1883_v61 = vrot.slane %v1882_v41, 4 }
 0x7e3   : > { %v1884_v19 = vadd.f32 %v1883_v61, %v1882_v41 }
 0x7e5   : > { %v1885_v59 = vrot.slane %v1884_v19, 2 }
 0x7e7   : > { %v1886_v40 = vadd.f32 %v1885_v59, %v1884_v19 }
 0x7e9   : > { %v1887_v46 = vrot.slane %v1886_v40, 1 }
 0x7eb   : > { %v1888_v55 = vadd.f32 %v1887_v46, %v1886_v40 }
 0x7ed   : > { %2082 = vpush %v1888_v55 }
 0x7ee   : > { %2084 = vpush %v1915_v23 }
 0x81e   : > { %s2083_s21 = spop %2082 }
 0x81f   : > { %s1892_s10 = smul.f32 0.004166667, %s2083_s21  ;;  %s2085_s12 = spop %2084 }
 0x820   : > { %s1919_s29 = smul.f32 0.004166667, %s2085_s12 }
 0x822   : > { %s1920_s4 = sadd.f32 %s1919_s29, %s1892_s10 }
 0x824   : > { %s1934_s11 = sadd.f32 %s2055_s30, %s1920_s4 }
 0x826   : > { %1936 = sst [smem:[#allocation8 + $0x1]] %s1934_s11 }
 0x827   : > { %2291 = shalt.err (!%p2288_p6)
}
 0x828   : > { %s2345_s5 = smov [#allocation8]  }
 0x829   : > { %2096 = dma.smem_to_hbm (%p2111_p5), %s2345_s5, 16, %s4177_s3, [#allocation4]  }
 0x82a   : > { %2317 = dma.done.wait (%p2111_p5), [#allocation4], 16  }
 0x82b   : > { %2319 = vsyncadd (%p2111_p5), [#allocation4], 4294967280 }
 0x82c   : > { %1950 = sfence }
 0x82d PF: > { %p17_p9 = scmp.ge.s32.totalorder %s2388_s17, 4   ;;  %s4329_s12 = smov %s2326_s13 }
 0x82e   : > { %s4330_s13 = smov %s2330_s14  ;;  %s4331_s14 = smov %s2398_s20 }
 0x82f   : > { %s4332_s15 = smov %s2388_s17  ;;  %19 = sbr.rel (!%p17_p9) target bundleno = 8 (0x8), region = 105 }
 0x836   :  { %1956 = vsyncpa [#allocation3], 1 }
 0x837   :  { %1958 = vsyncpa [#allocation3 + $0x1], 1 }
 0x838   :  { %1959 = vsyncpa [#allocation6], 1 }
 0x839   :  { %1961 = vsyncpa [#allocation6 + $0x1], 1 }
 0x83a   :  { %1962 = vsyncpa [#allocation4], 1 }
 0x83b   :  { %1964 = vsyncpa [#allocation4 + $0x1], 1 }

</bundles_post_ra>
